<compile_context>
chip_gen: v6e
topology: v6e:2x2x1
jax: 0.10.0
libtpu: 0.0.40
codegen_flags: <defaults>
</compile_context>

<pallas_src>
import math
import numpy as np
import jax
import jax.numpy as jnp
from jax.experimental import pallas as pl
from jax.experimental.pallas import tpu as pltpu

# ----------------------------- small config ---------------------------------
B = 2                       # per-image batch
C_IN = 3                    # image channels
IMG = 32                    # image spatial (NCHW input)
PATCH = 8
H = W = IMG // PATCH        # 4   (24 in the original model)
HW = H * W                  # 16
D = 128                     # ViT embed dim              (768)
HEADS = 4                   # attention heads            (12)
HD = D // HEADS             # 32
N = 1 + HW                  # tokens incl. CLS           (577)
NP = 24                     # tokens padded to a multiple of 8 (sublane friendly)
PROJ = 128                  # self.proj out channels     (1024)
BILIN = 128                 # bilinear_proj channels     (2048)
BOT = 128                   # ClassBlock bottleneck      (512)
CLASSES = 128               # class_num; eval-mode concat requires CLASSES == BOT
BLOCK = 2                   # LPN blocks
PD = C_IN * PATCH * PATCH   # 192 (patch dim of the stand-in embed)
OUT_D = (2 + BLOCK) * BOT   # lane-dense output slab width
NEG = -1e30

assert CLASSES == BOT
assert NP >= N and NP % 8 == 0


# ----------------------------- in-kernel helpers -----------------------------
def _gelu(x):
    # tanh-approximation GELU (EUP tanh); deviates slightly from exact erf GELU.
    return 0.5 * x * (1.0 + jnp.tanh(0.7978845608028654 * (x + 0.044715 * x * x * x)))


def _layernorm(x, g, b, eps=1e-6):
    mu = jnp.mean(x, axis=-1, keepdims=True)
    var = jnp.mean((x - mu) ** 2, axis=-1, keepdims=True)
    return (x - mu) * jax.lax.rsqrt(var + eps) * g + b


# ----------------------------- fused Pallas kernel ----------------------------
def fused_kernel(vf_ref, pf_ref, kbias_ref,
                 ln1g, ln1b, wqkv, bqkv, wpr, bpr,
                 ln2g, ln2b, wfc1, bfc1, wfc2, bfc2,
                 proj_w, proj_b, bil_w, bil_sc, bil_sh,
                 cw1, cb1, csc, csh,
                 hw1, hb1, hsc, hsh,
                 pw1, pb1, psc, psh, pw2, pb2,
                 pool_mult, pool_add,
                 out_ref):
    f32 = jnp.float32
    bf16 = jnp.bfloat16
    bb, npad, d = vf_ref.shape

    v_f = vf_ref[...]                                   # (bb, NP, D) tokens: [patch..., CLS, pad]
    v2 = v_f.reshape(bb * npad, d)

    # -------- self.Vit_block(l_f): timm Block(dim=D, heads, mlp_ratio=4, qkv_bias=True) -------
    h1 = _layernorm(v2, ln1g[...], ln1b[...])
    qkv = jnp.dot(h1.astype(bf16), wqkv[...], preferred_element_type=f32) + bqkv[...]
    qkv3 = qkv.reshape(bb, npad, 3 * D)

    # head-batched attention: relayout qkv ONCE to a head-leading (HEADS*bb, NP, HD) layout
    # (leading-axis concat is cheap), then single batched dots for scores and p@v.
    def heads_leading(base):
        return jnp.concatenate(
            [qkv3[:, :, base + h * HD: base + (h + 1) * HD] for h in range(HEADS)], axis=0)

    qh = heads_leading(0).astype(bf16)                  # (HEADS*bb, NP, HD)
    kh = heads_leading(D).astype(bf16)
    vh = heads_leading(2 * D).astype(bf16)

    kb = kbias_ref[...].reshape(1, 1, npad)             # 0 on valid keys, -1e30 on pads
    scale = 1.0 / math.sqrt(HD)
    s = jnp.einsum('bqd,bkd->bqk', qh, kh, preferred_element_type=f32) * scale + kb
    s = s - jnp.max(s, axis=-1, keepdims=True)
    p = jnp.exp(s)                                      # softmax in f32
    p = p * pl.reciprocal(jnp.sum(p, axis=-1, keepdims=True), approx=True)
    o = jnp.einsum('bqk,bkd->bqd', p.astype(bf16), vh, preferred_element_type=f32)

    # assemble head-major o_all once -> single K=D output projection (no per-head accumulation)
    o_all = jnp.concatenate([o[h * bb:(h + 1) * bb] for h in range(HEADS)], axis=-1)  # (bb,NP,D)
    attn = jnp.dot(o_all.reshape(bb * npad, d).astype(bf16), wpr[...],
                   preferred_element_type=f32) + bpr[...]

    x = v2 + attn
    h2 = _layernorm(x, ln2g[...], ln2b[...])
    h2 = _gelu(jnp.dot(h2.astype(bf16), wfc1[...], preferred_element_type=f32) + bfc1[...])
    h2 = jnp.dot(h2.astype(bf16), wfc2[...], preferred_element_type=f32) + bfc2[...]
    l_f = (x + h2).reshape(bb, npad, d)                 # Vit_block output tokens

    # -------- self.classifier(x): feature only (its logits are discarded in eval mode) --------
    x_cls = v_f[:, HW, :]                               # CLS token (placed after patch tokens)
    f_cls = _gelu(jnp.dot(x_cls.astype(bf16), cw1[...], preferred_element_type=f32) + cb1[...])
    f_cls = f_cls * csc[...] + csh[...]                 # BatchNorm1d (eval affine)

    # -------- restore_vit_feature on v_f and l_f (shared 1x1 conv == matmul) --------
    # patch tokens live at [:, 0:HW, :] -> offset-0, sublane-aligned slices.
    v_tok = v_f[:, 0:HW, :].reshape(bb * HW, d)
    l_tok = l_f[:, 0:HW, :].reshape(bb * HW, d)
    v_cl = jnp.dot(v_tok.astype(bf16), proj_w[...], preferred_element_type=f32) + proj_b[...]
    l_cl = jnp.dot(l_tok.astype(bf16), proj_w[...], preferred_element_type=f32) + proj_b[...]

    # -------- bilinear_proj applied ONCE per feature map (de-duplicated), then 3 HBP reductions
    p_cl = pf_ref[...].reshape(bb * HW, PROJ)
    bw = bil_w[...]

    def bilinear(xm):                                   # 1x1 conv (no bias) + BN2d(eval) + ReLU
        y = jnp.dot(xm.astype(bf16), bw, preferred_element_type=f32)
        return jnp.maximum(y * bil_sc[...] + bil_sh[...], 0.0)

    bp_p = bilinear(p_cl)
    bp_v = bilinear(v_cl)
    bp_l = bilinear(l_cl)

    def hbp_reduce(a, b):
        t = jnp.sum((a * b).reshape(bb, HW, BILIN), axis=1)          # sum over spatial
        t = jnp.sqrt(t + 1e-5)
        nrm = jnp.sqrt(jnp.sum(t * t, axis=-1, keepdims=True))
        return t / jnp.maximum(nrm, 1e-12)                           # F.normalize(dim=1)

    # -------- classifier_hbp feature: single fused (bb, 3*BILIN) @ (3*BILIN, BOT) matmul -------
    xb = jnp.concatenate([hbp_reduce(bp_p, bp_v),
                          hbp_reduce(bp_p, bp_l),
                          hbp_reduce(bp_v, bp_l)], axis=1)           # (bb, 3*BILIN)
    pre = jnp.dot(xb.astype(bf16), hw1[...], preferred_element_type=f32) + hb1[...]
    hbp_f = _gelu(pre) * hsc[...] + hsh[...]                         # (bb, BOT)

    # -------- get_part_pool (ring max pooling) + per-part ClassBlocks, batched over BLOCK ------
    v3 = v_cl.reshape(bb, HW, PROJ)
    pm = pool_mult[...]                                 # (BLOCK, HW, 1) broadcast in-kernel
    pa = pool_add[...]
    pooled = jnp.stack([jnp.max(v3 * pm[kb_] + pa[kb_], axis=1) for kb_ in range(BLOCK)],
                       axis=0)                          # (BLOCK, bb, PROJ)
    ph = _gelu(jnp.einsum('kbp,kpo->kbo', pooled.astype(bf16), pw1[...],
                          preferred_element_type=f32) + pb1[...])
    ph = ph * psc[...] + psh[...]
    part_logits = jnp.einsum('kbo,koc->kbc', ph.astype(bf16), pw2[...],
                             preferred_element_type=f32) + pb2[...]  # (BLOCK, bb, CLASSES)

    # -------- direct 128-aligned lane-slice stores (no in-kernel concat) ------------------------
    out_ref[0, :, 0:BOT] = f_cls
    out_ref[0, :, BOT:2 * BOT] = hbp_f
    for kb_ in range(BLOCK):
        out_ref[0, :, (2 + kb_) * BOT:(3 + kb_) * BOT] = part_logits[kb_]


# ----------------------------- plain-JAX glue ---------------------------------
def backbone_standin(x_img, params):
    # TODO(synk): timm ResNetV2 + ViT-B/16 hybrid backbone (_create_vision_transformer_hybrid)
    # is not translated; a deterministic patch-embed stand-in produces outputs with the same
    # roles/shapes (cls feature, resnet map p_f, vit tokens v_f == intermediate tokens l_f).
    bt = x_img.shape[0]
    patches = x_img.reshape(bt, C_IN, H, PATCH, W, PATCH)
    patches = jnp.transpose(patches, (0, 2, 4, 1, 3, 5)).reshape(bt, HW, PD)
    tok = patches @ params['embed_w'] + params['embed_b']                  # (bt, HW, D)
    cls = jnp.broadcast_to(params['cls'][None], (bt, 1, D))
    pad = jnp.zeros((bt, NP - N, D), jnp.float32)
    # token layout: [patch tokens (0..HW-1), CLS (HW), pad] -> aligned token slices in-kernel
    v_f = jnp.concatenate([tok, cls, pad], axis=1) + params['pos'][None]   # (bt, NP, D)
    p_f = patches @ params['pf_w'] + params['pf_b']                        # (bt, HW, PROJ)
    return p_f, v_f


def _const_index_map(ndim):
    return lambda i: (0,) * ndim


def fusion_features(params, x_img, t=None):
    """One fused Pallas call per (batched) image tensor; eval-mode fusion_features -> f_all."""
    # TODO(synk): `t` (mode flag of the hybrid backbone) has no translated effect.
    p_f, v_f = backbone_standin(x_img, params)
    bt = v_f.shape[0]
    n_blk = 2 if bt % 2 == 0 else 1          # >=2 grid steps -> both v7x TensorCores used
    bb = bt // n_blk

    weights = (params['key_bias'],
               *params['vit_block'],
               params['proj_w'], params['proj_b'],
               params['bil_w'], params['bil_scale'], params['bil_shift'],
               *params['classifier'], *params['classifier_hbp'], *params['parts'],
               params['pool_mult'], params['pool_add'])

    in_specs = ([pl.BlockSpec((bb, NP, D), lambda i: (i, 0, 0)),
                 pl.BlockSpec((bb, HW, PROJ), lambda i: (i, 0, 0))]
                + [pl.BlockSpec(w.shape, _const_index_map(w.ndim)) for w in weights])

    out = pl.pallas_call(
        fused_kernel,
        grid=(n_blk,),
        in_specs=in_specs,
        out_specs=pl.BlockSpec((1, bb, OUT_D), lambda i: (i, 0, 0)),
        out_shape=jax.ShapeDtypeStruct((n_blk, bb, OUT_D), jnp.float32),
        compiler_params=pltpu.CompilerParams(
            dimension_semantics=("parallel",),
            vmem_limit_bytes=32 * 1024 * 1024),
    )(v_f, p_f, *weights)

    out = out.reshape(bt, OUT_D)
    # eval-mode f_all layout: (bt, BOT, 2 + BLOCK) == concat([f, hbp_f, lpn_f], dim=2)
    return jnp.transpose(out.reshape(bt, 2 + BLOCK, BOT), (0, 2, 1))


def hybird_vit_forward(params, x1, x2, t1=None, t2=None):
    """Eval-mode forward -> (f1, f2).  share_weight=True: x1/x2 use the same weights, so they
    are concatenated into one batch and processed by a single fused kernel call."""
    if x1 is not None and x2 is not None:
        f = fusion_features(params, jnp.concatenate([x1, x2], axis=0), t1)
        b1 = x1.shape[0]
        return f[:b1], f[b1:]
    f1 = None if x1 is None else fusion_features(params, x1, t1)
    f2 = None if x2 is None else fusion_features(params, x2, t2)
    return f1, f2


# ----------------------------- get_part_pool masks -----------------------------
def build_pool_masks(Hc, Wc, block):
    """Replicates Hybird_ViT.get_part_pool (pool='max', no_overlap=True) as a masked max over
    flattened spatial positions:  part_k = max_hw( mult_k * v + add_k ).
    TODO(synk): the bilinear-interpolate branch (per_h < 1) and the misaligned `ep` padding
    branch are not translated (they do not occur for this config)."""
    c_h, c_w = Hc // 2, Wc // 2
    per_h = math.floor(Hc / (2 * block))
    per_w = math.floor(Wc / (2 * block))
    mult = np.zeros((block, Hc, Wc), np.float32)
    add = np.zeros((block, Hc, Wc), np.float32)
    for i in range(1, block + 1):
        sel = np.zeros((Hc, Wc), bool)
        zero = np.zeros((Hc, Wc), bool)
        if i < block:
            sel[c_h - i * per_h:c_h + i * per_h, c_w - i * per_w:c_w + i * per_w] = True
        else:
            sel[:, :] = True
        if i > 1:
            zero[c_h - (i - 1) * per_h:c_h + (i - 1) * per_h,
                 c_w - (i - 1) * per_w:c_w + (i - 1) * per_w] = True
        mult[i - 1] = np.where(sel & ~zero, 1.0, 0.0)   # keep value inside ring
        add[i - 1] = np.where(sel, 0.0, NEG)            # zeroed interior -> 0, outside -> -inf
    return mult.reshape(block, Hc * Wc), add.reshape(block, Hc * Wc)


# ----------------------------- deterministic params ---------------------------
def init_params(key):
    keys = iter(jax.random.split(key, 64))
    bf16 = jnp.bfloat16

    def nrm(shape, scale=0.05, dtype=jnp.float32):
        return (jax.random.normal(next(keys), shape, jnp.float32) * scale).astype(dtype)

    p = {}
    # backbone stand-in
    p['embed_w'] = nrm((PD, D))
    p['embed_b'] = jnp.zeros((1, D), jnp.float32)
    p['cls'] = nrm((1, D))
    p['pos'] = jnp.concatenate([nrm((N, D)), jnp.zeros((NP - N, D), jnp.float32)], axis=0)
    p['pf_w'] = nrm((PD, PROJ))
    p['pf_b'] = jnp.zeros((1, PROJ), jnp.float32)
    # additive attention-key mask: valid tokens are [patch..., CLS] = indices < N
    p['key_bias'] = jnp.where(jnp.arange(NP)[None, :] < N, 0.0, NEG).astype(jnp.float32)

    # Vit_block: LayerNorm(1e-6) / qkv(bias) / attn proj / LayerNorm / MLP(4x, GELU)
    # (matmul weights stored bf16; LN/bias params f32)
    p['vit_block'] = (
        jnp.ones((1, D), jnp.float32), jnp.zeros((1, D), jnp.float32),      # ln1
        nrm((D, 3 * D), 0.02, bf16), jnp.zeros((1, 3 * D), jnp.float32),    # qkv
        nrm((D, D), 0.02, bf16), jnp.zeros((1, D), jnp.float32),            # attn proj
        jnp.ones((1, D), jnp.float32), jnp.zeros((1, D), jnp.float32),      # ln2
        nrm((D, 4 * D), 0.02, bf16), jnp.zeros((1, 4 * D), jnp.float32),    # mlp fc1
        nrm((4 * D, D), 0.02, bf16), jnp.zeros((1, D), jnp.float32),        # mlp fc2
    )
    # self.proj: Conv2d(D, PROJ, 1) with bias
    p['proj_w'] = nrm((D, PROJ), dtype=bf16)
    p['proj_b'] = jnp.zeros((1, PROJ), jnp.float32)
    # bilinear_proj: Conv2d(PROJ, BILIN, 1, bias=False) + BN2d(eval; gamma=1,beta=0,mean=0,var=1)
    p['bil_w'] = nrm((PROJ, BILIN), dtype=bf16)
    p['bil_scale'] = jnp.ones((1, BILIN), jnp.float32) / jnp.sqrt(1.0 + 1e-5)
    p['bil_shift'] = jnp.zeros((1, BILIN), jnp.float32)

    def feat_block(in_dim):
        # ClassBlock.add_block (Linear -> GELU -> BatchNorm1d(eval) -> Dropout(identity)).
        # The final Linear (logits) is omitted: it is discarded in eval mode.
        w1 = nrm((in_dim, BOT), dtype=bf16)
        b1 = jnp.zeros((1, BOT), jnp.float32)
        sc = jnp.ones((1, BOT), jnp.float32) / jnp.sqrt(1.0 + 1e-5)
        sh = jnp.zeros((1, BOT), jnp.float32)
        return (w1, b1, sc, sh)

    p['classifier'] = feat_block(D)                   # ClassBlock(768, classes)
    p['classifier_hbp'] = feat_block(3 * BILIN)       # ClassBlock(2048*3, classes)

    # LPN part classifiers (classifier0..classifier{block-1}): full ClassBlock (logits kept)
    pw1 = jnp.stack([nrm((PROJ, BOT)) for _ in range(BLOCK)], axis=0).astype(bf16)
    pb1 = jnp.zeros((BLOCK, 1, BOT), jnp.float32)
    psc = jnp.ones((BLOCK, 1, BOT), jnp.float32) / jnp.sqrt(1.0 + 1e-5)
    psh = jnp.zeros((BLOCK, 1, BOT), jnp.float32)
    pw2 = jnp.stack([nrm((BOT, CLASSES)) for _ in range(BLOCK)], axis=0).astype(bf16)
    pb2 = jnp.zeros((BLOCK, 1, CLASSES), jnp.float32)
    p['parts'] = (pw1, pb1, psc, psh, pw2, pb2)

    # get_part_pool ring masks (max over mult*v + add); broadcast over channels INSIDE the kernel
    mult, add = build_pool_masks(H, W, BLOCK)
    p['pool_mult'] = jnp.asarray(mult.reshape(BLOCK, HW, 1))
    p['pool_add'] = jnp.asarray(add.reshape(BLOCK, HW, 1))
    # NOTE: classifier_multi, GeM(self.p), bilinear_proj_lpn are unused in the reference forward.
    return p


# ----------------------------- main -------------------------------------------
if __name__ == "__main__":
    key = jax.random.PRNGKey(0)
    kp, k1, k2 = jax.random.split(key, 3)
    params = init_params(kp)
    x1 = jax.random.normal(k1, (B, C_IN, IMG, IMG), jnp.float32)   # NCHW, like PyTorch
    x2 = jax.random.normal(k2, (B, C_IN, IMG, IMG), jnp.float32)
    t1 = jnp.zeros((), jnp.int32)
    t2 = jnp.ones((), jnp.int32)

    fwd = jax.jit(hybird_vit_forward)
    f1, f2 = fwd(params, x1, x2, t1, t2)
    jax.block_until_ready((f1, f2))

    assert f1.shape == (B, BOT, 2 + BLOCK)
    assert f2.shape == (B, BOT, 2 + BLOCK)
    assert bool(jnp.all(jnp.isfinite(f1))) and bool(jnp.all(jnp.isfinite(f2)))
    print("KERNEL_OK")
</pallas_src>

<mosaic_0001>
module attributes {stable_mosaic.version = 11 : i64} {
  func.func @fused_kernel(%arg0: i32, %arg1: memref<2x24x128xf32, #tpu.memory_space<vmem>>, %arg2: memref<2x16x128xf32, #tpu.memory_space<vmem>>, %arg3: memref<1x24xf32, #tpu.memory_space<vmem>>, %arg4: memref<1x128xf32, #tpu.memory_space<vmem>>, %arg5: memref<1x128xf32, #tpu.memory_space<vmem>>, %arg6: memref<128x384xbf16, #tpu.memory_space<vmem>>, %arg7: memref<1x384xf32, #tpu.memory_space<vmem>>, %arg8: memref<128x128xbf16, #tpu.memory_space<vmem>>, %arg9: memref<1x128xf32, #tpu.memory_space<vmem>>, %arg10: memref<1x128xf32, #tpu.memory_space<vmem>>, %arg11: memref<1x128xf32, #tpu.memory_space<vmem>>, %arg12: memref<128x512xbf16, #tpu.memory_space<vmem>>, %arg13: memref<1x512xf32, #tpu.memory_space<vmem>>, %arg14: memref<512x128xbf16, #tpu.memory_space<vmem>>, %arg15: memref<1x128xf32, #tpu.memory_space<vmem>>, %arg16: memref<128x128xbf16, #tpu.memory_space<vmem>>, %arg17: memref<1x128xf32, #tpu.memory_space<vmem>>, %arg18: memref<128x128xbf16, #tpu.memory_space<vmem>>, %arg19: memref<1x128xf32, #tpu.memory_space<vmem>>, %arg20: memref<1x128xf32, #tpu.memory_space<vmem>>, %arg21: memref<128x128xbf16, #tpu.memory_space<vmem>>, %arg22: memref<1x128xf32, #tpu.memory_space<vmem>>, %arg23: memref<1x128xf32, #tpu.memory_space<vmem>>, %arg24: memref<1x128xf32, #tpu.memory_space<vmem>>, %arg25: memref<384x128xbf16, #tpu.memory_space<vmem>>, %arg26: memref<1x128xf32, #tpu.memory_space<vmem>>, %arg27: memref<1x128xf32, #tpu.memory_space<vmem>>, %arg28: memref<1x128xf32, #tpu.memory_space<vmem>>, %arg29: memref<2x128x128xbf16, #tpu.memory_space<vmem>>, %arg30: memref<2x1x128xf32, #tpu.memory_space<vmem>>, %arg31: memref<2x1x128xf32, #tpu.memory_space<vmem>>, %arg32: memref<2x1x128xf32, #tpu.memory_space<vmem>>, %arg33: memref<2x128x128xbf16, #tpu.memory_space<vmem>>, %arg34: memref<2x1x128xf32, #tpu.memory_space<vmem>>, %arg35: memref<2x16x1xf32, #tpu.memory_space<vmem>>, %arg36: memref<2x16x1xf32, #tpu.memory_space<vmem>>, %arg37: memref<1x2x512xf32, #tpu.memory_space<vmem>>) attributes {dimension_semantics = [#tpu.dimension_semantics<parallel>], iteration_bounds = array<i64: 2>, scalar_prefetch = 0 : i64, scratch_operands = 0 : i64, tpu.core_type = #tpu.core_type<tc>, window_params = [{transform_indices = @transform_0, window_bounds = array<i64: 2, 24, 128>}, {transform_indices = @transform_1, window_bounds = array<i64: 2, 16, 128>}, {pipeline_mode = #tpu.pipeline_mode<synchronous>, transform_indices = @transform_2, window_bounds = array<i64: 1, 24>}, {pipeline_mode = #tpu.pipeline_mode<synchronous>, transform_indices = @transform_3, window_bounds = array<i64: 1, 128>}, {pipeline_mode = #tpu.pipeline_mode<synchronous>, transform_indices = @transform_4, window_bounds = array<i64: 1, 128>}, {pipeline_mode = #tpu.pipeline_mode<synchronous>, transform_indices = @transform_5, window_bounds = array<i64: 128, 384>}, {pipeline_mode = #tpu.pipeline_mode<synchronous>, transform_indices = @transform_6, window_bounds = array<i64: 1, 384>}, {pipeline_mode = #tpu.pipeline_mode<synchronous>, transform_indices = @transform_7, window_bounds = array<i64: 128, 128>}, {pipeline_mode = #tpu.pipeline_mode<synchronous>, transform_indices = @transform_8, window_bounds = array<i64: 1, 128>}, {pipeline_mode = #tpu.pipeline_mode<synchronous>, transform_indices = @transform_9, window_bounds = array<i64: 1, 128>}, {pipeline_mode = #tpu.pipeline_mode<synchronous>, transform_indices = @transform_10, window_bounds = array<i64: 1, 128>}, {pipeline_mode = #tpu.pipeline_mode<synchronous>, transform_indices = @transform_11, window_bounds = array<i64: 128, 512>}, {pipeline_mode = #tpu.pipeline_mode<synchronous>, transform_indices = @transform_12, window_bounds = array<i64: 1, 512>}, {pipeline_mode = #tpu.pipeline_mode<synchronous>, transform_indices = @transform_13, window_bounds = array<i64: 512, 128>}, {pipeline_mode = #tpu.pipeline_mode<synchronous>, transform_indices = @transform_14, window_bounds = array<i64: 1, 128>}, {pipeline_mode = #tpu.pipeline_mode<synchronous>, transform_indices = @transform_15, window_bounds = array<i64: 128, 128>}, {pipeline_mode = #tpu.pipeline_mode<synchronous>, transform_indices = @transform_16, window_bounds = array<i64: 1, 128>}, {pipeline_mode = #tpu.pipeline_mode<synchronous>, transform_indices = @transform_17, window_bounds = array<i64: 128, 128>}, {pipeline_mode = #tpu.pipeline_mode<synchronous>, transform_indices = @transform_18, window_bounds = array<i64: 1, 128>}, {pipeline_mode = #tpu.pipeline_mode<synchronous>, transform_indices = @transform_19, window_bounds = array<i64: 1, 128>}, {pipeline_mode = #tpu.pipeline_mode<synchronous>, transform_indices = @transform_20, window_bounds = array<i64: 128, 128>}, {pipeline_mode = #tpu.pipeline_mode<synchronous>, transform_indices = @transform_21, window_bounds = array<i64: 1, 128>}, {pipeline_mode = #tpu.pipeline_mode<synchronous>, transform_indices = @transform_22, window_bounds = array<i64: 1, 128>}, {pipeline_mode = #tpu.pipeline_mode<synchronous>, transform_indices = @transform_23, window_bounds = array<i64: 1, 128>}, {pipeline_mode = #tpu.pipeline_mode<synchronous>, transform_indices = @transform_24, window_bounds = array<i64: 384, 128>}, {pipeline_mode = #tpu.pipeline_mode<synchronous>, transform_indices = @transform_25, window_bounds = array<i64: 1, 128>}, {pipeline_mode = #tpu.pipeline_mode<synchronous>, transform_indices = @transform_26, window_bounds = array<i64: 1, 128>}, {pipeline_mode = #tpu.pipeline_mode<synchronous>, transform_indices = @transform_27, window_bounds = array<i64: 1, 128>}, {pipeline_mode = #tpu.pipeline_mode<synchronous>, transform_indices = @transform_28, window_bounds = array<i64: 2, 128, 128>}, {pipeline_mode = #tpu.pipeline_mode<synchronous>, transform_indices = @transform_29, window_bounds = array<i64: 2, 1, 128>}, {pipeline_mode = #tpu.pipeline_mode<synchronous>, transform_indices = @transform_30, window_bounds = array<i64: 2, 1, 128>}, {pipeline_mode = #tpu.pipeline_mode<synchronous>, transform_indices = @transform_31, window_bounds = array<i64: 2, 1, 128>}, {pipeline_mode = #tpu.pipeline_mode<synchronous>, transform_indices = @transform_32, window_bounds = array<i64: 2, 128, 128>}, {pipeline_mode = #tpu.pipeline_mode<synchronous>, transform_indices = @transform_33, window_bounds = array<i64: 2, 1, 128>}, {pipeline_mode = #tpu.pipeline_mode<synchronous>, transform_indices = @transform_34, window_bounds = array<i64: 2, 16, 1>}, {pipeline_mode = #tpu.pipeline_mode<synchronous>, transform_indices = @transform_35, window_bounds = array<i64: 2, 16, 1>}, {transform_indices = @transform_36, window_bounds = array<i64: 1, 2, 512>}]} {
    %c0 = arith.constant 0 : index
    %c0_0 = arith.constant 0 : index
    %c0_1 = arith.constant 0 : index
    %0 = vector.load %arg1[%c0, %c0_0, %c0_1] : memref<2x24x128xf32, #tpu.memory_space<vmem>>, vector<2x24x128xf32>
    %1 = vector.shape_cast %0 : vector<2x24x128xf32> to vector<48x128xf32>
    %c0_2 = arith.constant 0 : index
    %c0_3 = arith.constant 0 : index
    %2 = vector.load %arg4[%c0_2, %c0_3] : memref<1x128xf32, #tpu.memory_space<vmem>>, vector<1x128xf32>
    %c0_4 = arith.constant 0 : index
    %c0_5 = arith.constant 0 : index
    %3 = vector.load %arg5[%c0_4, %c0_5] : memref<1x128xf32, #tpu.memory_space<vmem>>, vector<1x128xf32>
    %cst = arith.constant dense<0.000000e+00> : vector<48xf32>
    %4 = vector.multi_reduction <add>, %1, %cst [1] : vector<48x128xf32> to vector<48xf32>
    %5 = vector.shape_cast %4 : vector<48xf32> to vector<48x1xf32>
    %cst_6 = arith.constant 1.280000e+02 : f32
    %6 = vector.broadcast %cst_6 : f32 to vector<48x1xf32>
    %7 = arith.divf %5, %6 : vector<48x1xf32>
    %8 = vector.broadcast %7 : vector<48x1xf32> to vector<48x128xf32>
    %9 = arith.subf %1, %8 : vector<48x128xf32>
    %10 = arith.mulf %9, %9 : vector<48x128xf32>
    %cst_7 = arith.constant dense<0.000000e+00> : vector<48xf32>
    %11 = vector.multi_reduction <add>, %10, %cst_7 [1] : vector<48x128xf32> to vector<48xf32>
    %12 = vector.shape_cast %11 : vector<48xf32> to vector<48x1xf32>
    %cst_8 = arith.constant 1.280000e+02 : f32
    %13 = vector.broadcast %cst_8 : f32 to vector<48x1xf32>
    %14 = arith.divf %12, %13 : vector<48x1xf32>
    %15 = vector.broadcast %7 : vector<48x1xf32> to vector<48x128xf32>
    %16 = arith.subf %1, %15 : vector<48x128xf32>
    %cst_9 = arith.constant 9.99999997E-7 : f32
    %17 = vector.broadcast %cst_9 : f32 to vector<48x1xf32>
    %18 = arith.addf %14, %17 : vector<48x1xf32>
    %19 = math.rsqrt %18 : vector<48x1xf32>
    %20 = vector.broadcast %19 : vector<48x1xf32> to vector<48x128xf32>
    %21 = arith.mulf %16, %20 : vector<48x128xf32>
    %22 = vector.broadcast %2 : vector<1x128xf32> to vector<48x128xf32>
    %23 = arith.mulf %21, %22 : vector<48x128xf32>
    %24 = vector.broadcast %3 : vector<1x128xf32> to vector<48x128xf32>
    %25 = arith.addf %23, %24 : vector<48x128xf32>
    %26 = arith.truncf %25 : vector<48x128xf32> to vector<48x128xbf16>
    %c0_10 = arith.constant 0 : index
    %c0_11 = arith.constant 0 : index
    %27 = vector.load %arg6[%c0_10, %c0_11] : memref<128x384xbf16, #tpu.memory_space<vmem>>, vector<128x384xbf16>
    %cst_12 = arith.constant dense<0.000000e+00> : vector<48x384xf32>
    %28 = tpu.matmul %26, %27, %cst_12 {dimension_numbers = #tpu.dot_dimension_numbers<[1], [0], [0], [1], [0, 0, 1, 1], [], []>} : vector<48x128xbf16>, vector<128x384xbf16>, vector<48x384xf32> -> vector<48x384xf32>
    %c0_13 = arith.constant 0 : index
    %c0_14 = arith.constant 0 : index
    %29 = vector.load %arg7[%c0_13, %c0_14] : memref<1x384xf32, #tpu.memory_space<vmem>>, vector<1x384xf32>
    %30 = vector.broadcast %29 : vector<1x384xf32> to vector<48x384xf32>
    %31 = arith.addf %28, %30 : vector<48x384xf32>
    %32 = vector.shape_cast %31 : vector<48x384xf32> to vector<2x24x384xf32>
    %33 = vector.extract_strided_slice %32 {offsets = [0, 0, 0], sizes = [2, 24, 32], strides = [1, 1, 1]} : vector<2x24x384xf32> to vector<2x24x32xf32>
    %34 = vector.extract_strided_slice %32 {offsets = [0, 0, 32], sizes = [2, 24, 32], strides = [1, 1, 1]} : vector<2x24x384xf32> to vector<2x24x32xf32>
    %35 = vector.extract_strided_slice %32 {offsets = [0, 0, 64], sizes = [2, 24, 32], strides = [1, 1, 1]} : vector<2x24x384xf32> to vector<2x24x32xf32>
    %36 = vector.extract_strided_slice %32 {offsets = [0, 0, 96], sizes = [2, 24, 32], strides = [1, 1, 1]} : vector<2x24x384xf32> to vector<2x24x32xf32>
    %37 = tpu.concatenate %33, %34, %35, %36 in 0 : vector<2x24x32xf32>, vector<2x24x32xf32>, vector<2x24x32xf32>, vector<2x24x32xf32> -> vector<8x24x32xf32>
    %38 = arith.truncf %37 : vector<8x24x32xf32> to vector<8x24x32xbf16>
    %39 = vector.extract_strided_slice %32 {offsets = [0, 0, 128], sizes = [2, 24, 32], strides = [1, 1, 1]} : vector<2x24x384xf32> to vector<2x24x32xf32>
    %40 = vector.extract_strided_slice %32 {offsets = [0, 0, 160], sizes = [2, 24, 32], strides = [1, 1, 1]} : vector<2x24x384xf32> to vector<2x24x32xf32>
    %41 = vector.extract_strided_slice %32 {offsets = [0, 0, 192], sizes = [2, 24, 32], strides = [1, 1, 1]} : vector<2x24x384xf32> to vector<2x24x32xf32>
    %42 = vector.extract_strided_slice %32 {offsets = [0, 0, 224], sizes = [2, 24, 32], strides = [1, 1, 1]} : vector<2x24x384xf32> to vector<2x24x32xf32>
    %43 = tpu.concatenate %39, %40, %41, %42 in 0 : vector<2x24x32xf32>, vector<2x24x32xf32>, vector<2x24x32xf32>, vector<2x24x32xf32> -> vector<8x24x32xf32>
    %44 = arith.truncf %43 : vector<8x24x32xf32> to vector<8x24x32xbf16>
    %45 = vector.extract_strided_slice %32 {offsets = [0, 0, 256], sizes = [2, 24, 32], strides = [1, 1, 1]} : vector<2x24x384xf32> to vector<2x24x32xf32>
    %46 = vector.extract_strided_slice %32 {offsets = [0, 0, 288], sizes = [2, 24, 32], strides = [1, 1, 1]} : vector<2x24x384xf32> to vector<2x24x32xf32>
    %47 = vector.extract_strided_slice %32 {offsets = [0, 0, 320], sizes = [2, 24, 32], strides = [1, 1, 1]} : vector<2x24x384xf32> to vector<2x24x32xf32>
    %48 = vector.extract_strided_slice %32 {offsets = [0, 0, 352], sizes = [2, 24, 32], strides = [1, 1, 1]} : vector<2x24x384xf32> to vector<2x24x32xf32>
    %49 = tpu.concatenate %45, %46, %47, %48 in 0 : vector<2x24x32xf32>, vector<2x24x32xf32>, vector<2x24x32xf32>, vector<2x24x32xf32> -> vector<8x24x32xf32>
    %50 = arith.truncf %49 : vector<8x24x32xf32> to vector<8x24x32xbf16>
    %c0_15 = arith.constant 0 : index
    %c0_16 = arith.constant 0 : index
    %51 = vector.load %arg3[%c0_15, %c0_16] : memref<1x24xf32, #tpu.memory_space<vmem>>, vector<1x24xf32>
    %52 = vector.shape_cast %51 : vector<1x24xf32> to vector<1x1x24xf32>
    "tpu.trace_start"() <{level = 10 : i32, message = "bqd,bkd->bqk"}> : () -> ()
    %cst_17 = arith.constant dense<0.000000e+00> : vector<8x24x24xf32>
    %53 = tpu.matmul %38, %44, %cst_17 {dimension_numbers = #tpu.dot_dimension_numbers<[2], [2], [1], [1], [0, 0, 0, 1, 1, 1], [0], [0]>} : vector<8x24x32xbf16>, vector<8x24x32xbf16>, vector<8x24x24xf32> -> vector<8x24x24xf32>
    "tpu.trace_stop"() : () -> ()
    %cst_18 = arith.constant 0.176776692 : f32
    %54 = vector.broadcast %cst_18 : f32 to vector<8x24x24xf32>
    %55 = arith.mulf %53, %54 : vector<8x24x24xf32>
    %56 = vector.broadcast %52 : vector<1x1x24xf32> to vector<8x24x24xf32>
    %57 = arith.addf %55, %56 : vector<8x24x24xf32>
    %cst_19 = arith.constant dense<0xFF800000> : vector<8x24xf32>
    %58 = vector.multi_reduction <maximumf>, %57, %cst_19 [2] : vector<8x24x24xf32> to vector<8x24xf32>
    %59 = vector.shape_cast %58 : vector<8x24xf32> to vector<8x24x1xf32>
    %60 = vector.broadcast %59 : vector<8x24x1xf32> to vector<8x24x24xf32>
    %61 = arith.subf %57, %60 : vector<8x24x24xf32>
    %62 = math.exp %61 : vector<8x24x24xf32>
    %cst_20 = arith.constant dense<0.000000e+00> : vector<8x24xf32>
    %63 = vector.multi_reduction <add>, %62, %cst_20 [2] : vector<8x24x24xf32> to vector<8x24xf32>
    %64 = vector.shape_cast %63 : vector<8x24xf32> to vector<8x24x1xf32>
    %65 = tpu.reciprocal %64 {approx = true} : vector<8x24x1xf32> -> vector<8x24x1xf32>
    %66 = vector.broadcast %65 : vector<8x24x1xf32> to vector<8x24x24xf32>
    %67 = arith.mulf %62, %66 : vector<8x24x24xf32>
    %68 = arith.truncf %67 : vector<8x24x24xf32> to vector<8x24x24xbf16>
    "tpu.trace_start"() <{level = 10 : i32, message = "bqk,bkd->bqd"}> : () -> ()
    %cst_21 = arith.constant dense<0.000000e+00> : vector<8x24x32xf32>
    %69 = tpu.matmul %68, %50, %cst_21 {dimension_numbers = #tpu.dot_dimension_numbers<[2], [1], [1], [2], [0, 0, 0, 1, 1, 2], [0], [0]>} : vector<8x24x24xbf16>, vector<8x24x32xbf16>, vector<8x24x32xf32> -> vector<8x24x32xf32>
    "tpu.trace_stop"() : () -> ()
    %70 = vector.extract_strided_slice %69 {offsets = [0, 0, 0], sizes = [2, 24, 32], strides = [1, 1, 1]} : vector<8x24x32xf32> to vector<2x24x32xf32>
    %71 = vector.extract_strided_slice %69 {offsets = [2, 0, 0], sizes = [2, 24, 32], strides = [1, 1, 1]} : vector<8x24x32xf32> to vector<2x24x32xf32>
    %72 = vector.extract_strided_slice %69 {offsets = [4, 0, 0], sizes = [2, 24, 32], strides = [1, 1, 1]} : vector<8x24x32xf32> to vector<2x24x32xf32>
    %73 = vector.extract_strided_slice %69 {offsets = [6, 0, 0], sizes = [2, 24, 32], strides = [1, 1, 1]} : vector<8x24x32xf32> to vector<2x24x32xf32>
    %74 = tpu.concatenate %70, %71, %72, %73 in 2 : vector<2x24x32xf32>, vector<2x24x32xf32>, vector<2x24x32xf32>, vector<2x24x32xf32> -> vector<2x24x128xf32>
    %75 = vector.shape_cast %74 : vector<2x24x128xf32> to vector<48x128xf32>
    %76 = arith.truncf %75 : vector<48x128xf32> to vector<48x128xbf16>
    %c0_22 = arith.constant 0 : index
    %c0_23 = arith.constant 0 : index
    %77 = vector.load %arg8[%c0_22, %c0_23] : memref<128x128xbf16, #tpu.memory_space<vmem>>, vector<128x128xbf16>
    %cst_24 = arith.constant dense<0.000000e+00> : vector<48x128xf32>
    %78 = tpu.matmul %76, %77, %cst_24 {dimension_numbers = #tpu.dot_dimension_numbers<[1], [0], [0], [1], [0, 0, 1, 1], [], []>} : vector<48x128xbf16>, vector<128x128xbf16>, vector<48x128xf32> -> vector<48x128xf32>
    %c0_25 = arith.constant 0 : index
    %c0_26 = arith.constant 0 : index
    %79 = vector.load %arg9[%c0_25, %c0_26] : memref<1x128xf32, #tpu.memory_space<vmem>>, vector<1x128xf32>
    %80 = vector.broadcast %79 : vector<1x128xf32> to vector<48x128xf32>
    %81 = arith.addf %78, %80 : vector<48x128xf32>
    %82 = arith.addf %1, %81 : vector<48x128xf32>
    %c0_27 = arith.constant 0 : index
    %c0_28 = arith.constant 0 : index
    %83 = vector.load %arg10[%c0_27, %c0_28] : memref<1x128xf32, #tpu.memory_space<vmem>>, vector<1x128xf32>
    %c0_29 = arith.constant 0 : index
    %c0_30 = arith.constant 0 : index
    %84 = vector.load %arg11[%c0_29, %c0_30] : memref<1x128xf32, #tpu.memory_space<vmem>>, vector<1x128xf32>
    %cst_31 = arith.constant dense<0.000000e+00> : vector<48xf32>
    %85 = vector.multi_reduction <add>, %82, %cst_31 [1] : vector<48x128xf32> to vector<48xf32>
    %86 = vector.shape_cast %85 : vector<48xf32> to vector<48x1xf32>
    %cst_32 = arith.constant 1.280000e+02 : f32
    %87 = vector.broadcast %cst_32 : f32 to vector<48x1xf32>
    %88 = arith.divf %86, %87 : vector<48x1xf32>
    %89 = vector.broadcast %88 : vector<48x1xf32> to vector<48x128xf32>
    %90 = arith.subf %82, %89 : vector<48x128xf32>
    %91 = arith.mulf %90, %90 : vector<48x128xf32>
    %cst_33 = arith.constant dense<0.000000e+00> : vector<48xf32>
    %92 = vector.multi_reduction <add>, %91, %cst_33 [1] : vector<48x128xf32> to vector<48xf32>
    %93 = vector.shape_cast %92 : vector<48xf32> to vector<48x1xf32>
    %cst_34 = arith.constant 1.280000e+02 : f32
    %94 = vector.broadcast %cst_34 : f32 to vector<48x1xf32>
    %95 = arith.divf %93, %94 : vector<48x1xf32>
    %96 = vector.broadcast %88 : vector<48x1xf32> to vector<48x128xf32>
    %97 = arith.subf %82, %96 : vector<48x128xf32>
    %cst_35 = arith.constant 9.99999997E-7 : f32
    %98 = vector.broadcast %cst_35 : f32 to vector<48x1xf32>
    %99 = arith.addf %95, %98 : vector<48x1xf32>
    %100 = math.rsqrt %99 : vector<48x1xf32>
    %101 = vector.broadcast %100 : vector<48x1xf32> to vector<48x128xf32>
    %102 = arith.mulf %97, %101 : vector<48x128xf32>
    %103 = vector.broadcast %83 : vector<1x128xf32> to vector<48x128xf32>
    %104 = arith.mulf %102, %103 : vector<48x128xf32>
    %105 = vector.broadcast %84 : vector<1x128xf32> to vector<48x128xf32>
    %106 = arith.addf %104, %105 : vector<48x128xf32>
    %107 = arith.truncf %106 : vector<48x128xf32> to vector<48x128xbf16>
    %c0_36 = arith.constant 0 : index
    %c0_37 = arith.constant 0 : index
    %108 = vector.load %arg12[%c0_36, %c0_37] : memref<128x512xbf16, #tpu.memory_space<vmem>>, vector<128x512xbf16>
    %cst_38 = arith.constant dense<0.000000e+00> : vector<48x512xf32>
    %109 = tpu.matmul %107, %108, %cst_38 {dimension_numbers = #tpu.dot_dimension_numbers<[1], [0], [0], [1], [0, 0, 1, 1], [], []>} : vector<48x128xbf16>, vector<128x512xbf16>, vector<48x512xf32> -> vector<48x512xf32>
    %c0_39 = arith.constant 0 : index
    %c0_40 = arith.constant 0 : index
    %110 = vector.load %arg13[%c0_39, %c0_40] : memref<1x512xf32, #tpu.memory_space<vmem>>, vector<1x512xf32>
    %111 = vector.broadcast %110 : vector<1x512xf32> to vector<48x512xf32>
    %112 = arith.addf %109, %111 : vector<48x512xf32>
    %cst_41 = arith.constant 5.000000e-01 : f32
    %113 = vector.broadcast %cst_41 : f32 to vector<48x512xf32>
    %114 = arith.mulf %113, %112 : vector<48x512xf32>
    %cst_42 = arith.constant 4.471500e-02 : f32
    %115 = vector.broadcast %cst_42 : f32 to vector<48x512xf32>
    %116 = arith.mulf %115, %112 : vector<48x512xf32>
    %117 = arith.mulf %116, %112 : vector<48x512xf32>
    %118 = arith.mulf %117, %112 : vector<48x512xf32>
    %119 = arith.addf %112, %118 : vector<48x512xf32>
    %cst_43 = arith.constant 0.797884583 : f32
    %120 = vector.broadcast %cst_43 : f32 to vector<48x512xf32>
    %121 = arith.mulf %120, %119 : vector<48x512xf32>
    %122 = math.tanh %121 : vector<48x512xf32>
    %cst_44 = arith.constant 1.000000e+00 : f32
    %123 = vector.broadcast %cst_44 : f32 to vector<48x512xf32>
    %124 = arith.addf %123, %122 : vector<48x512xf32>
    %125 = arith.mulf %114, %124 : vector<48x512xf32>
    %126 = arith.truncf %125 : vector<48x512xf32> to vector<48x512xbf16>
    %c0_45 = arith.constant 0 : index
    %c0_46 = arith.constant 0 : index
    %127 = vector.load %arg14[%c0_45, %c0_46] : memref<512x128xbf16, #tpu.memory_space<vmem>>, vector<512x128xbf16>
    %cst_47 = arith.constant dense<0.000000e+00> : vector<48x128xf32>
    %128 = tpu.matmul %126, %127, %cst_47 {dimension_numbers = #tpu.dot_dimension_numbers<[1], [0], [0], [1], [0, 0, 1, 1], [], []>} : vector<48x512xbf16>, vector<512x128xbf16>, vector<48x128xf32> -> vector<48x128xf32>
    %c0_48 = arith.constant 0 : index
    %c0_49 = arith.constant 0 : index
    %129 = vector.load %arg15[%c0_48, %c0_49] : memref<1x128xf32, #tpu.memory_space<vmem>>, vector<1x128xf32>
    %130 = vector.broadcast %129 : vector<1x128xf32> to vector<48x128xf32>
    %131 = arith.addf %128, %130 : vector<48x128xf32>
    %132 = arith.addf %82, %131 : vector<48x128xf32>
    %133 = vector.shape_cast %132 : vector<48x128xf32> to vector<2x24x128xf32>
    %134 = vector.extract_strided_slice %0 {offsets = [0, 16, 0], sizes = [2, 1, 128], strides = [1, 1, 1]} : vector<2x24x128xf32> to vector<2x1x128xf32>
    %135 = vector.shape_cast %134 : vector<2x1x128xf32> to vector<2x128xf32>
    %136 = arith.truncf %135 : vector<2x128xf32> to vector<2x128xbf16>
    %c0_50 = arith.constant 0 : index
    %c0_51 = arith.constant 0 : index
    %137 = vector.load %arg21[%c0_50, %c0_51] : memref<128x128xbf16, #tpu.memory_space<vmem>>, vector<128x128xbf16>
    %cst_52 = arith.constant dense<0.000000e+00> : vector<2x128xf32>
    %138 = tpu.matmul %136, %137, %cst_52 {dimension_numbers = #tpu.dot_dimension_numbers<[1], [0], [0], [1], [0, 0, 1, 1], [], []>} : vector<2x128xbf16>, vector<128x128xbf16>, vector<2x128xf32> -> vector<2x128xf32>
    %c0_53 = arith.constant 0 : index
    %c0_54 = arith.constant 0 : index
    %139 = vector.load %arg22[%c0_53, %c0_54] : memref<1x128xf32, #tpu.memory_space<vmem>>, vector<1x128xf32>
    %140 = vector.broadcast %139 : vector<1x128xf32> to vector<2x128xf32>
    %141 = arith.addf %138, %140 : vector<2x128xf32>
    %cst_55 = arith.constant 5.000000e-01 : f32
    %142 = vector.broadcast %cst_55 : f32 to vector<2x128xf32>
    %143 = arith.mulf %142, %141 : vector<2x128xf32>
    %cst_56 = arith.constant 4.471500e-02 : f32
    %144 = vector.broadcast %cst_56 : f32 to vector<2x128xf32>
    %145 = arith.mulf %144, %141 : vector<2x128xf32>
    %146 = arith.mulf %145, %141 : vector<2x128xf32>
    %147 = arith.mulf %146, %141 : vector<2x128xf32>
    %148 = arith.addf %141, %147 : vector<2x128xf32>
    %cst_57 = arith.constant 0.797884583 : f32
    %149 = vector.broadcast %cst_57 : f32 to vector<2x128xf32>
    %150 = arith.mulf %149, %148 : vector<2x128xf32>
    %151 = math.tanh %150 : vector<2x128xf32>
    %cst_58 = arith.constant 1.000000e+00 : f32
    %152 = vector.broadcast %cst_58 : f32 to vector<2x128xf32>
    %153 = arith.addf %152, %151 : vector<2x128xf32>
    %154 = arith.mulf %143, %153 : vector<2x128xf32>
    %c0_59 = arith.constant 0 : index
    %c0_60 = arith.constant 0 : index
    %155 = vector.load %arg23[%c0_59, %c0_60] : memref<1x128xf32, #tpu.memory_space<vmem>>, vector<1x128xf32>
    %156 = vector.broadcast %155 : vector<1x128xf32> to vector<2x128xf32>
    %157 = arith.mulf %154, %156 : vector<2x128xf32>
    %c0_61 = arith.constant 0 : index
    %c0_62 = arith.constant 0 : index
    %158 = vector.load %arg24[%c0_61, %c0_62] : memref<1x128xf32, #tpu.memory_space<vmem>>, vector<1x128xf32>
    %159 = vector.broadcast %158 : vector<1x128xf32> to vector<2x128xf32>
    %160 = arith.addf %157, %159 : vector<2x128xf32>
    %161 = vector.extract_strided_slice %0 {offsets = [0, 0, 0], sizes = [2, 16, 128], strides = [1, 1, 1]} : vector<2x24x128xf32> to vector<2x16x128xf32>
    %162 = vector.shape_cast %161 : vector<2x16x128xf32> to vector<32x128xf32>
    %163 = vector.extract_strided_slice %133 {offsets = [0, 0, 0], sizes = [2, 16, 128], strides = [1, 1, 1]} : vector<2x24x128xf32> to vector<2x16x128xf32>
    %164 = vector.shape_cast %163 : vector<2x16x128xf32> to vector<32x128xf32>
    %165 = arith.truncf %162 : vector<32x128xf32> to vector<32x128xbf16>
    %c0_63 = arith.constant 0 : index
    %c0_64 = arith.constant 0 : index
    %166 = vector.load %arg16[%c0_63, %c0_64] : memref<128x128xbf16, #tpu.memory_space<vmem>>, vector<128x128xbf16>
    %cst_65 = arith.constant dense<0.000000e+00> : vector<32x128xf32>
    %167 = tpu.matmul %165, %166, %cst_65 {dimension_numbers = #tpu.dot_dimension_numbers<[1], [0], [0], [1], [0, 0, 1, 1], [], []>} : vector<32x128xbf16>, vector<128x128xbf16>, vector<32x128xf32> -> vector<32x128xf32>
    %c0_66 = arith.constant 0 : index
    %c0_67 = arith.constant 0 : index
    %168 = vector.load %arg17[%c0_66, %c0_67] : memref<1x128xf32, #tpu.memory_space<vmem>>, vector<1x128xf32>
    %169 = vector.broadcast %168 : vector<1x128xf32> to vector<32x128xf32>
    %170 = arith.addf %167, %169 : vector<32x128xf32>
    %171 = arith.truncf %164 : vector<32x128xf32> to vector<32x128xbf16>
    %c0_68 = arith.constant 0 : index
    %c0_69 = arith.constant 0 : index
    %172 = vector.load %arg16[%c0_68, %c0_69] : memref<128x128xbf16, #tpu.memory_space<vmem>>, vector<128x128xbf16>
    %cst_70 = arith.constant dense<0.000000e+00> : vector<32x128xf32>
    %173 = tpu.matmul %171, %172, %cst_70 {dimension_numbers = #tpu.dot_dimension_numbers<[1], [0], [0], [1], [0, 0, 1, 1], [], []>} : vector<32x128xbf16>, vector<128x128xbf16>, vector<32x128xf32> -> vector<32x128xf32>
    %c0_71 = arith.constant 0 : index
    %c0_72 = arith.constant 0 : index
    %174 = vector.load %arg17[%c0_71, %c0_72] : memref<1x128xf32, #tpu.memory_space<vmem>>, vector<1x128xf32>
    %175 = vector.broadcast %174 : vector<1x128xf32> to vector<32x128xf32>
    %176 = arith.addf %173, %175 : vector<32x128xf32>
    %c0_73 = arith.constant 0 : index
    %c0_74 = arith.constant 0 : index
    %c0_75 = arith.constant 0 : index
    %177 = vector.load %arg2[%c0_73, %c0_74, %c0_75] : memref<2x16x128xf32, #tpu.memory_space<vmem>>, vector<2x16x128xf32>
    %178 = vector.shape_cast %177 : vector<2x16x128xf32> to vector<32x128xf32>
    %c0_76 = arith.constant 0 : index
    %c0_77 = arith.constant 0 : index
    %179 = vector.load %arg18[%c0_76, %c0_77] : memref<128x128xbf16, #tpu.memory_space<vmem>>, vector<128x128xbf16>
    %180 = arith.truncf %178 : vector<32x128xf32> to vector<32x128xbf16>
    %cst_78 = arith.constant dense<0.000000e+00> : vector<32x128xf32>
    %181 = tpu.matmul %180, %179, %cst_78 {dimension_numbers = #tpu.dot_dimension_numbers<[1], [0], [0], [1], [0, 0, 1, 1], [], []>} : vector<32x128xbf16>, vector<128x128xbf16>, vector<32x128xf32> -> vector<32x128xf32>
    %c0_79 = arith.constant 0 : index
    %c0_80 = arith.constant 0 : index
    %182 = vector.load %arg19[%c0_79, %c0_80] : memref<1x128xf32, #tpu.memory_space<vmem>>, vector<1x128xf32>
    %183 = vector.broadcast %182 : vector<1x128xf32> to vector<32x128xf32>
    %184 = arith.mulf %181, %183 : vector<32x128xf32>
    %c0_81 = arith.constant 0 : index
    %c0_82 = arith.constant 0 : index
    %185 = vector.load %arg20[%c0_81, %c0_82] : memref<1x128xf32, #tpu.memory_space<vmem>>, vector<1x128xf32>
    %186 = vector.broadcast %185 : vector<1x128xf32> to vector<32x128xf32>
    %187 = arith.addf %184, %186 : vector<32x128xf32>
    %cst_83 = arith.constant 0.000000e+00 : f32
    %188 = vector.broadcast %cst_83 : f32 to vector<32x128xf32>
    %189 = arith.maximumf %187, %188 : vector<32x128xf32>
    %190 = arith.truncf %170 : vector<32x128xf32> to vector<32x128xbf16>
    %cst_84 = arith.constant dense<0.000000e+00> : vector<32x128xf32>
    %191 = tpu.matmul %190, %179, %cst_84 {dimension_numbers = #tpu.dot_dimension_numbers<[1], [0], [0], [1], [0, 0, 1, 1], [], []>} : vector<32x128xbf16>, vector<128x128xbf16>, vector<32x128xf32> -> vector<32x128xf32>
    %c0_85 = arith.constant 0 : index
    %c0_86 = arith.constant 0 : index
    %192 = vector.load %arg19[%c0_85, %c0_86] : memref<1x128xf32, #tpu.memory_space<vmem>>, vector<1x128xf32>
    %193 = vector.broadcast %192 : vector<1x128xf32> to vector<32x128xf32>
    %194 = arith.mulf %191, %193 : vector<32x128xf32>
    %c0_87 = arith.constant 0 : index
    %c0_88 = arith.constant 0 : index
    %195 = vector.load %arg20[%c0_87, %c0_88] : memref<1x128xf32, #tpu.memory_space<vmem>>, vector<1x128xf32>
    %196 = vector.broadcast %195 : vector<1x128xf32> to vector<32x128xf32>
    %197 = arith.addf %194, %196 : vector<32x128xf32>
    %cst_89 = arith.constant 0.000000e+00 : f32
    %198 = vector.broadcast %cst_89 : f32 to vector<32x128xf32>
    %199 = arith.maximumf %197, %198 : vector<32x128xf32>
    %200 = arith.truncf %176 : vector<32x128xf32> to vector<32x128xbf16>
    %cst_90 = arith.constant dense<0.000000e+00> : vector<32x128xf32>
    %201 = tpu.matmul %200, %179, %cst_90 {dimension_numbers = #tpu.dot_dimension_numbers<[1], [0], [0], [1], [0, 0, 1, 1], [], []>} : vector<32x128xbf16>, vector<128x128xbf16>, vector<32x128xf32> -> vector<32x128xf32>
    %c0_91 = arith.constant 0 : index
    %c0_92 = arith.constant 0 : index
    %202 = vector.load %arg19[%c0_91, %c0_92] : memref<1x128xf32, #tpu.memory_space<vmem>>, vector<1x128xf32>
    %203 = vector.broadcast %202 : vector<1x128xf32> to vector<32x128xf32>
    %204 = arith.mulf %201, %203 : vector<32x128xf32>
    %c0_93 = arith.constant 0 : index
    %c0_94 = arith.constant 0 : index
    %205 = vector.load %arg20[%c0_93, %c0_94] : memref<1x128xf32, #tpu.memory_space<vmem>>, vector<1x128xf32>
    %206 = vector.broadcast %205 : vector<1x128xf32> to vector<32x128xf32>
    %207 = arith.addf %204, %206 : vector<32x128xf32>
    %cst_95 = arith.constant 0.000000e+00 : f32
    %208 = vector.broadcast %cst_95 : f32 to vector<32x128xf32>
    %209 = arith.maximumf %207, %208 : vector<32x128xf32>
    %210 = arith.mulf %189, %199 : vector<32x128xf32>
    %211 = vector.shape_cast %210 : vector<32x128xf32> to vector<2x16x128xf32>
    %cst_96 = arith.constant dense<0.000000e+00> : vector<2x128xf32>
    %212 = vector.multi_reduction <add>, %211, %cst_96 [1] : vector<2x16x128xf32> to vector<2x128xf32>
    %cst_97 = arith.constant 9.99999974E-6 : f32
    %213 = vector.broadcast %cst_97 : f32 to vector<2x128xf32>
    %214 = arith.addf %212, %213 : vector<2x128xf32>
    %215 = math.sqrt %214 : vector<2x128xf32>
    %216 = arith.mulf %215, %215 : vector<2x128xf32>
    %cst_98 = arith.constant dense<0.000000e+00> : vector<2xf32>
    %217 = vector.multi_reduction <add>, %216, %cst_98 [1] : vector<2x128xf32> to vector<2xf32>
    %218 = vector.shape_cast %217 : vector<2xf32> to vector<2x1xf32>
    %219 = math.sqrt %218 : vector<2x1xf32>
    %cst_99 = arith.constant 9.99999996E-13 : f32
    %220 = vector.broadcast %cst_99 : f32 to vector<2x1xf32>
    %221 = arith.maximumf %219, %220 : vector<2x1xf32>
    %222 = vector.broadcast %221 : vector<2x1xf32> to vector<2x128xf32>
    %223 = arith.divf %215, %222 : vector<2x128xf32>
    %224 = arith.mulf %189, %209 : vector<32x128xf32>
    %225 = vector.shape_cast %224 : vector<32x128xf32> to vector<2x16x128xf32>
    %cst_100 = arith.constant dense<0.000000e+00> : vector<2x128xf32>
    %226 = vector.multi_reduction <add>, %225, %cst_100 [1] : vector<2x16x128xf32> to vector<2x128xf32>
    %cst_101 = arith.constant 9.99999974E-6 : f32
    %227 = vector.broadcast %cst_101 : f32 to vector<2x128xf32>
    %228 = arith.addf %226, %227 : vector<2x128xf32>
    %229 = math.sqrt %228 : vector<2x128xf32>
    %230 = arith.mulf %229, %229 : vector<2x128xf32>
    %cst_102 = arith.constant dense<0.000000e+00> : vector<2xf32>
    %231 = vector.multi_reduction <add>, %230, %cst_102 [1] : vector<2x128xf32> to vector<2xf32>
    %232 = vector.shape_cast %231 : vector<2xf32> to vector<2x1xf32>
    %233 = math.sqrt %232 : vector<2x1xf32>
    %cst_103 = arith.constant 9.99999996E-13 : f32
    %234 = vector.broadcast %cst_103 : f32 to vector<2x1xf32>
    %235 = arith.maximumf %233, %234 : vector<2x1xf32>
    %236 = vector.broadcast %235 : vector<2x1xf32> to vector<2x128xf32>
    %237 = arith.divf %229, %236 : vector<2x128xf32>
    %238 = arith.mulf %199, %209 : vector<32x128xf32>
    %239 = vector.shape_cast %238 : vector<32x128xf32> to vector<2x16x128xf32>
    %cst_104 = arith.constant dense<0.000000e+00> : vector<2x128xf32>
    %240 = vector.multi_reduction <add>, %239, %cst_104 [1] : vector<2x16x128xf32> to vector<2x128xf32>
    %cst_105 = arith.constant 9.99999974E-6 : f32
    %241 = vector.broadcast %cst_105 : f32 to vector<2x128xf32>
    %242 = arith.addf %240, %241 : vector<2x128xf32>
    %243 = math.sqrt %242 : vector<2x128xf32>
    %244 = arith.mulf %243, %243 : vector<2x128xf32>
    %cst_106 = arith.constant dense<0.000000e+00> : vector<2xf32>
    %245 = vector.multi_reduction <add>, %244, %cst_106 [1] : vector<2x128xf32> to vector<2xf32>
    %246 = vector.shape_cast %245 : vector<2xf32> to vector<2x1xf32>
    %247 = math.sqrt %246 : vector<2x1xf32>
    %cst_107 = arith.constant 9.99999996E-13 : f32
    %248 = vector.broadcast %cst_107 : f32 to vector<2x1xf32>
    %249 = arith.maximumf %247, %248 : vector<2x1xf32>
    %250 = vector.broadcast %249 : vector<2x1xf32> to vector<2x128xf32>
    %251 = arith.divf %243, %250 : vector<2x128xf32>
    %252 = tpu.concatenate %223, %237, %251 in 1 : vector<2x128xf32>, vector<2x128xf32>, vector<2x128xf32> -> vector<2x384xf32>
    %253 = arith.truncf %252 : vector<2x384xf32> to vector<2x384xbf16>
    %c0_108 = arith.constant 0 : index
    %c0_109 = arith.constant 0 : index
    %254 = vector.load %arg25[%c0_108, %c0_109] : memref<384x128xbf16, #tpu.memory_space<vmem>>, vector<384x128xbf16>
    %cst_110 = arith.constant dense<0.000000e+00> : vector<2x128xf32>
    %255 = tpu.matmul %253, %254, %cst_110 {dimension_numbers = #tpu.dot_dimension_numbers<[1], [0], [0], [1], [0, 0, 1, 1], [], []>} : vector<2x384xbf16>, vector<384x128xbf16>, vector<2x128xf32> -> vector<2x128xf32>
    %c0_111 = arith.constant 0 : index
    %c0_112 = arith.constant 0 : index
    %256 = vector.load %arg26[%c0_111, %c0_112] : memref<1x128xf32, #tpu.memory_space<vmem>>, vector<1x128xf32>
    %257 = vector.broadcast %256 : vector<1x128xf32> to vector<2x128xf32>
    %258 = arith.addf %255, %257 : vector<2x128xf32>
    %cst_113 = arith.constant 5.000000e-01 : f32
    %259 = vector.broadcast %cst_113 : f32 to vector<2x128xf32>
    %260 = arith.mulf %259, %258 : vector<2x128xf32>
    %cst_114 = arith.constant 4.471500e-02 : f32
    %261 = vector.broadcast %cst_114 : f32 to vector<2x128xf32>
    %262 = arith.mulf %261, %258 : vector<2x128xf32>
    %263 = arith.mulf %262, %258 : vector<2x128xf32>
    %264 = arith.mulf %263, %258 : vector<2x128xf32>
    %265 = arith.addf %258, %264 : vector<2x128xf32>
    %cst_115 = arith.constant 0.797884583 : f32
    %266 = vector.broadcast %cst_115 : f32 to vector<2x128xf32>
    %267 = arith.mulf %266, %265 : vector<2x128xf32>
    %268 = math.tanh %267 : vector<2x128xf32>
    %cst_116 = arith.constant 1.000000e+00 : f32
    %269 = vector.broadcast %cst_116 : f32 to vector<2x128xf32>
    %270 = arith.addf %269, %268 : vector<2x128xf32>
    %271 = arith.mulf %260, %270 : vector<2x128xf32>
    %c0_117 = arith.constant 0 : index
    %c0_118 = arith.constant 0 : index
    %272 = vector.load %arg27[%c0_117, %c0_118] : memref<1x128xf32, #tpu.memory_space<vmem>>, vector<1x128xf32>
    %273 = vector.broadcast %272 : vector<1x128xf32> to vector<2x128xf32>
    %274 = arith.mulf %271, %273 : vector<2x128xf32>
    %c0_119 = arith.constant 0 : index
    %c0_120 = arith.constant 0 : index
    %275 = vector.load %arg28[%c0_119, %c0_120] : memref<1x128xf32, #tpu.memory_space<vmem>>, vector<1x128xf32>
    %276 = vector.broadcast %275 : vector<1x128xf32> to vector<2x128xf32>
    %277 = arith.addf %274, %276 : vector<2x128xf32>
    %278 = vector.shape_cast %170 : vector<32x128xf32> to vector<2x16x128xf32>
    %c0_121 = arith.constant 0 : index
    %c0_122 = arith.constant 0 : index
    %c0_123 = arith.constant 0 : index
    %279 = vector.load %arg35[%c0_121, %c0_122, %c0_123] : memref<2x16x1xf32, #tpu.memory_space<vmem>>, vector<2x16x1xf32>
    %c0_124 = arith.constant 0 : index
    %c0_125 = arith.constant 0 : index
    %c0_126 = arith.constant 0 : index
    %280 = vector.load %arg36[%c0_124, %c0_125, %c0_126] : memref<2x16x1xf32, #tpu.memory_space<vmem>>, vector<2x16x1xf32>
    %281 = vector.extract_strided_slice %279 {offsets = [0, 0, 0], sizes = [1, 16, 1], strides = [1, 1, 1]} : vector<2x16x1xf32> to vector<1x16x1xf32>
    %282 = vector.shape_cast %281 : vector<1x16x1xf32> to vector<16x1xf32>
    %283 = vector.shape_cast %282 : vector<16x1xf32> to vector<1x16x1xf32>
    %284 = vector.broadcast %283 : vector<1x16x1xf32> to vector<2x16x128xf32>
    %285 = arith.mulf %278, %284 : vector<2x16x128xf32>
    %286 = vector.extract_strided_slice %280 {offsets = [0, 0, 0], sizes = [1, 16, 1], strides = [1, 1, 1]} : vector<2x16x1xf32> to vector<1x16x1xf32>
    %287 = vector.shape_cast %286 : vector<1x16x1xf32> to vector<16x1xf32>
    %288 = vector.shape_cast %287 : vector<16x1xf32> to vector<1x16x1xf32>
    %289 = vector.broadcast %288 : vector<1x16x1xf32> to vector<2x16x128xf32>
    %290 = arith.addf %285, %289 : vector<2x16x128xf32>
    %cst_127 = arith.constant dense<0xFF800000> : vector<2x128xf32>
    %291 = vector.multi_reduction <maximumf>, %290, %cst_127 [1] : vector<2x16x128xf32> to vector<2x128xf32>
    %292 = vector.extract_strided_slice %279 {offsets = [1, 0, 0], sizes = [1, 16, 1], strides = [1, 1, 1]} : vector<2x16x1xf32> to vector<1x16x1xf32>
    %293 = vector.shape_cast %292 : vector<1x16x1xf32> to vector<16x1xf32>
    %294 = vector.shape_cast %293 : vector<16x1xf32> to vector<1x16x1xf32>
    %295 = vector.broadcast %294 : vector<1x16x1xf32> to vector<2x16x128xf32>
    %296 = arith.mulf %278, %295 : vector<2x16x128xf32>
    %297 = vector.extract_strided_slice %280 {offsets = [1, 0, 0], sizes = [1, 16, 1], strides = [1, 1, 1]} : vector<2x16x1xf32> to vector<1x16x1xf32>
    %298 = vector.shape_cast %297 : vector<1x16x1xf32> to vector<16x1xf32>
    %299 = vector.shape_cast %298 : vector<16x1xf32> to vector<1x16x1xf32>
    %300 = vector.broadcast %299 : vector<1x16x1xf32> to vector<2x16x128xf32>
    %301 = arith.addf %296, %300 : vector<2x16x128xf32>
    %cst_128 = arith.constant dense<0xFF800000> : vector<2x128xf32>
    %302 = vector.multi_reduction <maximumf>, %301, %cst_128 [1] : vector<2x16x128xf32> to vector<2x128xf32>
    %303 = vector.shape_cast %291 : vector<2x128xf32> to vector<1x2x128xf32>
    %304 = vector.shape_cast %302 : vector<2x128xf32> to vector<1x2x128xf32>
    %305 = tpu.concatenate %303, %304 in 0 : vector<1x2x128xf32>, vector<1x2x128xf32> -> vector<2x2x128xf32>
    %306 = arith.truncf %305 : vector<2x2x128xf32> to vector<2x2x128xbf16>
    %c0_129 = arith.constant 0 : index
    %c0_130 = arith.constant 0 : index
    %c0_131 = arith.constant 0 : index
    %307 = vector.load %arg29[%c0_129, %c0_130, %c0_131] : memref<2x128x128xbf16, #tpu.memory_space<vmem>>, vector<2x128x128xbf16>
    "tpu.trace_start"() <{level = 10 : i32, message = "kbp,kpo->kbo"}> : () -> ()
    %cst_132 = arith.constant dense<0.000000e+00> : vector<2x2x128xf32>
    %308 = tpu.matmul %306, %307, %cst_132 {dimension_numbers = #tpu.dot_dimension_numbers<[2], [1], [1], [2], [0, 0, 0, 1, 1, 2], [0], [0]>} : vector<2x2x128xbf16>, vector<2x128x128xbf16>, vector<2x2x128xf32> -> vector<2x2x128xf32>
    "tpu.trace_stop"() : () -> ()
    %c0_133 = arith.constant 0 : index
    %c0_134 = arith.constant 0 : index
    %c0_135 = arith.constant 0 : index
    %309 = vector.load %arg30[%c0_133, %c0_134, %c0_135] : memref<2x1x128xf32, #tpu.memory_space<vmem>>, vector<2x1x128xf32>
    %310 = vector.broadcast %309 : vector<2x1x128xf32> to vector<2x2x128xf32>
    %311 = arith.addf %308, %310 : vector<2x2x128xf32>
    %cst_136 = arith.constant 5.000000e-01 : f32
    %312 = vector.broadcast %cst_136 : f32 to vector<2x2x128xf32>
    %313 = arith.mulf %312, %311 : vector<2x2x128xf32>
    %cst_137 = arith.constant 4.471500e-02 : f32
    %314 = vector.broadcast %cst_137 : f32 to vector<2x2x128xf32>
    %315 = arith.mulf %314, %311 : vector<2x2x128xf32>
    %316 = arith.mulf %315, %311 : vector<2x2x128xf32>
    %317 = arith.mulf %316, %311 : vector<2x2x128xf32>
    %318 = arith.addf %311, %317 : vector<2x2x128xf32>
    %cst_138 = arith.constant 0.797884583 : f32
    %319 = vector.broadcast %cst_138 : f32 to vector<2x2x128xf32>
    %320 = arith.mulf %319, %318 : vector<2x2x128xf32>
    %321 = math.tanh %320 : vector<2x2x128xf32>
    %cst_139 = arith.constant 1.000000e+00 : f32
    %322 = vector.broadcast %cst_139 : f32 to vector<2x2x128xf32>
    %323 = arith.addf %322, %321 : vector<2x2x128xf32>
    %324 = arith.mulf %313, %323 : vector<2x2x128xf32>
    %c0_140 = arith.constant 0 : index
    %c0_141 = arith.constant 0 : index
    %c0_142 = arith.constant 0 : index
    %325 = vector.load %arg31[%c0_140, %c0_141, %c0_142] : memref<2x1x128xf32, #tpu.memory_space<vmem>>, vector<2x1x128xf32>
    %326 = vector.broadcast %325 : vector<2x1x128xf32> to vector<2x2x128xf32>
    %327 = arith.mulf %324, %326 : vector<2x2x128xf32>
    %c0_143 = arith.constant 0 : index
    %c0_144 = arith.constant 0 : index
    %c0_145 = arith.constant 0 : index
    %328 = vector.load %arg32[%c0_143, %c0_144, %c0_145] : memref<2x1x128xf32, #tpu.memory_space<vmem>>, vector<2x1x128xf32>
    %329 = vector.broadcast %328 : vector<2x1x128xf32> to vector<2x2x128xf32>
    %330 = arith.addf %327, %329 : vector<2x2x128xf32>
    %331 = arith.truncf %330 : vector<2x2x128xf32> to vector<2x2x128xbf16>
    %c0_146 = arith.constant 0 : index
    %c0_147 = arith.constant 0 : index
    %c0_148 = arith.constant 0 : index
    %332 = vector.load %arg33[%c0_146, %c0_147, %c0_148] : memref<2x128x128xbf16, #tpu.memory_space<vmem>>, vector<2x128x128xbf16>
    "tpu.trace_start"() <{level = 10 : i32, message = "kbo,koc->kbc"}> : () -> ()
    %cst_149 = arith.constant dense<0.000000e+00> : vector<2x2x128xf32>
    %333 = tpu.matmul %331, %332, %cst_149 {dimension_numbers = #tpu.dot_dimension_numbers<[2], [1], [1], [2], [0, 0, 0, 1, 1, 2], [0], [0]>} : vector<2x2x128xbf16>, vector<2x128x128xbf16>, vector<2x2x128xf32> -> vector<2x2x128xf32>
    "tpu.trace_stop"() : () -> ()
    %c0_150 = arith.constant 0 : index
    %c0_151 = arith.constant 0 : index
    %c0_152 = arith.constant 0 : index
    %334 = vector.load %arg34[%c0_150, %c0_151, %c0_152] : memref<2x1x128xf32, #tpu.memory_space<vmem>>, vector<2x1x128xf32>
    %335 = vector.broadcast %334 : vector<2x1x128xf32> to vector<2x2x128xf32>
    %336 = arith.addf %333, %335 : vector<2x2x128xf32>
    %c0_153 = arith.constant 0 : index
    %c0_154 = arith.constant 0 : index
    %c0_155 = arith.constant 0 : index
    %337 = vector.load %arg37[%c0_153, %c0_154, %c0_155] : memref<1x2x512xf32, #tpu.memory_space<vmem>>, vector<1x2x128xf32>
    %338 = vector.shape_cast %337 : vector<1x2x128xf32> to vector<2x128xf32>
    %339 = vector.shape_cast %160 : vector<2x128xf32> to vector<1x2x128xf32>
    tpu.vector_store %arg37[%c0_153, %c0_154, %c0_155], %339 {strides = array<i32>} : memref<1x2x512xf32, #tpu.memory_space<vmem>>, vector<1x2x128xf32>,
    %c0_156 = arith.constant 0 : index
    %c0_157 = arith.constant 0 : index
    %c128 = arith.constant 128 : index
    %340 = vector.load %arg37[%c0_156, %c0_157, %c128] : memref<1x2x512xf32, #tpu.memory_space<vmem>>, vector<1x2x128xf32>
    %341 = vector.shape_cast %340 : vector<1x2x128xf32> to vector<2x128xf32>
    %342 = vector.shape_cast %277 : vector<2x128xf32> to vector<1x2x128xf32>
    tpu.vector_store %arg37[%c0_156, %c0_157, %c128], %342 {strides = array<i32>} : memref<1x2x512xf32, #tpu.memory_space<vmem>>, vector<1x2x128xf32>,
    %343 = vector.extract_strided_slice %336 {offsets = [0, 0, 0], sizes = [1, 2, 128], strides = [1, 1, 1]} : vector<2x2x128xf32> to vector<1x2x128xf32>
    %344 = vector.shape_cast %343 : vector<1x2x128xf32> to vector<2x128xf32>
    %c0_158 = arith.constant 0 : index
    %c0_159 = arith.constant 0 : index
    %c256 = arith.constant 256 : index
    %345 = vector.load %arg37[%c0_158, %c0_159, %c256] : memref<1x2x512xf32, #tpu.memory_space<vmem>>, vector<1x2x128xf32>
    %346 = vector.shape_cast %345 : vector<1x2x128xf32> to vector<2x128xf32>
    %347 = vector.shape_cast %344 : vector<2x128xf32> to vector<1x2x128xf32>
    tpu.vector_store %arg37[%c0_158, %c0_159, %c256], %347 {strides = array<i32>} : memref<1x2x512xf32, #tpu.memory_space<vmem>>, vector<1x2x128xf32>,
    %348 = vector.extract_strided_slice %336 {offsets = [1, 0, 0], sizes = [1, 2, 128], strides = [1, 1, 1]} : vector<2x2x128xf32> to vector<1x2x128xf32>
    %349 = vector.shape_cast %348 : vector<1x2x128xf32> to vector<2x128xf32>
    %c0_160 = arith.constant 0 : index
    %c0_161 = arith.constant 0 : index
    %c384 = arith.constant 384 : index
    %350 = vector.load %arg37[%c0_160, %c0_161, %c384] : memref<1x2x512xf32, #tpu.memory_space<vmem>>, vector<1x2x128xf32>
    %351 = vector.shape_cast %350 : vector<1x2x128xf32> to vector<2x128xf32>
    %352 = vector.shape_cast %349 : vector<2x128xf32> to vector<1x2x128xf32>
    tpu.vector_store %arg37[%c0_160, %c0_161, %c384], %352 {strides = array<i32>} : memref<1x2x512xf32, #tpu.memory_space<vmem>>, vector<1x2x128xf32>,
    return
  }
  func.func @transform_0(%arg0: i32) -> (i32, i32, i32) {
    %c0_i32 = arith.constant 0 : i32
    %c0_i32_0 = arith.constant 0 : i32
    %c0_i32_1 = arith.constant 0 : i32
    return %arg0, %c0_i32, %c0_i32_0 : i32, i32, i32
  }
  func.func @transform_1(%arg0: i32) -> (i32, i32, i32) {
    %c0_i32 = arith.constant 0 : i32
    %c0_i32_0 = arith.constant 0 : i32
    %c0_i32_1 = arith.constant 0 : i32
    return %arg0, %c0_i32, %c0_i32_0 : i32, i32, i32
  }
  func.func @transform_2(%arg0: i32) -> (i32, i32) {
    %c0_i32 = arith.constant 0 : i32
    %c0_i32_0 = arith.constant 0 : i32
    %c0_i32_1 = arith.constant 0 : i32
    return %c0_i32, %c0_i32_0 : i32, i32
  }
  func.func @transform_3(%arg0: i32) -> (i32, i32) {
    %c0_i32 = arith.constant 0 : i32
    %c0_i32_0 = arith.constant 0 : i32
    %c0_i32_1 = arith.constant 0 : i32
    return %c0_i32, %c0_i32_0 : i32, i32
  }
  func.func @transform_4(%arg0: i32) -> (i32, i32) {
    %c0_i32 = arith.constant 0 : i32
    %c0_i32_0 = arith.constant 0 : i32
    %c0_i32_1 = arith.constant 0 : i32
    return %c0_i32, %c0_i32_0 : i32, i32
  }
  func.func @transform_5(%arg0: i32) -> (i32, i32) {
    %c0_i32 = arith.constant 0 : i32
    %c0_i32_0 = arith.constant 0 : i32
    %c0_i32_1 = arith.constant 0 : i32
    return %c0_i32, %c0_i32_0 : i32, i32
  }
  func.func @transform_6(%arg0: i32) -> (i32, i32) {
    %c0_i32 = arith.constant 0 : i32
    %c0_i32_0 = arith.constant 0 : i32
    %c0_i32_1 = arith.constant 0 : i32
    return %c0_i32, %c0_i32_0 : i32, i32
  }
  func.func @transform_7(%arg0: i32) -> (i32, i32) {
    %c0_i32 = arith.constant 0 : i32
    %c0_i32_0 = arith.constant 0 : i32
    %c0_i32_1 = arith.constant 0 : i32
    return %c0_i32, %c0_i32_0 : i32, i32
  }
  func.func @transform_8(%arg0: i32) -> (i32, i32) {
    %c0_i32 = arith.constant 0 : i32
    %c0_i32_0 = arith.constant 0 : i32
    %c0_i32_1 = arith.constant 0 : i32
    return %c0_i32, %c0_i32_0 : i32, i32
  }
  func.func @transform_9(%arg0: i32) -> (i32, i32) {
    %c0_i32 = arith.constant 0 : i32
    %c0_i32_0 = arith.constant 0 : i32
    %c0_i32_1 = arith.constant 0 : i32
    return %c0_i32, %c0_i32_0 : i32, i32
  }
  func.func @transform_10(%arg0: i32) -> (i32, i32) {
    %c0_i32 = arith.constant 0 : i32
    %c0_i32_0 = arith.constant 0 : i32
    %c0_i32_1 = arith.constant 0 : i32
    return %c0_i32, %c0_i32_0 : i32, i32
  }
  func.func @transform_11(%arg0: i32) -> (i32, i32) {
    %c0_i32 = arith.constant 0 : i32
    %c0_i32_0 = arith.constant 0 : i32
    %c0_i32_1 = arith.constant 0 : i32
    return %c0_i32, %c0_i32_0 : i32, i32
  }
  func.func @transform_12(%arg0: i32) -> (i32, i32) {
    %c0_i32 = arith.constant 0 : i32
    %c0_i32_0 = arith.constant 0 : i32
    %c0_i32_1 = arith.constant 0 : i32
    return %c0_i32, %c0_i32_0 : i32, i32
  }
  func.func @transform_13(%arg0: i32) -> (i32, i32) {
    %c0_i32 = arith.constant 0 : i32
    %c0_i32_0 = arith.constant 0 : i32
    %c0_i32_1 = arith.constant 0 : i32
    return %c0_i32, %c0_i32_0 : i32, i32
  }
  func.func @transform_14(%arg0: i32) -> (i32, i32) {
    %c0_i32 = arith.constant 0 : i32
    %c0_i32_0 = arith.constant 0 : i32
    %c0_i32_1 = arith.constant 0 : i32
    return %c0_i32, %c0_i32_0 : i32, i32
  }
  func.func @transform_15(%arg0: i32) -> (i32, i32) {
    %c0_i32 = arith.constant 0 : i32
    %c0_i32_0 = arith.constant 0 : i32
    %c0_i32_1 = arith.constant 0 : i32
    return %c0_i32, %c0_i32_0 : i32, i32
  }
  func.func @transform_16(%arg0: i32) -> (i32, i32) {
    %c0_i32 = arith.constant 0 : i32
    %c0_i32_0 = arith.constant 0 : i32
    %c0_i32_1 = arith.constant 0 : i32
    return %c0_i32, %c0_i32_0 : i32, i32
  }
  func.func @transform_17(%arg0: i32) -> (i32, i32) {
    %c0_i32 = arith.constant 0 : i32
    %c0_i32_0 = arith.constant 0 : i32
    %c0_i32_1 = arith.constant 0 : i32
    return %c0_i32, %c0_i32_0 : i32, i32
  }
  func.func @transform_18(%arg0: i32) -> (i32, i32) {
    %c0_i32 = arith.constant 0 : i32
    %c0_i32_0 = arith.constant 0 : i32
    %c0_i32_1 = arith.constant 0 : i32
    return %c0_i32, %c0_i32_0 : i32, i32
  }
  func.func @transform_19(%arg0: i32) -> (i32, i32) {
    %c0_i32 = arith.constant 0 : i32
    %c0_i32_0 = arith.constant 0 : i32
    %c0_i32_1 = arith.constant 0 : i32
    return %c0_i32, %c0_i32_0 : i32, i32
  }
  func.func @transform_20(%arg0: i32) -> (i32, i32) {
    %c0_i32 = arith.constant 0 : i32
    %c0_i32_0 = arith.constant 0 : i32
    %c0_i32_1 = arith.constant 0 : i32
    return %c0_i32, %c0_i32_0 : i32, i32
  }
  func.func @transform_21(%arg0: i32) -> (i32, i32) {
    %c0_i32 = arith.constant 0 : i32
    %c0_i32_0 = arith.constant 0 : i32
    %c0_i32_1 = arith.constant 0 : i32
    return %c0_i32, %c0_i32_0 : i32, i32
  }
  func.func @transform_22(%arg0: i32) -> (i32, i32) {
    %c0_i32 = arith.constant 0 : i32
    %c0_i32_0 = arith.constant 0 : i32
    %c0_i32_1 = arith.constant 0 : i32
    return %c0_i32, %c0_i32_0 : i32, i32
  }
  func.func @transform_23(%arg0: i32) -> (i32, i32) {
    %c0_i32 = arith.constant 0 : i32
    %c0_i32_0 = arith.constant 0 : i32
    %c0_i32_1 = arith.constant 0 : i32
    return %c0_i32, %c0_i32_0 : i32, i32
  }
  func.func @transform_24(%arg0: i32) -> (i32, i32) {
    %c0_i32 = arith.constant 0 : i32
    %c0_i32_0 = arith.constant 0 : i32
    %c0_i32_1 = arith.constant 0 : i32
    return %c0_i32, %c0_i32_0 : i32, i32
  }
  func.func @transform_25(%arg0: i32) -> (i32, i32) {
    %c0_i32 = arith.constant 0 : i32
    %c0_i32_0 = arith.constant 0 : i32
    %c0_i32_1 = arith.constant 0 : i32
    return %c0_i32, %c0_i32_0 : i32, i32
  }
  func.func @transform_26(%arg0: i32) -> (i32, i32) {
    %c0_i32 = arith.constant 0 : i32
    %c0_i32_0 = arith.constant 0 : i32
    %c0_i32_1 = arith.constant 0 : i32
    return %c0_i32, %c0_i32_0 : i32, i32
  }
  func.func @transform_27(%arg0: i32) -> (i32, i32) {
    %c0_i32 = arith.constant 0 : i32
    %c0_i32_0 = arith.constant 0 : i32
    %c0_i32_1 = arith.constant 0 : i32
    return %c0_i32, %c0_i32_0 : i32, i32
  }
  func.func @transform_28(%arg0: i32) -> (i32, i32, i32) {
    %c0_i32 = arith.constant 0 : i32
    %c0_i32_0 = arith.constant 0 : i32
    %c0_i32_1 = arith.constant 0 : i32
    %c0_i32_2 = arith.constant 0 : i32
    return %c0_i32, %c0_i32_0, %c0_i32_1 : i32, i32, i32
  }
  func.func @transform_29(%arg0: i32) -> (i32, i32, i32) {
    %c0_i32 = arith.constant 0 : i32
    %c0_i32_0 = arith.constant 0 : i32
    %c0_i32_1 = arith.constant 0 : i32
    %c0_i32_2 = arith.constant 0 : i32
    return %c0_i32, %c0_i32_0, %c0_i32_1 : i32, i32, i32
  }
  func.func @transform_30(%arg0: i32) -> (i32, i32, i32) {
    %c0_i32 = arith.constant 0 : i32
    %c0_i32_0 = arith.constant 0 : i32
    %c0_i32_1 = arith.constant 0 : i32
    %c0_i32_2 = arith.constant 0 : i32
    return %c0_i32, %c0_i32_0, %c0_i32_1 : i32, i32, i32
  }
  func.func @transform_31(%arg0: i32) -> (i32, i32, i32) {
    %c0_i32 = arith.constant 0 : i32
    %c0_i32_0 = arith.constant 0 : i32
    %c0_i32_1 = arith.constant 0 : i32
    %c0_i32_2 = arith.constant 0 : i32
    return %c0_i32, %c0_i32_0, %c0_i32_1 : i32, i32, i32
  }
  func.func @transform_32(%arg0: i32) -> (i32, i32, i32) {
    %c0_i32 = arith.constant 0 : i32
    %c0_i32_0 = arith.constant 0 : i32
    %c0_i32_1 = arith.constant 0 : i32
    %c0_i32_2 = arith.constant 0 : i32
    return %c0_i32, %c0_i32_0, %c0_i32_1 : i32, i32, i32
  }
  func.func @transform_33(%arg0: i32) -> (i32, i32, i32) {
    %c0_i32 = arith.constant 0 : i32
    %c0_i32_0 = arith.constant 0 : i32
    %c0_i32_1 = arith.constant 0 : i32
    %c0_i32_2 = arith.constant 0 : i32
    return %c0_i32, %c0_i32_0, %c0_i32_1 : i32, i32, i32
  }
  func.func @transform_34(%arg0: i32) -> (i32, i32, i32) {
    %c0_i32 = arith.constant 0 : i32
    %c0_i32_0 = arith.constant 0 : i32
    %c0_i32_1 = arith.constant 0 : i32
    %c0_i32_2 = arith.constant 0 : i32
    return %c0_i32, %c0_i32_0, %c0_i32_1 : i32, i32, i32
  }
  func.func @transform_35(%arg0: i32) -> (i32, i32, i32) {
    %c0_i32 = arith.constant 0 : i32
    %c0_i32_0 = arith.constant 0 : i32
    %c0_i32_1 = arith.constant 0 : i32
    %c0_i32_2 = arith.constant 0 : i32
    return %c0_i32, %c0_i32_0, %c0_i32_1 : i32, i32, i32
  }
  func.func @transform_36(%arg0: i32) -> (i32, i32, i32) {
    %c0_i32 = arith.constant 0 : i32
    %c0_i32_0 = arith.constant 0 : i32
    %c0_i32_1 = arith.constant 0 : i32
    return %arg0, %c0_i32, %c0_i32_0 : i32, i32, i32
  }
}

</mosaic_0001>

<bundles_post_ra>
// kernel: hybird_vit_forward.1
= control target key start
LH: loop header
LB: loop body
LE: loop exit
PB: predicated region body
PF: predicated region fallthrough
CT: control target
= control target key end

     0   :  { %s7706_s6 = smov 1   ;;  %s7707_s10 = smov 2   ;;  %s9356_s0 = inlined_call_operand.smem [shape: u32[37], index: -1, kind: input, shape index: {}] }
   0x1   :  { %s7756_s5 = sld [smem:[%s9356_s0]]   ;;  %s7708_s14 = smov 3  }
   0x2   :  { %s7761_s9 = sld [smem:[%s9356_s0 + %s7706_s6]]   ;;  %s7709_s18 = smov 4  }
   0x3   :  { %s7766_s13 = sld [smem:[%s9356_s0 + %s7707_s10]]   ;;  %s7710_s22 = smov 5  }
   0x4   :  { %s7771_s17 = sld [smem:[%s9356_s0 + %s7708_s14]]   ;;  %s7711_s26 = smov 6  }
   0x5   :  { %s7776_s21 = sld [smem:[%s9356_s0 + %s7709_s18]]   ;;  %s7712_s30 = smov 7  }
   0x6   :  { %s7781_s25 = sld [smem:[%s9356_s0 + %s7710_s22]]   ;;  %s7713_s4 = smov 8  }
   0x7   :  { %s7786_s29 = sld [smem:[%s9356_s0 + %s7711_s26]]   ;;  %s7714_s10 = smov 9  }
   0x8   :  { %9365 = sst [smem:[#allocation2_spill]] %s7761_s9  ;;  %s7715_s15 = smov 10  }
   0x9   :  { %s7791_s3 = sld [smem:[%s9356_s0 + %s7712_s30]]   ;;  %s7716_s20 = smov 11  }
   0xa   :  { %s7796_s8 = sld [smem:[%s9356_s0 + %s7713_s4]]   ;;  %s7717_s26 = smov 12  }
   0xb   :  { %s7801_s14 = sld [smem:[%s9356_s0 + %s7714_s10]]   ;;  %s7718_s1 = smov 13  }
   0xc   :  { %s7806_s19 = sld [smem:[%s9356_s0 + %s7715_s15]]   ;;  %s7719_s7 = smov 14  }
   0xd   :  { %s7811_s24 = sld [smem:[%s9356_s0 + %s7716_s20]]   ;;  %s7720_s15 = smov 15  }
   0xe   :  { %s7816_s30 = sld [smem:[%s9356_s0 + %s7717_s26]]   ;;  %s7721_s22 = smov 16  }
   0xf   :  { %s7821_s6 = sld [smem:[%s9356_s0 + %s7718_s1]]   ;;  %s7722_s28 = smov 17  }
  0x10   :  { %s7826_s12 = sld [smem:[%s9356_s0 + %s7719_s7]]   ;;  %s7723_s7 = smov 18  }
  0x11   :  { %s7831_s20 = sld [smem:[%s9356_s0 + %s7720_s15]]   ;;  %s7724_s15 = smov 19  }
  0x12   :  { %s7836_s27 = sld [smem:[%s9356_s0 + %s7721_s22]]   ;;  %s7725_s22 = smov 20  }
  0x13   :  { %s7841_s4 = sld [smem:[%s9356_s0 + %s7722_s28]]   ;;  %s7726_s28 = smov 21  }
  0x14   :  { %s7851_s9 = sld [smem:[%s9356_s0 + %s7724_s15]]   ;;  %s7728_s15 = smov 23  }
  0x16   :  { %9366 = sst [smem:[#allocation3_spill]] %s7826_s12 }
  0x17   :  { %s7846_s12 = sld [smem:[%s9356_s0 + %s7723_s7]]   ;;  %s7727_s7 = smov 22  }
  0x18   :  { %9367 = sst [smem:[#allocation4_spill]] %s7836_s27 }
  0x19   :  { %9368 = sst [smem:[#allocation5_spill]] %s7841_s4 }
  0x1a   :  { %9370 = sst [smem:[#allocation7_spill]] %s7851_s9 }
  0x1b   :  { %s7856_s27 = sld [smem:[%s9356_s0 + %s7725_s22]]   ;;  %s7729_s22 = smov 24  }
  0x1c   :  { %s7861_s4 = sld [smem:[%s9356_s0 + %s7726_s28]]   ;;  %s7730_s28 = smov 25  }
  0x1d   :  { %9369 = sst [smem:[#allocation6_spill]] %s7846_s12 }
  0x1e   :  { %s7866_s12 = sld [smem:[%s9356_s0 + %s7727_s7]]   ;;  %s7731_s7 = smov 26  }
  0x1f   :  { %s7871_s9 = sld [smem:[%s9356_s0 + %s7728_s15]]   ;;  %s7732_s15 = smov 27  }
  0x21   :  { %9371 = sst [smem:[#allocation8_spill]] %s7856_s27 }
  0x22   :  { %9372 = sst [smem:[#allocation9_spill]] %s7861_s4 }
  0x23   :  { %s7876_s27 = sld [smem:[%s9356_s0 + %s7729_s22]]   ;;  %s7733_s22 = smov 28  }
  0x24   :  { %9373 = sst [smem:[#allocation10_spill]] %s7866_s12 }
  0x25   :  { %9374 = sst [smem:[#allocation11_spill]] %s7871_s9 }
  0x26   :  { %s7881_s4 = sld [smem:[%s9356_s0 + %s7730_s28]]   ;;  %s7734_s28 = smov 29  }
  0x27   :  { %s7886_s12 = sld [smem:[%s9356_s0 + %s7731_s7]]   ;;  %s7735_s7 = smov 30  }
  0x28   :  { %s7891_s9 = sld [smem:[%s9356_s0 + %s7732_s15]]   ;;  %s7736_s15 = smov 31  }
  0x29   :  { %9375 = sst [smem:[#allocation12_spill]] %s7876_s27 }
  0x2a   :  { %s7896_s27 = sld [smem:[%s9356_s0 + %s7733_s22]]   ;;  %s7737_s22 = smov 32  }
  0x2c   :  { %9376 = sst [smem:[#allocation13_spill]] %s7881_s4 }
  0x2d   :  { %9377 = sst [smem:[#allocation14_spill]] %s7886_s12 }
  0x2e   :  { %9378 = sst [smem:[#allocation15_spill]] %s7891_s9 }
  0x2f   :  { %s7901_s4 = sld [smem:[%s9356_s0 + %s7734_s28]]   ;;  %s7738_s28 = smov 33  }
  0x30   :  { %9379 = sst [smem:[#allocation16_spill]] %s7896_s27 }
  0x31   :  { %s7906_s12 = sld [smem:[%s9356_s0 + %s7735_s7]]   ;;  %s7739_s7 = smov 34  }
  0x32   :  { %s7911_s9 = sld [smem:[%s9356_s0 + %s7736_s15]]   ;;  %s7740_s15 = smov 35  }
  0x33   :  { %s7916_s27 = sld [smem:[%s9356_s0 + %s7737_s22]]   ;;  %s7741_s22 = smov 36  }
  0x35   :  { %9380 = sst [smem:[#allocation17_spill]] %s7901_s4 }
  0x36   :  { %s7921_s4 = sld [smem:[%s9356_s0 + %s7738_s28]]   ;;  %s7938_s28 = smov 0  }
  0x37   :  { %9381 = sst [smem:[#allocation18_spill]] %s7906_s12 }
  0x38   :  { %9382 = sst [smem:[#allocation19_spill]] %s7911_s9 }
  0x39   :  { %9383 = sst [smem:[#allocation20_spill]] %s7916_s27 }
  0x3a   :  { %s7926_s12 = sld [smem:[%s9356_s0 + %s7739_s7]]  }
  0x3b   :  { %s7931_s9 = sld [smem:[%s9356_s0 + %s7740_s15]]  }
  0x3c   :  { %s7936_s27 = sld [smem:[%s9356_s0 + %s7741_s22]]  }
  0x3d LB: > { %s7944_s1 = sadd.s32 4294967295, %s7704_s28   ;;  %p6110_p0 = scmp.ge.s32.totalorder %s7704_s28, 1  ;;  %s7704_s28 = sphi %s7938_s28, %s83_s28  }
  0x3e   : > { %p1013_p1 = scmp.lt.s32.totalorder %s7704_s28, 3 }
  0x40   : > { %p1014_p2 = pnand %p6110_p0, %p1013_p1 }
  0x41   : > { %s6111_s0 = sshll.u32 (!%p1014_p2), %s7944_s1, 1  ;;  %s7745_s10 = smov (!%p1014_p2), 96  }
  0x42   : > { %1017 = sbr.rel (%p1014_p2) target bundleno = 3728 (0xe90), region = 164  ;;  %p1111_p3 = scmp.lt.s32.totalorder (!%p1014_p2), %s6111_s0, 3 }
  0x43   : > { %s7746_s11 = smov (!%p1014_p2), 64   ;;  %s7747_s15 = smov (!%p1014_p2), 32  }
  0x44   : > { %s9384_s16 = sld [smem:[#allocation8_spill]] (!%p1014_p2)  ;;  %p1124_p4 = scmp.lt.s32.totalorder (!%p1014_p2), %s7944_s1, 1 }
  0x45   : > { %s9385_s18 = sld [smem:[#allocation5_spill]] (!%p1014_p2) }
  0x46   : > { %s9386_s22 = sld [smem:[#allocation2_spill]] (!%p1014_p2) }
  0x47   : > { %s9404_s0 = smov (!%p1111_p3, %s6111_s0), 3  ;;  %v7280_v6 = vld [vmem:[%s7781_s25 + $0xac] ss:$12 sps:$4 sm:$0xff]   ;;  %v7282_v7 = vld [vmem:[%s7781_s25 + $0xa8] ss:$12 sps:$4 sm:$0xff]   ;;  %v7742_v8 = vmov 0.0  }
  0x48   : > { %s7062_s2 = smul.u32 24, %s9404_s0  ;;  %6634 = vmatprep.subr.bf16.mxu1 %v7742_v8  ;;  %v7283_v9 = vld [vmem:[%s7781_s25 + $0xb0] ss:$12 sps:$4 sm:$0xff]   ;;  %1409 = vmatprep.subr.bf16.mxu0 %v7280_v6  ;;  %v7284_v34 = vld [vmem:[%s7781_s25 + $0x94] ss:$12 sps:$4 sm:$0xff]   ;;  %v7743_v53 = vmov 0  }
  0x49   : > { %1410 = vmatpush1.bf16.msra.mxu0 %v7282_v7  ;;  %6635 = vmatpush3.bf16.msra.mxu1 %v7283_v9  ;;  %v7286_v35 = vld [vmem:[%s7781_s25 + $0x90] ss:$12 sps:$4 sm:$0xff]   ;;  %v7287_v36 = vld [vmem:[%s7781_s25 + $0x98] ss:$12 sps:$4 sm:$0xff]   ;;  %v7291_v39 = vld [vmem:[%s7781_s25 + $0x80] ss:$12 sps:$4 sm:$0xff]  }
  0x4a   : > { %s7953_s7 = scalar_lea.vmem %s7756_s5, %s7062_s2  ;;  %6636 = vmatprep.subr.bf16.mxu1 %v7742_v8  ;;  %1411 = vmatprep.subr.bf16.mxu0 %v7284_v34  ;;  %v7288_v37 = vld [vmem:[%s7781_s25 + $0x7c] ss:$12 sps:$4 sm:$0xff]   ;;  %v7290_v38 = vld [vmem:[%s7781_s25 + $0x78] ss:$12 sps:$4 sm:$0xff]   ;;  %v7294_v41 = vld [vmem:[%s7781_s25 + $0x60] ss:$12 sps:$4 sm:$0xff]  }
  0x4b   : > { %v1130_v0 = vld [vmem:[%s7953_s7] sm:$0xff]  ;;  %v1132_v1 = vld [vmem:[%s7953_s7 + $0x10] sm:$0xff]  ;;  %v1131_v2 = vld [vmem:[%s7953_s7 + $0x8] sm:$0xff]  ;;  %1441 = vmatprep.mubr.bf16.mxu0 %v7743_v53  ;;  %vm7744_vm0 = vmmov 0   ;;  %7279 = vset.pattern.permute.xlu1 %v7743_v53  ;;  %vm1758_vm1 = vcmask 261120   ;;  %vm2580_vm2 = vcmask 1043456  }
  0x4c   : > { %1138 = vadd.xlane.f32.xlu0 %v1130_v0  ;;  %1142 = vadd.xlane.f32.xlu1 %v1132_v1  ;;  %v1133_v3 = vld [vmem:[%s7953_s7 + $0x18] sm:$0xff]  ;;  %v1134_v4 = vld [vmem:[%s7953_s7 + $0x20] sm:$0xff]  ;;  %v1135_v5 = vld [vmem:[%s7953_s7 + $0x28] sm:$0xff]  ;;  %vm2293_vm3 = vcmask 195584   ;;  %vm3109_vm4 = vcmask 523264   ;;  %vm3116_vm5 = vcmask 785408  }
  0x4d   : > { %1412 = vmatpush1.bf16.msra.mxu0 %v7286_v35  ;;  %6637 = vmatpush3.bf16.msra.mxu1 %v7287_v36  ;;  %v7292_v40 = vld [vmem:[%s7781_s25 + $0x64] ss:$12 sps:$4 sm:$0xff]   ;;  %v7295_v42 = vld [vmem:[%s7781_s25 + $0x68] ss:$12 sps:$4 sm:$0xff]   ;;  %v7296_v43 = vld [vmem:[%s7781_s25 + $0x4c] ss:$12 sps:$4 sm:$0xff]  }
  0x4e   : > { %6638 = vmatprep.subr.bf16.mxu1 %v7742_v8  ;;  %1413 = vmatprep.subr.bf16.mxu0 %v7288_v37  ;;  %v7298_v44 = vld [vmem:[%s7781_s25 + $0x48] ss:$12 sps:$4 sm:$0xff]   ;;  %v7299_v45 = vld [vmem:[%s7781_s25 + $0x50] ss:$12 sps:$4 sm:$0xff]   ;;  %v7303_v48 = vld [vmem:[%s7781_s25 + $0x38] ss:$12 sps:$4 sm:$0xff]  }
  0x4f   : > { %v7300_v46 = vld [vmem:[%s7781_s25 + $0x34] ss:$12 sps:$4 sm:$0xff]   ;;  %v7302_v47 = vld [vmem:[%s7781_s25 + $0x30] ss:$12 sps:$4 sm:$0xff]   ;;  %v7306_v50 = vld [vmem:[%s7781_s25 + $0x18] ss:$12 sps:$4 sm:$0xff]   ;;  %6650 = vmatprep.mubr.msk.bf16.mxu1 %vm7744_vm0, %v7742_v8  ;;  %7278 = vset.pattern.permute.xlu0 %v7743_v53 }
  0x50   : > { %1140 = vadd.xlane.f32.xlu0 %v1131_v2  ;;  %1144 = vadd.xlane.f32.xlu1 %v1133_v3  ;;  %v7304_v49 = vld [vmem:[%s7781_s25 + $0x1c] ss:$12 sps:$4 sm:$0xff]   ;;  %v7307_v51 = vld [vmem:[%s7781_s25 + $0x20] ss:$12 sps:$4 sm:$0xff]   ;;  %v7308_v52 = vld [vmem:[%s7781_s25 + $0x4] ss:$12 sps:$4 sm:$0xff]  }
  0x51   : > { %1414 = vmatpush1.bf16.msra.mxu0 %v7290_v38  ;;  %6639 = vmatpush3.bf16.msra.mxu1 %v7291_v39  ;;  %v7310_v54 = vld [vmem:[%s7781_s25] ss:$12 sps:$4 sm:$0xff]   ;;  %v7311_v55 = vld [vmem:[%s7781_s25 + $0x8] ss:$12 sps:$4 sm:$0xff]   ;;  %vm4330_vm6 = vcmask 1041409   ;;  %s9387_s23 = sld [smem:[#allocation3_spill]] }
  0x52   : > { %6640 = vmatprep.subr.bf16.mxu1 %v7742_v8  ;;  %1415 = vmatprep.subr.bf16.mxu0 %v7292_v40  ;;  %s6352_s26 = sshll.u32 %s9404_s0, 4  ;;  %s9388_s0 = sld [smem:[#allocation4_spill]]  ;;  %vm4931_vm11 = vcmask 1041408  }
  0x53   : > { %s1122_s2 = scalar_lea.vmem %s9386_s22, %s6352_s26  ;;  %s9406_s1 = smov (!%p1124_p4, %s7944_s1), 1 }
  0x54   : > { %1146 = vadd.xlane.f32.xlu0 %v1134_v4  ;;  %1148 = vadd.xlane.f32.xlu1 %v1135_v5  ;;  %s9393_s26 = sld [smem:[#allocation7_spill]] }
  0x55   : > { %1416 = vmatpush1.bf16.msra.mxu0 %v7294_v41  ;;  %6641 = vmatpush3.bf16.msra.mxu1 %v7295_v42 }
  0x56   : > { %6642 = vmatprep.subr.bf16.mxu1 %v7742_v8  ;;  %1417 = vmatprep.subr.bf16.mxu0 %v7296_v43  ;;  %v1264_v43 = vld [vmem:[%s7786_s29] sm:$0x7] }
  0x59   : > { %1418 = vmatpush1.bf16.msra.mxu0 %v7298_v44  ;;  %6643 = vmatpush3.bf16.msra.mxu1 %v7299_v45 }
  0x5a   : > { %6644 = vmatprep.subr.bf16.mxu1 %v7742_v8  ;;  %1419 = vmatprep.subr.bf16.mxu0 %v7300_v46 }
  0x5d   : > { %1420 = vmatpush1.bf16.msra.mxu0 %v7302_v47  ;;  %6645 = vmatpush3.bf16.msra.mxu1 %v7303_v48 }
  0x5e   : > { %1421 = vmatprep.subr.bf16.mxu0 %v7304_v49  ;;  %6646 = vmatprep.subr.bf16.mxu1 %v7742_v8 }
  0x61   : > { %1422 = vmatpush1.bf16.msra.mxu0 %v7306_v50  ;;  %6647 = vmatpush3.bf16.msra.mxu1 %v7307_v51 }
  0x62   : > { %1423 = vmatprep.subr.bf16.mxu0 %v7308_v52  ;;  %6648 = vmatprep.subr.bf16.mxu1 %v7742_v8 }
  0x65   : > { %1424 = vmatpush1.bf16.msra.mxu0 %v7310_v54  ;;  %6649 = vmatpush3.bf16.msra.mxu1 %v7311_v55 }
  0xd5   : > { %v1139_v10 = vpop.xlane.xlu0 %1138  ;;  %v1143_v11 = vpop.xlane.xlu1 %1142 }
  0xd6   : > { %v1151_v12 = vmul.f32 0.0078125, %v1139_v10  ;;  %v1153_v13 = vmul.f32 0.0078125, %v1143_v11 }
  0xd8   : > { %v7966_v14 = vsub.f32 %v1130_v0, %v1151_v12  ;;  %v7968_v15 = vsub.f32 %v1132_v1, %v1153_v13  ;;  %v6118_v13 = vld [vmem:[%s7771_s17] ss:$0 sm:$0xff] }
  0xd9   : > { %v1141_v16 = vpop.xlane.xlu0 %1140  ;;  %v1145_v17 = vpop.xlane.xlu1 %1144 }
  0xda   : > { %v1152_v18 = vmul.f32 0.0078125, %v1141_v16  ;;  %v1163_v19 = vmul.f32 %v7966_v14, %v7966_v14  ;;  %v1154_v20 = vmul.f32 0.0078125, %v1145_v17  ;;  %v1165_v21 = vmul.f32 %v7968_v15, %v7968_v15 }
  0xdc   : > { %1169 = vadd.xlane.f32.xlu0 %v1163_v19  ;;  %v7974_v22 = vsub.f32 %v1131_v2, %v1152_v18  ;;  %v7976_v23 = vsub.f32 %v1133_v3, %v1154_v20  ;;  %v6119_v20 = vld [vmem:[%s7776_s21] ss:$0 sm:$0xff] }
  0xdd   : > { %v1147_v24 = vpop.xlane.xlu0 %1146  ;;  %v1149_v25 = vpop.xlane.xlu1 %1148 }
  0xde   : > { %v1155_v26 = vmul.f32 0.0078125, %v1147_v24  ;;  %v1164_v27 = vmul.f32 %v7974_v22, %v7974_v22  ;;  %v1156_v28 = vmul.f32 0.0078125, %v1149_v25  ;;  %v1166_v29 = vmul.f32 %v7976_v23, %v7976_v23 }
  0xe0   : > { %1173 = vadd.xlane.f32.xlu0 %v1165_v21  ;;  %1171 = vadd.xlane.f32.xlu1 %v1164_v27  ;;  %v7982_v30 = vsub.f32 %v1134_v4, %v1155_v26  ;;  %v7984_v31 = vsub.f32 %v1135_v5, %v1156_v28 }
  0xe2   : > { %v1167_v32 = vmul.f32 %v7982_v30, %v7982_v30  ;;  %v1168_v33 = vmul.f32 %v7984_v31, %v7984_v31 }
  0xe4   : > { %1175 = vadd.xlane.f32.xlu1 %v1166_v29  ;;  %1177 = vadd.xlane.f32.xlu0 %v1167_v32 }
  0xe8   : > { %1179 = vadd.xlane.f32.xlu1 %v1168_v33 }
 0x165   : > { %v1170_v56 = vpop.xlane.xlu0 %1169 }
 0x166   : > { %v1181_v57 = vmul.f32 0.0078125, %v1170_v56 }
 0x168   : > { %v1187_v58 = vadd.f32 1e-06, %v1181_v57 }
 0x169   : > { %v1172_v59 = vpop.xlane.xlu1 %1171  ;;  %v1174_v60 = vpop.xlane.xlu0 %1173 }
 0x16a   : > { %7480 = vrsqrt.f32 %v1187_v58  ;;  %v1182_v61 = vmul.f32 0.0078125, %v1172_v59  ;;  %v1183_v62 = vmul.f32 0.0078125, %v1174_v60 }
 0x16c   : > { %v1188_v63 = vadd.f32 1e-06, %v1182_v61  ;;  %v1189_v0 = vadd.f32 1e-06, %v1183_v62 }
 0x16d   : > { %v1176_v1 = vpop.xlane.xlu1 %1175  ;;  %v1178_v2 = vpop.xlane.xlu0 %1177 }
 0x16e   : > { %7482 = vrsqrt.f32 %v1188_v63  ;;  %v1184_v3 = vmul.f32 0.0078125, %v1176_v1  ;;  %v1185_v5 = vmul.f32 0.0078125, %v1178_v2 }
 0x16f   : > { %7484 = vrsqrt.f32 %v1189_v0 }
 0x170   : > { %v1190_v4 = vadd.f32 1e-06, %v1184_v3  ;;  %v1191_v9 = vadd.f32 1e-06, %v1185_v5 }
 0x171   : > { %v1180_v6 = vpop.xlane.xlu1 %1179 }
 0x172   : > { %7486 = vrsqrt.f32 %v1190_v4  ;;  %v1186_v7 = vmul.f32 0.0078125, %v1180_v6 }
 0x174   : > { %v1192_v10 = vadd.f32 1e-06, %v1186_v7 }
 0x176   : > { %7488 = vrsqrt.f32 %v1192_v10 }
 0x177   : > { %v7481_v11 = vpop.eup %7480  ;;  %7490 = vrsqrt.f32 %v1191_v9 }
 0x178   : > { %v1199_v12 = vmul.f32 %v7481_v11, %v7966_v14 }
 0x17a   : > { %v1211_v18 = vmul.f32 %v6118_v13, %v1199_v12 }
 0x17b   : > { %v7483_v16 = vpop.eup %7482 }
 0x17c   : > { %v1200_v17 = vmul.f32 %v7483_v16, %v7974_v22  ;;  %v7485_v19 = vpop.eup %7484  ;;  %v1223_v25 = vadd.f32 %v6119_v20, %v1211_v18 }
 0x17d   : > { %v1201_v27 = vmul.f32 %v7485_v19, %v7968_v15 }
 0x17e   : > { %v1212_v21 = vmul.f32 %v6118_v13, %v1200_v17 }
 0x17f   : > { %v7487_v24 = vpop.eup %7486  ;;  %v1213_v14 = vmul.f32 %v6118_v13, %v1201_v27 }
 0x180   : > { %v1224_v26 = vadd.f32 %v6119_v20, %v1212_v21  ;;  %v1202_v28 = vmul.f32 %v7487_v24, %v7976_v23 }
 0x181   : > { %v1225_v36 = vadd.f32 %v6119_v20, %v1213_v14 }
 0x182   : > { %v1229_v29 = vpack.c.bf16 %v1224_v26, %v1223_v25  ;;  %v1214_v32 = vmul.f32 %v6118_v13, %v1202_v28 }
 0x183   : > { %v7489_v33 = vpop.eup %7488 }
 0x184   : > { %1442 = vmatmul.mubr.bf16.vlgmr.msra.gmra.mxu0 %v1229_v29  ;;  %6651 = vmatmul.mubr.bf16.vlgmr.msra.gmra.mxu1 %v1229_v29  ;;  %v7491_v34 = vpop.eup %7490  ;;  %v1226_v22 = vadd.f32 %v6119_v20, %v1214_v32  ;;  %v1204_v35 = vmul.f32 %v7489_v33, %v7984_v31  ;;  %v1266_v31 = vlaneseq }
 0x185   : > { %1451 = vmatprep.mubr.bf16.mxu0 %v7743_v53  ;;  %6654 = vmatprep.mubr.msk.bf16.mxu1 %vm7744_vm0, %v7742_v8  ;;  %v1203_v15 = vmul.f32 %v7491_v34, %v7982_v30 }
 0x186   : > { %v1230_v23 = vpack.c.bf16 %v1226_v22, %v1225_v36  ;;  %v1216_v37 = vmul.f32 %v6118_v13, %v1204_v35  ;;  %v8036_v42 = vshrl.u32 %v1266_v31, 7 }
 0x187   : > { %v1215_v38 = vmul.f32 %v6118_v13, %v1203_v15 }
 0x188   : > { %v1228_v39 = vadd.f32 %v6119_v20, %v1216_v37  ;;  %v1268_v30 = vsub.s32 0, %v8036_v42  ;;  %v1272_v49 = vsub.s32 1, %v8036_v42  ;;  %v1276_v57 = vsub.s32 2, %v8036_v42 }
 0x189   : > { %v1227_v40 = vadd.f32 %v6119_v20, %v1215_v38 }
 0x18a   : > { %v8044_v46 = vrot.slane %v1264_v43, %v1268_v30  ;;  %v1273_v58 = vrot.slane %v1264_v43, %v1272_v49  ;;  %v8059_v0 = vrot.slane %v1264_v43, %v1276_v57 }
 0x18b   : > { %v1231_v41 = vpack.c.bf16 %v1228_v39, %v1227_v40 }
 0x18c   : > { %1452 = vmatmul.mubr.bf16.gmra.mxu0 %v1230_v23  ;;  %6655 = vmatmul.mubr.bf16.gmra.mxu1 %v1230_v23 }
 0x18d   : > { %1461 = vmatprep.mubr.bf16.mxu0 %v7743_v53  ;;  %6658 = vmatprep.mubr.msk.bf16.mxu1 %vm7744_vm0, %v7742_v8 }
 0x194   : > { %1462 = vmatmul.mubr.bf16.gmra.mxu0 %v1231_v41  ;;  %6659 = vmatmul.mubr.bf16.gmra.mxu1 %v1231_v41 }
 0x244   : > { %v1443_v44 = vpop.f32.mrf.mxu0  ;;  %v8040_v45 = vpop.f32.mrf.mxu1 }
 0x245   : > { %v1444_v52 = vadd.f32 %v1443_v44, %v8044_v46 }
 0x246   : > { %v1445_v47 = vpop.f32.mrf.mxu0  ;;  %v6652_v48 = vpop.f32.mrf.mxu1 }
 0x247   : > { %v1446_v1 = vadd.f32 %v1445_v47, %v1273_v58 }
 0x248   : > { %v1447_v50 = vpop.f32.mrf.mxu0  ;;  %v8047_v51 = vpop.f32.mrf.mxu1 }
 0x249   : > { %v1448_v54 = vadd.f32 %v1447_v50, %v8044_v46 }
 0x24a   : > { %v1449_v55 = vpop.f32.mrf.mxu0  ;;  %v6653_v56 = vpop.f32.mrf.mxu1 }
 0x24b   : > { %v1589_v59 = vpack.c.bf16 %v1448_v54, %v1444_v52  ;;  %v1450_v2 = vadd.f32 %v1449_v55, %v1273_v58  ;;  %v7153_v38 = vpack.i.bf16 %v1448_v54, %v1444_v52  ;;  %v8111_v52 = vadd.f32 %v8047_v51, %v8059_v0 }
 0x24c   : > { %v1453_v60 = vpop.f32.mrf.mxu0  ;;  %v8054_v61 = vpop.f32.mrf.mxu1  ;;  %v8127_v56 = vadd.f32 %v8040_v45, %v8059_v0 }
 0x24d   : > { %6666 = vmatprep.mubr.msk.bf16.mxu1 %vm1758_vm1, %v1589_v59  ;;  %v8065_v12 = vadd.f32 %v1453_v60, %v8044_v46  ;;  %v1665_v17 = vpack.c.bf16 %v1450_v2, %v1446_v1  ;;  %v8123_v55 = vadd.f32 %v8054_v61, %v8059_v0 }
 0x24e   : > { %v1455_v62 = vpop.f32.mrf.mxu0  ;;  %v6656_v63 = vpop.f32.mrf.mxu1 }
 0x24f   : > { %v1456_v3 = vadd.f32 %v1455_v62, %v1273_v58  ;;  %v1766_v34 = vsel %vm1758_vm1, %v1665_v17, 0  ;;  %v1590_v23 = vpack.c.bf16 %v8065_v12, %v8065_v12 }
 0x250   : > { %v1457_v4 = vpop.f32.mrf.mxu0  ;;  %v1517_v5 = vpop.f32.mrf.mxu1 }
 0x251   : > { %v1518_v6 = vadd.f32 %v1517_v5, %v8059_v0  ;;  %v8062_v7 = vpack.i.bf16 %v1446_v1, %v1456_v3  ;;  %v1666_v9 = vpack.c.bf16 %v1456_v3, %v1456_v3  ;;  %v1458_v37 = vadd.f32 %v1457_v4, %v8044_v46 }
 0x252   : > { %v1459_v10 = vpop.f32.mrf.mxu0  ;;  %v6657_v11 = vpop.f32.mrf.mxu1 }
 0x253   : > { %v1460_v13 = vadd.f32 %v1459_v10, %v1273_v58  ;;  %7114 = vrot.lane.b32.xlu0 %v8062_v7, %s7745_s10  ;;  %7038 = vmatprep.subr.msk.bf16.mxu1 %vm1758_vm1, %v1666_v9  ;;  %v1769_v16 = vsel %vm1758_vm1, %v1666_v9, 0 }
 0x254   : > { %v1463_v18 = vpop.f32.mrf.mxu0  ;;  %v1522_v19 = vpop.f32.mrf.mxu1  ;;  %6663 = vmatpush3.bf16.xpose.msra.mxu1 %v1769_v16 }
 0x255   : > { %v1523_v20 = vadd.f32 %v1522_v19, %v8059_v0  ;;  %7039 = vmatprep.subr.msk.bf16.mxu1 %vm1758_vm1, %v1665_v17  ;;  %v7133_v21 = vpack.i.bf16 %v1460_v13, %v8065_v12  ;;  %v1464_v36 = vadd.f32 %v1463_v18, %v8044_v46 }
 0x256   : > { %v1465_v24 = vpop.f32.mrf.mxu0  ;;  %v6660_v25 = vpop.f32.mrf.mxu1 }
 0x257   : > { %7134 = vrot.lane.b32.xlu0 %v7133_v21, %s7745_s10  ;;  %v8075_v26 = vpack.c.bf16 %v1523_v20, %v1518_v6  ;;  %v8077_v29 = vpack.i.bf16 %v1523_v20, %v1518_v6  ;;  %v1466_v15 = vadd.f32 %v1465_v24, %v1273_v58  ;;  %v1591_v40 = vpack.c.bf16 %v1464_v36, %v1458_v37 }
 0x258   : > { %v1467_v27 = vpop.f32.mrf.mxu0  ;;  %v1525_v28 = vpop.f32.mrf.mxu1  ;;  %v7193_v51 = vpack.i.bf16 %v1464_v36, %v1458_v37 }
 0x259   : > { %v1667_v41 = vpack.c.bf16 %v1466_v15, %v1460_v13  ;;  %v1468_v31 = vadd.f32 %v1467_v27, %v8044_v46  ;;  %v7138_v43 = vpack.i.bf16 %v1458_v37, %v1466_v15  ;;  %v7188_v50 = vpack.i.bf16 %v1466_v15, %v1460_v13 }
 0x25a   : > { %v1469_v32 = vpop.f32.mrf.mxu0  ;;  %v6661_v33 = vpop.f32.mrf.mxu1  ;;  %v8107_v46 = vadd.f32 %v1525_v28, %v8059_v0 }
 0x25b   : > { %v1470_v14 = vadd.f32 %v1469_v32, %v1273_v58  ;;  %v1826_v44 = vsel %vm1758_vm1, %v1667_v41, 0  ;;  %v7148_v47 = vpack.i.bf16 %v1468_v31, %v1464_v36  ;;  %v1592_v48 = vpack.c.bf16 %v1468_v31, %v1468_v31 }
 0x25c   : > { %6665 = vmatpush3.bf16.xpose.msra.mxu1 %v1766_v34  ;;  %v7203_v54 = vpack.i.bf16 %v8107_v46, %v8111_v52  ;;  %v7198_v58 = vpack.i.bf16 %v8127_v56, %v8123_v55 }
 0x25d   : > { %v7143_v22 = vpack.i.bf16 %v1470_v14, %v1450_v2  ;;  %v1668_v35 = vpack.c.bf16 %v1470_v14, %v1470_v14 }
 0x25f   : > { %7144 = vrot.lane.b32.xlu0 %v7143_v22, %s7746_s11  ;;  %7119 = vrot.lane.b32.xlu1 %v7143_v22, %s7745_s10  ;;  %v1829_v39 = vsel %vm1758_vm1, %v1668_v35, 0 }
 0x260   : > { %7040 = vmatprep.subr.msk.bf16.mxu1 %vm1758_vm1, %v1668_v35 }
 0x263   : > { %6667 = vmatmul.mubr.msk.bf16.vlgmr.msra.gmra.mxu1 %vm1758_vm1, %v1590_v23  ;;  %7154 = vrot.lane.b32.xlu0 %v7153_v38, %s7746_s11 }
 0x264   : > { %7124 = vrot.lane.b32.xlu1 %v7153_v38, %s7745_s10  ;;  %6671 = vmatpush3.bf16.xpose.msra.mxu1 %v1829_v39 }
 0x265   : > { %6674 = vmatprep.mubr.msk.bf16.mxu1 %vm1758_vm1, %v1591_v40  ;;  %7041 = vmatprep.subr.msk.bf16.mxu1 %vm1758_vm1, %v1667_v41 }
 0x267   : > { %7164 = vrot.lane.b32.xlu0 %v7133_v21, %s7746_s11 }
 0x268   : > { %7129 = vrot.lane.b32.xlu1 %v8062_v7, %s7746_s11 }
 0x26b   : > { %7174 = vrot.lane.b32.xlu0 %v7143_v22, %s7747_s15 }
 0x26c   : > { %7139 = vrot.lane.b32.xlu1 %v7138_v43, %s7745_s10  ;;  %6673 = vmatpush3.bf16.xpose.msra.mxu1 %v1826_v44 }
 0x26f   : > { %7184 = vrot.lane.b32.xlu0 %v7153_v38, %s7747_s15 }
 0x270   : > { %7149 = vrot.lane.b32.xlu1 %v7148_v47, %s7745_s10 }
 0x273   : > { %7189 = vrot.lane.b32.xlu0 %v7188_v50, %s7747_s15  ;;  %6675 = vmatmul.mubr.msk.bf16.vlgmr.msra.gmra.mxu1 %vm1758_vm1, %v1592_v48 }
 0x274   : > { %7159 = vrot.lane.b32.xlu1 %v8062_v7, %s7747_s15 }
 0x277   : > { %1581 = vrot.lane.b32.xlu0 %v1468_v31, %s7747_s15 }
 0x278   : > { %7169 = vrot.lane.b32.xlu1 %v7138_v43, %s7746_s11 }
 0x27b   : > { %7204 = vrot.lane.b32.xlu0 %v7203_v54, %s7745_s10 }
 0x27c   : > { %7179 = vrot.lane.b32.xlu1 %v7148_v47, %s7746_s11 }
 0x280   : > { %1575 = vrot.lane.b32.xlu1 %v8065_v12, %s7747_s15 }
 0x284   : > { %7194 = vrot.lane.b32.xlu1 %v7193_v51, %s7747_s15 }
 0x288   : > { %7199 = vrot.lane.b32.xlu1 %v7198_v58, %s7745_s10 }
 0x28c   : > { %7209 = vrot.lane.b32.xlu1 %v7198_v58, %s7746_s11 }
 0x2c5   : > { %v7115_v59 = vpop.permute.xlu0 %7114 }
 0x2c6   : > { %v7116_v60 = vunpack.i.l.bf16 %v7115_v59  ;;  %v7117_v1 = vunpack.i.h.bf16 %v7115_v59 }
 0x2c8   : > { %v1670_v62 = vpack.c.bf16 %v7116_v60, %v7116_v60 }
 0x2c9   : > { %v7135_v63 = vpop.permute.xlu0 %7134 }
 0x2ca   : > { %7042 = vmatprep.subr.msk.bf16.mxu0 %vm1758_vm1, %v1670_v62  ;;  %v1889_v61 = vsel %vm1758_vm1, %v1670_v62, 0  ;;  %v7136_v13 = vunpack.i.l.bf16 %v7135_v63  ;;  %v7137_v33 = vunpack.i.h.bf16 %v7135_v63 }
 0x2cb   : > { %6679 = vmatpush3.bf16.xpose.msra.mxu0 %v1889_v61 }
 0x2cc   : > { %v1594_v25 = vpack.c.bf16 %v7136_v13, %v7136_v13 }
 0x2d1   : > { %v7120_v45 = vpop.permute.xlu1 %7119  ;;  %v7145_v0 = vpop.permute.xlu0 %7144 }
 0x2d2   : > { %v7122_v2 = vunpack.i.h.bf16 %v7120_v45  ;;  %v7121_v3 = vunpack.i.l.bf16 %v7120_v45  ;;  %v7146_v27 = vunpack.i.l.bf16 %v7145_v0  ;;  %v7147_v34 = vunpack.i.h.bf16 %v7145_v0 }
 0x2d4   : > { %v1672_v4 = vpack.c.bf16 %v7122_v2, %v7122_v2  ;;  %v1669_v5 = vpack.c.bf16 %v7121_v3, %v7117_v1  ;;  %v1676_v38 = vpack.c.bf16 %v7147_v34, %v7147_v34 }
 0x2d5   : > { %v7155_v6 = vpop.permute.xlu0 %7154 }
 0x2d6   : > { %v7125_v7 = vpop.permute.xlu1 %7124  ;;  %7043 = vmatprep.subr.msk.bf16.mxu0 %vm1758_vm1, %v1669_v5  ;;  %7044 = vmatprep.subr.msk.bf16.mxu1 %vm1758_vm1, %v1672_v4  ;;  %v1886_v9 = vsel %vm1758_vm1, %v1669_v5, 0  ;;  %v1949_v10 = vsel %vm1758_vm1, %v1672_v4, 0  ;;  %v7157_v17 = vunpack.i.h.bf16 %v7155_v6  ;;  %v7156_v18 = vunpack.i.l.bf16 %v7155_v6 }
 0x2d7   : > { %v7127_v11 = vunpack.i.h.bf16 %v7125_v7  ;;  %v7126_v12 = vunpack.i.l.bf16 %v7125_v7  ;;  %6681 = vmatpush3.bf16.xpose.msra.mxu0 %v1886_v9  ;;  %6687 = vmatpush3.bf16.xpose.msra.mxu1 %v1949_v10  ;;  %v2069_v0 = vsel %vm1758_vm1, %v1676_v38, 0 }
 0x2d8   : > { %v1597_v28 = vpack.c.bf16 %v7157_v17, %v7156_v18 }
 0x2d9   : > { %v1593_v16 = vpack.c.bf16 %v7127_v11, %v7126_v12  ;;  %v7165_v24 = vpop.permute.xlu0 %7164 }
 0x2da   : > { %v7130_v19 = vpop.permute.xlu1 %7129  ;;  %v7166_v54 = vunpack.i.l.bf16 %v7165_v24  ;;  %v7167_v61 = vunpack.i.h.bf16 %v7165_v24  ;;  %v1742_v24 = vpack.c.bf16 %v8123_v55, %v8123_v55 }
 0x2db   : > { %v7132_v20 = vunpack.i.h.bf16 %v7130_v19  ;;  %v7131_v21 = vunpack.i.l.bf16 %v7130_v19  ;;  %6682 = vmatprep.mubr.msk.bf16.mxu0 %vm1758_vm1, %v1593_v16 }
 0x2dc   : > { %v1598_v1 = vpack.c.bf16 %v7166_v54, %v7166_v54  ;;  %v8197_v54 = vld [vmem:[%s7766_s13] ss:$0 sm:$0xff] }
 0x2dd   : > { %v1674_v32 = vpack.c.bf16 %v7131_v21, %v7131_v21  ;;  %v1673_v22 = vpack.c.bf16 %v7146_v27, %v7132_v20  ;;  %v7175_v23 = vpop.permute.xlu0 %7174 }
 0x2de   : > { %v7140_v14 = vpop.permute.xlu1 %7139  ;;  %6683 = vmatmul.mubr.msk.bf16.vlgmr.msra.gmra.mxu0 %vm1758_vm1, %v1594_v25  ;;  %v7176_v2 = vunpack.i.l.bf16 %v7175_v23  ;;  %v7177_v4 = vunpack.i.h.bf16 %v7175_v23  ;;  %v2582_v23 = vsel %vm2580_vm2, %v1742_v24, 0 }
 0x2df   : > { %v7141_v35 = vunpack.i.l.bf16 %v7140_v14  ;;  %7046 = vmatprep.subr.msk.bf16.mxu0 %vm1758_vm1, %v1674_v32  ;;  %v2009_v36 = vsel %vm1758_vm1, %v1674_v32, 0  ;;  %6698 = vmatprep.mubr.msk.bf16.mxu0 %vm1758_vm1, %v1597_v28  ;;  %v7142_v39 = vunpack.i.h.bf16 %v7140_v14  ;;  %v2006_v50 = vsel %vm1758_vm1, %v1673_v22, 0 }
 0x2e0   : > { %6695 = vmatpush3.bf16.xpose.msra.mxu0 %v2009_v36  ;;  %v1680_v16 = vpack.c.bf16 %v7177_v4, %v7177_v4 }
 0x2e1   : > { %v1671_v15 = vpack.c.bf16 %v7141_v35, %v7137_v33  ;;  %7047 = vmatprep.subr.msk.bf16.mxu0 %vm1758_vm1, %v1673_v22  ;;  %v7185_v47 = vpop.permute.xlu0 %7184 }
 0x2e2   : > { %v7150_v37 = vpop.permute.xlu1 %7149  ;;  %v7187_v59 = vunpack.i.h.bf16 %v7185_v47  ;;  %v7186_v60 = vunpack.i.l.bf16 %v7185_v47  ;;  %v2189_v22 = vsel %vm1758_vm1, %v1680_v16, 0 }
 0x2e3   : > { %v7151_v40 = vunpack.i.l.bf16 %v7150_v37  ;;  %7045 = vmatprep.subr.msk.bf16.mxu1 %vm1758_vm1, %v1671_v15  ;;  %v1946_v41 = vsel %vm1758_vm1, %v1671_v15, 0  ;;  %v7152_v31 = vunpack.i.h.bf16 %v7150_v37  ;;  %v1741_v37 = vpack.c.bf16 %v8111_v52, %v8127_v56 }
 0x2e4   : > { %6689 = vmatpush3.bf16.xpose.msra.mxu1 %v1946_v41  ;;  %v1601_v5 = vpack.c.bf16 %v7187_v59, %v7186_v60  ;;  %v1744_v41 = vpack.c.bf16 %v8107_v46, %v8107_v46 }
 0x2e5   : > { %v1595_v43 = vpack.c.bf16 %v7151_v40, %v7142_v39  ;;  %7048 = vmatprep.subr.msk.bf16.mxu1 %vm1758_vm1, %v1676_v38  ;;  %v1596_v51 = vpack.c.bf16 %v7152_v31, %v7152_v31  ;;  %v7190_v17 = vpop.permute.xlu0 %7189 }
 0x2e6   : > { %v7160_v44 = vpop.permute.xlu1 %7159  ;;  %v7192_v20 = vunpack.i.h.bf16 %v7190_v17  ;;  %v7191_v25 = vunpack.i.l.bf16 %v7190_v17  ;;  %v2639_v47 = vsel %vm2580_vm2, %v1744_v41, 0 }
 0x2e7   : > { %v7161_v48 = vunpack.i.l.bf16 %v7160_v44  ;;  %6690 = vmatprep.mubr.msk.bf16.mxu1 %vm1758_vm1, %v1595_v43  ;;  %v7162_v63 = vunpack.i.h.bf16 %v7160_v44 }
 0x2e8   : > { %6697 = vmatpush3.bf16.xpose.msra.mxu0 %v2006_v50  ;;  %v1679_v34 = vpack.c.bf16 %v7192_v20, %v7191_v25 }
 0x2e9   : > { %v1678_v58 = vpack.c.bf16 %v7161_v48, %v7161_v48  ;;  %v1677_v7 = vpack.c.bf16 %v7176_v2, %v7162_v63  ;;  %v1582_v38 = vpop.permute.xlu0 %1581 }
 0x2ea   : > { %v7170_v62 = vpop.permute.xlu1 %7169  ;;  %v2186_v40 = vsel %vm1758_vm1, %v1679_v34, 0  ;;  %v1604_v43 = vpack.c.bf16 %v1582_v38, %v1582_v38 }
 0x2eb   : > { %v7171_v45 = vunpack.i.l.bf16 %v7170_v62  ;;  %6691 = vmatmul.mubr.msk.bf16.vlgmr.msra.gmra.mxu1 %vm1758_vm1, %v1596_v51  ;;  %7050 = vmatprep.subr.msk.bf16.mxu0 %vm1758_vm1, %v1678_v58  ;;  %v7172_v9 = vunpack.i.h.bf16 %v7170_v62  ;;  %v2129_v11 = vsel %vm1758_vm1, %v1678_v58, 0  ;;  %v2126_v32 = vsel %vm1758_vm1, %v1677_v7, 0 }
 0x2ec   : > { %6703 = vmatpush3.bf16.xpose.msra.mxu1 %v2069_v0 }
 0x2ed   : > { %v1675_v3 = vpack.c.bf16 %v7171_v45, %v7167_v61  ;;  %v8185_v31 = vpop.permute.xlu0 %7204 }
 0x2ee   : > { %v7180_v6 = vpop.permute.xlu1 %7179  ;;  %v7207_v44 = vunpack.i.h.bf16 %v8185_v31 }
 0x2ef   : > { %v7181_v10 = vunpack.i.l.bf16 %v7180_v6  ;;  %6699 = vmatmul.mubr.msk.bf16.vlgmr.msra.gmra.mxu0 %vm1758_vm1, %v1598_v1  ;;  %7049 = vmatprep.subr.msk.bf16.mxu1 %vm1758_vm1, %v1675_v3  ;;  %v2066_v18 = vsel %vm1758_vm1, %v1675_v3, 0  ;;  %v7182_v19 = vunpack.i.h.bf16 %v7180_v6 }
 0x2f0   : > { %6711 = vmatpush3.bf16.xpose.msra.mxu0 %v2129_v11  ;;  %6714 = vmatprep.mubr.msk.bf16.mxu0 %vm1758_vm1, %v1601_v5  ;;  %v8191_v48 = vpack.c.bf16 %v7207_v44, %v7207_v44 }
 0x2f1   : > { %v1599_v12 = vpack.c.bf16 %v7181_v10, %v7172_v9  ;;  %7051 = vmatprep.subr.msk.bf16.mxu0 %vm1758_vm1, %v1677_v7  ;;  %v1600_v33 = vpack.c.bf16 %v7182_v19, %v7182_v19 }
 0x2f2   : > { %v1576_v13 = vpop.permute.xlu1 %1575 }
 0x2f3   : > { %6706 = vmatprep.mubr.msk.bf16.mxu1 %vm1758_vm1, %v1599_v12  ;;  %v1602_v36 = vpack.c.bf16 %v1576_v13, %v1576_v13 }
 0x2f4   : > { %6705 = vmatpush3.bf16.xpose.msra.mxu1 %v2066_v18 }
 0x2f5   : > { %7052 = vmatprep.subr.msk.bf16.mxu1 %vm1758_vm1, %v1680_v16 }
 0x2f6   : > { %v7195_v21 = vpop.permute.xlu1 %7194 }
 0x2f7   : > { %v7197_v27 = vunpack.i.h.bf16 %v7195_v21  ;;  %v7196_v28 = vunpack.i.l.bf16 %v7195_v21 }
 0x2f8   : > { %6713 = vmatpush3.bf16.xpose.msra.mxu0 %v2126_v32 }
 0x2f9   : > { %v1603_v14 = vpack.c.bf16 %v7197_v27, %v7196_v28  ;;  %7054 = vmatprep.subr.msk.bf16.mxu0 %vm2580_vm2, %v1742_v24 }
 0x2fa   : > { %v8168_v35 = vpop.permute.xlu1 %7199 }
 0x2fb   : > { %6707 = vmatmul.mubr.msk.bf16.vlgmr.msra.gmra.mxu1 %vm1758_vm1, %v1600_v33  ;;  %v7201_v15 = vunpack.i.l.bf16 %v8168_v35 }
 0x2fc   : > { %6719 = vmatpush3.bf16.xpose.msra.mxu1 %v2189_v22  ;;  %6722 = vmatprep.mubr.msk.bf16.mxu1 %vm1758_vm1, %v1603_v14 }
 0x2fd   : > { %7053 = vmatprep.subr.msk.bf16.mxu1 %vm1758_vm1, %v1679_v34  ;;  %v8177_v39 = vpack.c.bf16 %v7201_v15, %v7201_v15 }
 0x2ff   : > { %6715 = vmatmul.mubr.msk.bf16.vlgmr.msra.gmra.mxu0 %vm1758_vm1, %v1602_v36 }
 0x300   : > { %6727 = vmatpush3.bf16.msra.mxu0 %v2582_v23 }
 0x301   : > { %6728 = vmatprep.subr.bf16.mxu0 %v1741_v37 }
 0x304   : > { %6721 = vmatpush3.bf16.xpose.msra.mxu1 %v2186_v40  ;;  %6729 = vmatpush3.bf16.msra.mxu0 %v1741_v37 }
 0x305   : > { %7055 = vmatprep.subr.msk.bf16.mxu1 %vm2580_vm2, %v1744_v41  ;;  %7056 = vmatprep.subr.msk.bf16.mxu0 %vm2580_vm2, %v8177_v39 }
 0x30b   : > { %6723 = vmatmul.mubr.msk.bf16.vlgmr.msra.gmra.mxu1 %vm1758_vm1, %v1604_v43 }
 0x30c   : > { %6735 = vmatpush3.bf16.msra.mxu1 %v2639_v47 }
 0x30d   : > { %6736 = vmatprep.subr.bf16.mxu1 %v8075_v26 }
 0x310   : > { %6737 = vmatpush3.bf16.msra.mxu1 %v8075_v26 }
 0x311   : > { %7057 = vmatprep.subr.msk.bf16.mxu1 %vm2580_vm2, %v8191_v48 }
 0x323   : > { %v6668_v50 = vpop.f32.mrf.mxu1 }
 0x324   : > { %v2241_v51 = vmul.f32 0.17677669, %v6668_v50 }
 0x325   : > { %v1805_v58 = vpop.f32.mrf.mxu1 }
 0x326   : > { %v2239_v59 = vmul.f32 0.17677669, %v1805_v58  ;;  %v8200_v60 = vadd.f32 %v8197_v54, %v2241_v51 }
 0x327   : > { %v6669_v62 = vpop.f32.mrf.mxu1 }
 0x328   : > { %v2300_v61 = vsel %vm2293_vm3, %v8200_v60, -inf  ;;  %v8205_v63 = vadd.f32 %v8197_v54, %v2239_v59  ;;  %v8252_v59 = vpop.permute.xlu1 %7209 }
 0x329   : > { %v1808_v26 = vpop.f32.mrf.mxu1  ;;  %2301 = vmax.xlane.f32.xlu0 %v2300_v61 }
 0x32a   : > { %v2240_v45 = vmul.f32 0.17677669, %v1808_v26  ;;  %v2294_v0 = vsel %vm2293_vm3, %v8205_v63, -inf }
 0x32b   : > { %2295 = vmax.xlane.f32.xlu1 %v2294_v0 }
 0x32c   : > { %v8210_v1 = vadd.f32 %v8197_v54, %v2240_v45 }
 0x32e   : > { %v2297_v2 = vsel %vm2293_vm3, %v8210_v1, -inf }
 0x32f   : > { %2298 = vmax.xlane.f32.xlu0 %v2297_v2 }
 0x333   : > { %v6676_v3 = vpop.f32.mrf.mxu1 }
 0x334   : > { %v2244_v4 = vmul.f32 0.17677669, %v6676_v3 }
 0x335   : > { %v1865_v5 = vpop.f32.mrf.mxu1 }
 0x336   : > { %v2242_v6 = vmul.f32 0.17677669, %v1865_v5  ;;  %v8215_v7 = vadd.f32 %v8197_v54, %v2244_v4 }
 0x337   : > { %v6677_v9 = vpop.f32.mrf.mxu1 }
 0x338   : > { %v2309_v10 = vsel %vm2293_vm3, %v8215_v7, -inf  ;;  %v8220_v11 = vadd.f32 %v8197_v54, %v2242_v6 }
 0x339   : > { %2310 = vmax.xlane.f32.xlu1 %v2309_v10  ;;  %v1868_v12 = vpop.f32.mrf.mxu1 }
 0x33a   : > { %v2243_v13 = vmul.f32 0.17677669, %v1868_v12  ;;  %v2303_v16 = vsel %vm2293_vm3, %v8220_v11, -inf }
 0x33c   : > { %v8225_v17 = vadd.f32 %v8197_v54, %v2243_v13 }
 0x33d   : > { %2304 = vmax.xlane.f32.xlu1 %v2303_v16 }
 0x33e   : > { %v2306_v18 = vsel %vm2293_vm3, %v8225_v17, -inf }
 0x33f   : > { %2307 = vmax.xlane.f32.xlu0 %v2306_v18 }
 0x39e   : > { %v6684_v19 = vpop.f32.mrf.mxu0 }
 0x39f   : > { %v2247_v20 = vmul.f32 0.17677669, %v6684_v19 }
 0x3a0   : > { %v1925_v21 = vpop.f32.mrf.mxu0 }
 0x3a1   : > { %v2245_v24 = vmul.f32 0.17677669, %v1925_v21  ;;  %v8230_v25 = vadd.f32 %v8197_v54, %v2247_v20 }
 0x3a2   : > { %v6685_v27 = vpop.f32.mrf.mxu0 }
 0x3a3   : > { %v2318_v28 = vsel %vm2293_vm3, %v8230_v25, -inf  ;;  %v8235_v32 = vadd.f32 %v8197_v54, %v2245_v24 }
 0x3a4   : > { %2319 = vmax.xlane.f32.xlu0 %v2318_v28  ;;  %v1928_v33 = vpop.f32.mrf.mxu0 }
 0x3a5   : > { %v2246_v14 = vmul.f32 0.17677669, %v1928_v33  ;;  %v2312_v34 = vsel %vm2293_vm3, %v8235_v32, -inf }
 0x3a7   : > { %v8240_v22 = vadd.f32 %v8197_v54, %v2246_v14 }
 0x3a8   : > { %2313 = vmax.xlane.f32.xlu0 %v2312_v34 }
 0x3a9   : > { %v2315_v36 = vsel %vm2293_vm3, %v8240_v22, -inf }
 0x3aa   : > { %2316 = vmax.xlane.f32.xlu1 %v2315_v36 }
 0x3ab   : > { %v6692_v15 = vpop.f32.mrf.mxu1 }
 0x3ac   : > { %v2250_v23 = vmul.f32 0.17677669, %v6692_v15 }
 0x3ad   : > { %v1985_v37 = vpop.f32.mrf.mxu1 }
 0x3ae   : > { %v2248_v38 = vmul.f32 0.17677669, %v1985_v37  ;;  %v8245_v40 = vadd.f32 %v8197_v54, %v2250_v23 }
 0x3af   : > { %v6693_v41 = vpop.f32.mrf.mxu1  ;;  %v6700_v43 = vpop.f32.mrf.mxu0 }
 0x3b0   : > { %v2253_v44 = vmul.f32 0.17677669, %v6700_v43  ;;  %v2327_v47 = vsel %vm2293_vm3, %v8245_v40, -inf  ;;  %v8250_v50 = vadd.f32 %v8197_v54, %v2248_v38 }
 0x3b1   : > { %v1988_v51 = vpop.f32.mrf.mxu1  ;;  %2328 = vmax.xlane.f32.xlu1 %v2327_v47  ;;  %v2045_v58 = vpop.f32.mrf.mxu0 }
 0x3b2   : > { %v2251_v62 = vmul.f32 0.17677669, %v2045_v58  ;;  %v8255_v61 = vadd.f32 %v8197_v54, %v2253_v44  ;;  %v2302_v26 = vpop.xlane.xlu0 %2301  ;;  %v2249_v0 = vmul.f32 0.17677669, %v1988_v51  ;;  %v2321_v2 = vsel %vm2293_vm3, %v8250_v50, -inf }
 0x3b3   : > { %v6701_v45 = vpop.f32.mrf.mxu0  ;;  %v2368_v6 = vsub.f32 %v8200_v60, %v2302_v26 }
 0x3b4   : > { %v2336_v3 = vsel %vm2293_vm3, %v8255_v61, -inf  ;;  %v8262_v4 = vadd.f32 %v8197_v54, %v2251_v62  ;;  %v2296_v10 = vpop.xlane.xlu1 %2295  ;;  %v8271_v16 = vadd.f32 %v8197_v54, %v2249_v0 }
 0x3b5   : > { %2322 = vmax.xlane.f32.xlu1 %v2321_v2  ;;  %2337 = vmax.xlane.f32.xlu0 %v2336_v3  ;;  %v2048_v5 = vpop.f32.mrf.mxu0  ;;  %v2394_v18 = vmul.f32 1.442695, %v2368_v6  ;;  %v2366_v19 = vsub.f32 %v8205_v63, %v2296_v10 }
 0x3b6   : > { %v2252_v9 = vmul.f32 0.17677669, %v2048_v5  ;;  %v2330_v12 = vsel %vm2293_vm3, %v8262_v4, -inf  ;;  %v2324_v24 = vsel %vm2293_vm3, %v8271_v16, -inf }
 0x3b7   : > { %7492 = vpow2.f32 %v2394_v18  ;;  %v2390_v28 = vmul.f32 1.442695, %v2366_v19 }
 0x3b8   : > { %v8268_v13 = vadd.f32 %v8197_v54, %v2252_v9 }
 0x3b9   : > { %2331 = vmax.xlane.f32.xlu0 %v2330_v12  ;;  %7494 = vpow2.f32 %v2390_v28 }
 0x3ba   : > { %v2333_v20 = vsel %vm2293_vm3, %v8268_v13, -inf }
 0x3bb   : > { %v6708_v21 = vpop.f32.mrf.mxu1  ;;  %2334 = vmax.xlane.f32.xlu1 %v2333_v20 }
 0x3bc   : > { %v2256_v60 = vmul.f32 0.17677669, %v6708_v21 }
 0x3bd   : > { %v2105_v27 = vpop.f32.mrf.mxu1  ;;  %2325 = vmax.xlane.f32.xlu0 %v2324_v24 }
 0x3be   : > { %v2254_v33 = vmul.f32 0.17677669, %v2105_v27  ;;  %v8279_v14 = vadd.f32 %v8197_v54, %v2256_v60 }
 0x3bf   : > { %v6709_v34 = vpop.f32.mrf.mxu1  ;;  %v6716_v36 = vpop.f32.mrf.mxu0 }
 0x3c0   : > { %v2259_v63 = vmul.f32 0.17677669, %v6716_v36  ;;  %v2345_v15 = vsel %vm2293_vm3, %v8279_v14, -inf  ;;  %v8284_v23 = vadd.f32 %v8197_v54, %v2254_v33  ;;  %v2299_v36 = vpop.xlane.xlu0 %2298 }
 0x3c1   : > { %v2108_v37 = vpop.f32.mrf.mxu1  ;;  %2346 = vmax.xlane.f32.xlu1 %v2345_v15  ;;  %v2165_v38 = vpop.f32.mrf.mxu0  ;;  %v2367_v15 = vsub.f32 %v8210_v1, %v2299_v36 }
 0x3c2   : > { %v2257_v41 = vmul.f32 0.17677669, %v2165_v38  ;;  %v8287_v43 = vadd.f32 %v8197_v54, %v2259_v63  ;;  %v2255_v47 = vmul.f32 0.17677669, %v2108_v37  ;;  %v2339_v51 = vsel %vm2293_vm3, %v8284_v23, -inf }
 0x3c3   : > { %v6717_v44 = vpop.f32.mrf.mxu0  ;;  %v7218_v63 = vpack.i.bf16 %v8111_v52, %v8127_v56  ;;  %v2392_v38 = vmul.f32 1.442695, %v2367_v15 }
 0x3c4   : > { %v2354_v58 = vsel %vm2293_vm3, %v8287_v43, -inf  ;;  %v8294_v62 = vadd.f32 %v8197_v54, %v2257_v41  ;;  %v8302_v3 = vadd.f32 %v8197_v54, %v2255_v47  ;;  %v8306_v6 = vpop.eup %7492 }
 0x3c5   : > { %2340 = vmax.xlane.f32.xlu1 %v2339_v51  ;;  %2355 = vmax.xlane.f32.xlu0 %v2354_v58  ;;  %v2168_v26 = vpop.f32.mrf.mxu0  ;;  %v2444_v20 = vsel %vm2293_vm3, %v8306_v6, 0.0  ;;  %7496 = vpow2.f32 %v2392_v38 }
 0x3c6   : > { %v2258_v45 = vmul.f32 0.17677669, %v2168_v26  ;;  %v2348_v0 = vsel %vm2293_vm3, %v8294_v62, -inf  ;;  %v2342_v12 = vsel %vm2293_vm3, %v8302_v3, -inf  ;;  %v8315_v60 = vpop.eup %7494  ;;  %v2311_v26 = vpop.xlane.xlu1 %2310 }
 0x3c7   : > { %v2438_v33 = vsel %vm2293_vm3, %v8315_v60, 0.0 }
 0x3c8   : > { %v8299_v2 = vadd.f32 %v8197_v54, %v2258_v45  ;;  %v2308_v37 = vpop.xlane.xlu0 %2307 }
 0x3c9   : > { %2349 = vmax.xlane.f32.xlu0 %v2348_v0  ;;  %v2370_v41 = vsub.f32 %v8225_v17, %v2308_v37 }
 0x3ca   : > { %v2351_v5 = vsel %vm2293_vm3, %v8299_v2, -inf }
 0x3cb   : > { %v6724_v9 = vpop.f32.mrf.mxu1  ;;  %2352 = vmax.xlane.f32.xlu1 %v2351_v5  ;;  %v2371_v5 = vsub.f32 %v8215_v7, %v2311_v26 }
 0x3cc   : > { %v2262_v10 = vmul.f32 0.17677669, %v6724_v9 }
 0x3cd   : > { %v2225_v18 = vpop.f32.mrf.mxu1  ;;  %2343 = vmax.xlane.f32.xlu0 %v2342_v12 }
 0x3ce   : > { %v2260_v19 = vmul.f32 0.17677669, %v2225_v18  ;;  %v8313_v21 = vadd.f32 %v8197_v54, %v2262_v10  ;;  %v2305_v10 = vpop.xlane.xlu1 %2304  ;;  %v2400_v18 = vmul.f32 1.442695, %v2371_v5 }
 0x3cf   : > { %v6725_v24 = vpop.f32.mrf.mxu1  ;;  %2445 = vadd.xlane.f32.xlu1 %v2444_v20 }
 0x3d0   : > { %v2363_v27 = vsel %vm2293_vm3, %v8313_v21, -inf  ;;  %v8320_v28 = vadd.f32 %v8197_v54, %v2260_v19  ;;  %v2369_v19 = vsub.f32 %v8220_v11, %v2305_v10 }
 0x3d1   : > { %2364 = vmax.xlane.f32.xlu0 %v2363_v27  ;;  %v2228_v47 = vpop.f32.mrf.mxu1 }
 0x3d2   : > { %v2357_v34 = vsel %vm2293_vm3, %v8320_v28, -inf  ;;  %v8339_v44 = vpop.eup %7496  ;;  %v2396_v27 = vmul.f32 1.442695, %v2369_v19 }
 0x3d3   : > { %2439 = vadd.xlane.f32.xlu1 %v2438_v33  ;;  %v2441_v51 = vsel %vm2293_vm3, %v8339_v44, 0.0 }
 0x3d5   : > { %2358 = vmax.xlane.f32.xlu0 %v2357_v34 }
 0x3e4   : > { %7214 = vrot.lane.b32.xlu1 %v8077_v29, %s7745_s10 }
 0x3e8   : > { %1727 = vrot.lane.b32.xlu1 %v8123_v55, %s7747_s15  ;;  %v2398_v55 = vmul.f32 1.442695, %v2370_v41 }
 0x3ea   : > { %7498 = vpow2.f32 %v2398_v55 }
 0x3eb   : > { %1707 = vrot.lane.b32.xlu0 %v8111_v52, %s7746_s11  ;;  %v2261_v52 = vmul.f32 0.17677669, %v2228_v47 }
 0x3ec   : > { %1715 = vrot.lane.b32.xlu1 %v8107_v46, %s7746_s11 }
 0x3ed   : > { %v8348_v1 = vadd.f32 %v8197_v54, %v2261_v52 }
 0x3ef   : > { %v2360_v17 = vsel %vm2293_vm3, %v8348_v1, -inf }
 0x3f0   : > { %7219 = vrot.lane.b32.xlu1 %v7218_v63, %s7747_s15 }
 0x3f7   : > { %v8343_v58 = vpop.eup %7498 }
 0x3f8   : > { %v2450_v56 = vsel %vm2293_vm3, %v8343_v58, 0.0 }
 0x40a   : > { %2442 = vadd.xlane.f32.xlu0 %v2441_v51 }
 0x40e   : > { %2451 = vadd.xlane.f32.xlu0 %v2450_v56 }
 0x414   : > { %2361 = vmax.xlane.f32.xlu1 %v2360_v17 }
 0x425   : > { %7224 = vrot.lane.b32.xlu1 %v8077_v29, %s7746_s11 }
 0x42d   : > { %v2320_v45 = vpop.xlane.xlu0 %2319 }
 0x42e   : > { %v2374_v0 = vsub.f32 %v8230_v25, %v2320_v45 }
 0x430   : > { %v2406_v9 = vmul.f32 1.442695, %v2374_v0 }
 0x431   : > { %v2314_v12 = vpop.xlane.xlu0 %2313 }
 0x432   : > { %7500 = vpow2.f32 %v2406_v9  ;;  %v2372_v54 = vsub.f32 %v8235_v32, %v2314_v12 }
 0x433   : > { %v2317_v24 = vpop.xlane.xlu1 %2316 }
 0x434   : > { %v2402_v20 = vmul.f32 1.442695, %v2372_v54  ;;  %v2373_v33 = vsub.f32 %v8240_v22, %v2317_v24 }
 0x436   : > { %7502 = vpow2.f32 %v2402_v20  ;;  %v2404_v7 = vmul.f32 1.442695, %v2373_v33 }
 0x437   : > { %7504 = vpow2.f32 %v2400_v18 }
 0x438   : > { %7506 = vpow2.f32 %v2396_v27 }
 0x439   : > { %7508 = vpow2.f32 %v2404_v7 }
 0x43a   : > { %v2329_v34 = vpop.xlane.xlu1 %2328 }
 0x43b   : > { %v2377_v25 = vsub.f32 %v8245_v40, %v2329_v34 }
 0x43d   : > { %v2412_v32 = vmul.f32 1.442695, %v2377_v25 }
 0x43e   : > { %v2323_v36 = vpop.xlane.xlu1 %2322  ;;  %v2338_v63 = vpop.xlane.xlu0 %2337 }
 0x43f   : > { %v8360_v15 = vpop.eup %7500  ;;  %v2380_v37 = vsub.f32 %v8255_v61, %v2338_v63  ;;  %v2375_v11 = vsub.f32 %v8250_v50, %v2323_v36  ;;  %7510 = vpow2.f32 %v2412_v32 }
 0x440   : > { %v2462_v38 = vsel %vm2293_vm3, %v8360_v15, 0.0 }
 0x441   : > { %v2418_v41 = vmul.f32 1.442695, %v2380_v37  ;;  %2463 = vadd.xlane.f32.xlu0 %v2462_v38  ;;  %v2408_v47 = vmul.f32 1.442695, %v2375_v11 }
 0x442   : > { %v2332_v22 = vpop.xlane.xlu0 %2331 }
 0x443   : > { %v8366_v55 = vpop.eup %7502  ;;  %v2378_v40 = vsub.f32 %v8262_v4, %v2332_v22  ;;  %7512 = vpow2.f32 %v2418_v41 }
 0x444   : > { %v2335_v51 = vpop.xlane.xlu1 %2334  ;;  %v2456_v61 = vsel %vm2293_vm3, %v8366_v55, 0.0  ;;  %v8371_v52 = vpop.eup %7504 }
 0x445   : > { %v2414_v50 = vmul.f32 1.442695, %v2378_v40  ;;  %v2379_v56 = vsub.f32 %v8268_v13, %v2335_v51  ;;  %2457 = vadd.xlane.f32.xlu0 %v2456_v61  ;;  %v2453_v4 = vsel %vm2293_vm3, %v8371_v52, 0.0  ;;  %v8377_v0 = vpop.eup %7506 }
 0x446   : > { %v2326_v17 = vpop.xlane.xlu0 %2325  ;;  %v2447_v13 = vsel %vm2293_vm3, %v8377_v0, 0.0  ;;  %v8382_v12 = vpop.eup %7508 }
 0x447   : > { %7514 = vpow2.f32 %v2414_v50  ;;  %v2376_v26 = vsub.f32 %v8271_v16, %v2326_v17  ;;  %v2416_v45 = vmul.f32 1.442695, %v2379_v56 }
 0x448   : > { %7516 = vpow2.f32 %v2408_v47 }
 0x449   : > { %v2410_v5 = vmul.f32 1.442695, %v2376_v26  ;;  %2454 = vadd.xlane.f32.xlu1 %v2453_v4 }
 0x44a   : > { %v2347_v9 = vpop.xlane.xlu1 %2346 }
 0x44b   : > { %7518 = vpow2.f32 %v2410_v5  ;;  %v2383_v10 = vsub.f32 %v8279_v14, %v2347_v9  ;;  %v2459_v14 = vsel %vm2293_vm3, %v8382_v12, 0.0 }
 0x44c   : > { %7520 = vpow2.f32 %v2416_v45  ;;  %v8386_v24 = vpop.eup %7510 }
 0x44d   : > { %v2424_v16 = vmul.f32 1.442695, %v2383_v10  ;;  %2448 = vadd.xlane.f32.xlu1 %v2447_v13  ;;  %v2471_v63 = vsel %vm2293_vm3, %v8386_v24, 0.0 }
 0x44e   : > { %v2341_v54 = vpop.xlane.xlu1 %2340  ;;  %v2356_v18 = vpop.xlane.xlu0 %2355 }
 0x44f   : > { %7522 = vpow2.f32 %v2424_v16  ;;  %v2381_v19 = vsub.f32 %v8284_v23, %v2341_v54  ;;  %v2386_v20 = vsub.f32 %v8287_v43, %v2356_v18 }
 0x450   : > { %v8390_v27 = vpop.eup %7512 }
 0x451   : > { %v2420_v33 = vmul.f32 1.442695, %v2381_v19  ;;  %v2430_v34 = vmul.f32 1.442695, %v2386_v20  ;;  %2460 = vadd.xlane.f32.xlu1 %v2459_v14  ;;  %v2480_v25 = vsel %vm2293_vm3, %v8390_v27, 0.0 }
 0x452   : > { %v2350_v7 = vpop.xlane.xlu0 %2349  ;;  %2481 = vadd.xlane.f32.xlu0 %v2480_v25 }
 0x453   : > { %7524 = vpow2.f32 %v2420_v33  ;;  %v2384_v23 = vsub.f32 %v8294_v62, %v2350_v7 }
 0x454   : > { %v8395_v36 = vpop.eup %7514  ;;  %7526 = vpow2.f32 %v2430_v34  ;;  %v2353_v43 = vpop.xlane.xlu1 %2352 }
 0x455   : > { %v8399_v32 = vpop.eup %7516  ;;  %v2426_v37 = vmul.f32 1.442695, %v2384_v23  ;;  %v2385_v11 = vsub.f32 %v8299_v2, %v2353_v43  ;;  %2472 = vadd.xlane.f32.xlu1 %v2471_v63  ;;  %v2474_v38 = vsel %vm2293_vm3, %v8395_v36, 0.0 }
 0x456   : > { %v2344_v41 = vpop.xlane.xlu0 %2343  ;;  %2475 = vadd.xlane.f32.xlu0 %v2474_v38  ;;  %v2465_v47 = vsel %vm2293_vm3, %v8399_v32, 0.0 }
 0x457   : > { %7528 = vpow2.f32 %v2426_v37  ;;  %v2428_v22 = vmul.f32 1.442695, %v2385_v11  ;;  %v2382_v62 = vsub.f32 %v8302_v3, %v2344_v41 }
 0x458   : > { %v8405_v40 = vpop.eup %7518  ;;  %v2446_v23 = vpop.xlane.xlu1 %2445 }
 0x459   : > { %v8409_v51 = vpop.eup %7520  ;;  %7530 = vpow2.f32 %v2428_v22  ;;  %v2422_v61 = vmul.f32 1.442695, %v2382_v62  ;;  %2466 = vadd.xlane.f32.xlu1 %v2465_v47  ;;  %v2468_v2 = vsel %vm2293_vm3, %v8405_v40, 0.0 }
 0x45a   : > { %v2365_v50 = vpop.xlane.xlu0 %2364  ;;  %2469 = vadd.xlane.f32.xlu0 %v2468_v2  ;;  %v2477_v3 = vsel %vm2293_vm3, %v8409_v51, 0.0 }
 0x45b   : > { %7532 = vpow2.f32 %v2422_v61  ;;  %v2389_v56 = vsub.f32 %v8313_v21, %v2365_v50 }
 0x45c   : > { %v8414_v17 = vpop.eup %7522  ;;  %v2440_v43 = vpop.xlane.xlu1 %2439 }
 0x45d   : > { %v2436_v26 = vmul.f32 1.442695, %v2389_v56  ;;  %2478 = vadd.xlane.f32.xlu1 %v2477_v3  ;;  %v2489_v45 = vsel %vm2293_vm3, %v8414_v17, 0.0 }
 0x45e   : > { %v2359_v4 = vpop.xlane.xlu0 %2358  ;;  %2490 = vadd.xlane.f32.xlu0 %v2489_v45  ;;  %v7202_v45 = vunpack.i.h.bf16 %v8168_v35 }
 0x45f   : > { %7534 = vpow2.f32 %v2436_v26  ;;  %v2387_v5 = vsub.f32 %v8320_v28, %v2359_v4 }
 0x460   : > { %v8421_v9 = vpop.eup %7524  ;;  %v8451_v63 = vpop.permute.xlu1 %7214 }
 0x461   : > { %v8423_v10 = vpop.eup %7526  ;;  %v2432_v21 = vmul.f32 1.442695, %v2387_v5  ;;  %v2483_v13 = vsel %vm2293_vm3, %v8421_v9, 0.0  ;;  %v7206_v5 = vunpack.i.l.bf16 %v8185_v31 }
 0x462   : > { %v2498_v16 = vsel %vm2293_vm3, %v8423_v10, 0.0  ;;  %2484 = vadd.xlane.f32.xlu1 %v2483_v13  ;;  %v8455_v11 = vpop.permute.xlu0 %1707 }
 0x463   : > { %7536 = vpow2.f32 %v2432_v21  ;;  %2499 = vadd.xlane.f32.xlu0 %v2498_v16  ;;  %v1745_v13 = vpack.c.bf16 %v7206_v5, %v7202_v45  ;;  %v7216_v45 = vunpack.i.l.bf16 %v8451_v63 }
 0x464   : > { %v8429_v54 = vpop.eup %7528  ;;  %v8453_v37 = vpop.permute.xlu1 %1727  ;;  %7538 = vrcp.f32 %v2446_v23 }
 0x465   : > { %v2492_v18 = vsel %vm2293_vm3, %v8429_v54, 0.0  ;;  %7540 = vrcp.f32 %v2440_v43 }
 0x466   : > { %v8433_v28 = vpop.eup %7530 }
 0x467   : > { %2493 = vadd.xlane.f32.xlu0 %v2492_v18  ;;  %v2495_v19 = vsel %vm2293_vm3, %v8433_v28, 0.0 }
 0x468   : > { %v8437_v20 = vpop.eup %7532  ;;  %2496 = vadd.xlane.f32.xlu1 %v2495_v19  ;;  %v8457_v38 = vpop.permute.xlu1 %1715 }
 0x469   : > { %v2486_v14 = vsel %vm2293_vm3, %v8437_v20, 0.0 }
 0x46b   : > { %2487 = vadd.xlane.f32.xlu0 %v2486_v14 }
 0x46c   : > { %v8441_v33 = vpop.eup %7534  ;;  %v8459_v22 = vpop.permute.xlu1 %7219 }
 0x46d   : > { %v2507_v34 = vsel %vm2293_vm3, %v8441_v33, 0.0 }
 0x46f   : > { %2508 = vadd.xlane.f32.xlu0 %v2507_v34 }
 0x470   : > { %v8445_v25 = vpop.eup %7536 }
 0x471   : > { %v2501_v7 = vsel %vm2293_vm3, %v8445_v25, 0.0  ;;  %v7539_v47 = vpop.eup %7538 }
 0x472   : > { %2502 = vadd.xlane.f32.xlu1 %v2501_v7  ;;  %v7541_v2 = vpop.eup %7540  ;;  %v2536_v56 = vmul.f32 %v7539_v47, %v8306_v6  ;;  %v2696_v6 = vsel %vm2580_vm2, %v8177_v39, 0 }
 0x473   : > { %v2534_v3 = vmul.f32 %v7541_v2, %v8315_v60 }
 0x474   : > { %v2559_v21 = vpack.c.bf16 %v2536_v56, %v2536_v56 }
 0x483   : > { %7229 = vrot.lane.b32.xlu1 %v8077_v29, %s7747_s15 }
 0x493   : > { %v2443_v41 = vpop.xlane.xlu0 %2442 }
 0x494   : > { %7542 = vrcp.f32 %v2443_v41 }
 0x49d   : > { %v2362_v62 = vpop.xlane.xlu1 %2361 }
 0x49e   : > { %v2388_v61 = vsub.f32 %v8348_v1, %v2362_v62  ;;  %v7211_v1 = vunpack.i.l.bf16 %v8252_v59 }
 0x4a0   : > { %v2434_v29 = vmul.f32 1.442695, %v2388_v61  ;;  %v8472_v60 = vpack.c.bf16 %v7211_v1, %v7211_v1 }
 0x4a1   : > { %v7543_v50 = vpop.eup %7542  ;;  %v8482_v16 = vpop.permute.xlu1 %7224 }
 0x4a2   : > { %7544 = vpow2.f32 %v2434_v29  ;;  %v2535_v26 = vmul.f32 %v7543_v50, %v8339_v44  ;;  %v2452_v44 = vpop.xlane.xlu0 %2451 }
 0x4a4   : > { %v2558_v4 = vpack.c.bf16 %v2535_v26, %v2534_v3  ;;  %v7217_v26 = vunpack.i.h.bf16 %v8451_v63  ;;  %v2753_v63 = vsel %vm2580_vm2, %v8191_v48, 0  ;;  %v2810_v48 = vsel %vm2580_vm2, %v8472_v60, 0 }
 0x4a6   : > { %6730 = vmatprep.mubr.msk.bf16.mxu0 %vm2293_vm3, %v2558_v4 }
 0x4a7   : > { %6731 = vmatmul.mubr.msk.bf16.vlgmr.msra.gmra.mxu0 %vm2293_vm3, %v2559_v21 }
 0x4a8   : > { %6743 = vmatpush3.bf16.msra.mxu0 %v2696_v6 }
 0x4a9   : > { %6744 = vmatprep.subr.bf16.mxu0 %v1745_v13 }
 0x4ac   : > { %6745 = vmatpush3.bf16.msra.mxu0 %v1745_v13 }
 0x4ad   : > { %7058 = vmatprep.subr.msk.bf16.mxu0 %vm2580_vm2, %v8472_v60 }
 0x4af   : > { %v8476_v35 = vpop.eup %7544 }
 0x4b0   : > { %v2504_v31 = vsel %vm2293_vm3, %v8476_v35, 0.0 }
 0x4b1   : > { %2505 = vadd.xlane.f32.xlu0 %v2504_v31 }
 0x4c7   : > { %1733 = vrot.lane.b32.xlu0 %v8107_v46, %s7747_s15 }
 0x4ca   : > { %v2464_v39 = vpop.xlane.xlu0 %2463 }
 0x4ce   : > { %v2458_v19 = vpop.xlane.xlu0 %2457 }
 0x4d2   : > { %v2455_v18 = vpop.xlane.xlu1 %2454 }
 0x4d3   : > { %7546 = vrcp.f32 %v2455_v18 }
 0x4d4   : > { %7548 = vrcp.f32 %v2452_v44  ;;  %v7212_v44 = vunpack.i.h.bf16 %v8252_v59 }
 0x4d6   : > { %v2449_v14 = vpop.xlane.xlu1 %2448 }
 0x4d7   : > { %7550 = vrcp.f32 %v2449_v14 }
 0x4d8   : > { %7552 = vrcp.f32 %v2464_v39 }
 0x4d9   : > { %7554 = vrcp.f32 %v2458_v19 }
 0x4da   : > { %v2461_v34 = vpop.xlane.xlu1 %2460 }
 0x4db   : > { %7556 = vrcp.f32 %v2461_v34  ;;  %v2482_v7 = vpop.xlane.xlu0 %2481 }
 0x4dc   : > { %7558 = vrcp.f32 %v2482_v7 }
 0x4de   : > { %v2473_v23 = vpop.xlane.xlu1 %2472 }
 0x4df   : > { %v2476_v43 = vpop.xlane.xlu0 %2475  ;;  %7560 = vrcp.f32 %v2473_v23 }
 0x4e0   : > { %v7547_v41 = vpop.eup %7546 }
 0x4e1   : > { %v7549_v46 = vpop.eup %7548  ;;  %v2539_v2 = vmul.f32 %v7547_v41, %v8371_v52 }
 0x4e2   : > { %v2467_v62 = vpop.xlane.xlu1 %2466  ;;  %v2538_v56 = vmul.f32 %v7549_v46, %v8343_v58  ;;  %v1747_v58 = vpack.c.bf16 %v7217_v26, %v7216_v45 }
 0x4e3   : > { %7562 = vrcp.f32 %v2467_v62  ;;  %v2470_v61 = vpop.xlane.xlu0 %2469  ;;  %v2561_v1 = vpack.c.bf16 %v2539_v2, %v2539_v2  ;;  %v7227_v62 = vunpack.i.h.bf16 %v8482_v16 }
 0x4e4   : > { %v7551_v47 = vpop.eup %7550  ;;  %7564 = vrcp.f32 %v2476_v43  ;;  %v1754_v43 = vpack.c.bf16 %v8453_v37, %v8453_v37 }
 0x4e5   : > { %v7553_v29 = vpop.eup %7552  ;;  %7566 = vrcp.f32 %v2470_v61  ;;  %v2537_v50 = vmul.f32 %v7551_v47, %v8377_v0  ;;  %v7226_v47 = vunpack.i.l.bf16 %v8482_v16 }
 0x4e6   : > { %v7555_v3 = vpop.eup %7554  ;;  %v2479_v4 = vpop.xlane.xlu1 %2478  ;;  %v2542_v6 = vmul.f32 %v7553_v29, %v8360_v15  ;;  %v7222_v29 = vunpack.i.h.bf16 %v8459_v22 }
 0x4e7   : > { %7568 = vrcp.f32 %v2479_v4  ;;  %v2560_v5 = vpack.c.bf16 %v2538_v56, %v2537_v50  ;;  %v2491_v13 = vpop.xlane.xlu0 %2490  ;;  %v2540_v52 = vmul.f32 %v7555_v3, %v8366_v55  ;;  %v1749_v55 = vpack.c.bf16 %v8455_v11, %v7212_v44 }
 0x4e8   : > { %v7557_v21 = vpop.eup %7556  ;;  %v2563_v18 = vpack.c.bf16 %v2542_v6, %v2542_v6  ;;  %v1751_v3 = vpack.c.bf16 %v7227_v62, %v7226_v47  ;;  %v7314_v62 = vld [vmem:[%s7791_s3 + $0x28] sm:$0xff]  }
 0x4e9   : > { %6738 = vmatprep.mubr.msk.bf16.mxu1 %vm2293_vm3, %v2560_v5  ;;  %v2541_v0 = vmul.f32 %v7557_v21, %v8382_v12  ;;  %v7559_v19 = vpop.eup %7558  ;;  %v1752_v12 = vpack.c.bf16 %v8457_v38, %v8457_v38 }
 0x4ea   : > { %6739 = vmatmul.mubr.msk.bf16.vlgmr.msra.gmra.mxu1 %vm2293_vm3, %v2561_v1 }
 0x4eb   : > { %6751 = vmatpush3.bf16.msra.mxu1 %v2753_v63  ;;  %v2562_v31 = vpack.c.bf16 %v2541_v0, %v2540_v52  ;;  %v2485_v15 = vpop.xlane.xlu1 %2484  ;;  %v2867_v16 = vsel %vm2580_vm2, %v1752_v12, 0 }
 0x4ec   : > { %v2500_v39 = vpop.xlane.xlu0 %2499  ;;  %6752 = vmatprep.subr.bf16.mxu1 %v1747_v58  ;;  %v7561_v14 = vpop.eup %7560 }
 0x4ed   : > { %6746 = vmatprep.mubr.msk.bf16.mxu0 %vm2293_vm3, %v2562_v31  ;;  %7570 = vrcp.f32 %v2500_v39  ;;  %v2545_v60 = vmul.f32 %v7561_v14, %v8386_v24 }
 0x4ee   : > { %6747 = vmatmul.mubr.msk.bf16.vlgmr.msra.gmra.mxu0 %vm2293_vm3, %v2563_v18  ;;  %7572 = vrcp.f32 %v2491_v13 }
 0x4ef   : > { %6753 = vmatpush3.bf16.msra.mxu1 %v1747_v58  ;;  %6759 = vmatpush3.bf16.msra.mxu0 %v2810_v48  ;;  %v2565_v50 = vpack.c.bf16 %v2545_v60, %v2545_v60 }
 0x4f0   : > { %v7563_v59 = vpop.eup %7562  ;;  %v2494_v34 = vpop.xlane.xlu0 %2493  ;;  %6760 = vmatprep.subr.bf16.mxu0 %v1749_v55  ;;  %7059 = vmatprep.subr.msk.bf16.mxu1 %vm2580_vm2, %v1752_v12 }
 0x4f1   : > { %v7565_v7 = vpop.eup %7564  ;;  %7574 = vrcp.f32 %v2494_v34  ;;  %v2497_v11 = vpop.xlane.xlu1 %2496  ;;  %v2543_v38 = vmul.f32 %v7563_v59, %v8399_v32  ;;  %v2548_v32 = vmul.f32 %v7559_v19, %v8390_v27 }
 0x4f2   : > { %v7567_v23 = vpop.eup %7566  ;;  %7576 = vrcp.f32 %v2497_v11  ;;  %v2546_v37 = vmul.f32 %v7565_v7, %v8395_v36  ;;  %v2924_v36 = vsel %vm2580_vm2, %v1754_v43, 0 }
 0x4f3   : > { %7578 = vrcp.f32 %v2485_v15  ;;  %6761 = vmatpush3.bf16.msra.mxu0 %v1749_v55  ;;  %v2544_v41 = vmul.f32 %v7567_v23, %v8405_v40  ;;  %v7221_v40 = vunpack.i.l.bf16 %v8459_v22  ;;  %v2567_v27 = vpack.c.bf16 %v2548_v32, %v2548_v32 }
 0x4f4   : > { %v7569_v46 = vpop.eup %7568  ;;  %v2488_v61 = vpop.xlane.xlu0 %2487  ;;  %7060 = vmatprep.subr.msk.bf16.mxu0 %vm2580_vm2, %v1754_v43 }
 0x4f5   : > { %7580 = vrcp.f32 %v2488_v61  ;;  %v2564_v2 = vpack.c.bf16 %v2544_v41, %v2543_v38  ;;  %v2547_v24 = vmul.f32 %v7569_v46, %v8409_v51  ;;  %v1753_v51 = vpack.c.bf16 %v7222_v29, %v7221_v40 }
 0x4f7   : > { %6754 = vmatprep.mubr.msk.bf16.mxu1 %vm2293_vm3, %v2564_v2  ;;  %v2566_v56 = vpack.c.bf16 %v2547_v24, %v2546_v37  ;;  %v7315_v2 = vld [vmem:[%s7791_s3 + $0x20] sm:$0xff]  }
 0x4f8   : > { %6755 = vmatmul.mubr.msk.bf16.vlgmr.msra.gmra.mxu1 %vm2293_vm3, %v2565_v50  ;;  %v7316_v50 = vld [vmem:[%s7791_s3 + $0x18] sm:$0xff]  }
 0x4f9   : > { %6767 = vmatpush3.bf16.msra.mxu1 %v2867_v16  ;;  %6762 = vmatprep.mubr.msk.bf16.mxu0 %vm2293_vm3, %v2566_v56 }
 0x4fa   : > { %6768 = vmatprep.subr.bf16.mxu1 %v1751_v3  ;;  %6763 = vmatmul.mubr.msk.bf16.vlgmr.msra.gmra.mxu0 %vm2293_vm3, %v2567_v27  ;;  %v7571_v22 = vpop.eup %7570  ;;  %v7317_v27 = vld [vmem:[%s7791_s3 + $0x10] sm:$0xff]  }
 0x4fb   : > { %6775 = vmatpush3.bf16.msra.mxu0 %v2924_v36  ;;  %v7573_v26 = vpop.eup %7572  ;;  %v2554_v5 = vmul.f32 %v7571_v22, %v8423_v10  ;;  %v7318_v22 = vld [vmem:[%s7791_s3 + $0x8] sm:$0xff]  }
 0x4fc   : > { %6776 = vmatprep.subr.bf16.mxu0 %v1753_v51  ;;  %v2551_v0 = vmul.f32 %v7573_v26, %v8414_v17  ;;  %v2509_v17 = vpop.xlane.xlu0 %2508 }
 0x4fd   : > { %6769 = vmatpush3.bf16.msra.mxu1 %v1751_v3  ;;  %v2571_v58 = vpack.c.bf16 %v2554_v5, %v2554_v5  ;;  %7582 = vrcp.f32 %v2509_v17  ;;  %v7319_v5 = vld [vmem:[%s7791_s3] sm:$0xff]  }
 0x4fe   : > { %v7575_v45 = vpop.eup %7574  ;;  %v2569_v44 = vpack.c.bf16 %v2551_v0, %v2551_v0 }
 0x4ff   : > { %v7577_v4 = vpop.eup %7576  ;;  %6777 = vmatpush3.bf16.msra.mxu0 %v1753_v51  ;;  %v2552_v13 = vmul.f32 %v7575_v45, %v8429_v54  ;;  %v2503_v54 = vpop.xlane.xlu1 %2502 }
 0x500   : > { %v7579_v21 = vpop.eup %7578  ;;  %v2553_v1 = vmul.f32 %v7577_v4, %v8433_v28  ;;  %6790 = vmatprep.subr.bf16.mxu0 %v7742_v8  ;;  %7584 = vrcp.f32 %v2503_v54 }
 0x501   : > { %v2549_v63 = vmul.f32 %v7579_v21, %v8421_v9 }
 0x502   : > { %v7581_v6 = vpop.eup %7580  ;;  %v2570_v52 = vpack.c.bf16 %v2553_v1, %v2552_v13 }
 0x503   : > { %v2550_v31 = vmul.f32 %v7581_v6, %v8437_v20  ;;  %v7230_v9 = vpop.permute.xlu1 %7229 }
 0x504   : > { %6778 = vmatprep.mubr.msk.bf16.mxu0 %vm2293_vm3, %v2570_v52  ;;  %v7232_v20 = vunpack.i.h.bf16 %v7230_v9  ;;  %v7231_v39 = vunpack.i.l.bf16 %v7230_v9 }
 0x505   : > { %6779 = vmatmul.mubr.msk.bf16.vlgmr.msra.gmra.mxu0 %vm2293_vm3, %v2571_v58  ;;  %v2568_v10 = vpack.c.bf16 %v2550_v31, %v2549_v63 }
 0x506   : > { %6806 = vmatprep.mubr.msk.bf16.mxu0 %vm7744_vm0, %v7742_v8  ;;  %v1755_v19 = vpack.c.bf16 %v7232_v20, %v7231_v39 }
 0x507   : > { %6770 = vmatprep.mubr.msk.bf16.mxu1 %vm2293_vm3, %v2568_v10 }
 0x508   : > { %6771 = vmatmul.mubr.msk.bf16.vlgmr.msra.gmra.mxu1 %vm2293_vm3, %v2569_v44 }
 0x50a   : > { %v7583_v12 = vpop.eup %7582 }
 0x50b   : > { %v2557_v59 = vmul.f32 %v7583_v12, %v8441_v33  ;;  %v7312_v33 = vld [vmem:[%s7791_s3 + $0x38] sm:$0xff]  }
 0x50c   : > { %6791 = vmatpush3.bf16.msra.mxu0 %v7312_v33 }
 0x50d   : > { %v7585_v48 = vpop.eup %7584  ;;  %v2573_v38 = vpack.c.bf16 %v2557_v59, %v2557_v59  ;;  %6792 = vmatprep.subr.bf16.mxu0 %v7742_v8 }
 0x50e   : > { %v2555_v34 = vmul.f32 %v7585_v48, %v8445_v25 }
 0x53a   : > { %v2506_v28 = vpop.xlane.xlu0 %2505 }
 0x53b   : > { %7586 = vrcp.f32 %v2506_v28 }
 0x53e   : > { %v1734_v18 = vpop.permute.xlu0 %1733 }
 0x53f   : > { %v1756_v15 = vpack.c.bf16 %v1734_v18, %v1734_v18 }
 0x541   : > { %v2981_v55 = vsel %vm2580_vm2, %v1756_v15, 0  ;;  %7061 = vmatprep.subr.msk.bf16.mxu1 %vm2580_vm2, %v1756_v15 }
 0x542   : > { %6783 = vmatpush3.bf16.msra.mxu1 %v2981_v55 }
 0x543   : > { %6784 = vmatprep.subr.bf16.mxu1 %v1755_v19 }
 0x546   : > { %6785 = vmatpush3.bf16.msra.mxu1 %v1755_v19 }
 0x548   : > { %v7587_v14 = vpop.eup %7586 }
 0x549   : > { %v2556_v7 = vmul.f32 %v7587_v14, %v8476_v35  ;;  %v7313_v35 = vld [vmem:[%s7791_s3 + $0x30] sm:$0xff]  }
 0x54a   : > { %6793 = vmatpush3.bf16.msra.mxu0 %v7313_v35 }
 0x54b   : > { %v2572_v11 = vpack.c.bf16 %v2556_v7, %v2555_v34  ;;  %6794 = vmatprep.subr.bf16.mxu0 %v7742_v8 }
 0x54d   : > { %6786 = vmatprep.mubr.msk.bf16.mxu1 %vm2293_vm3, %v2572_v11 }
 0x54e   : > { %6787 = vmatmul.mubr.msk.bf16.vlgmr.msra.gmra.mxu1 %vm2293_vm3, %v2573_v38  ;;  %6795 = vmatpush3.bf16.msra.mxu0 %v7314_v62 }
 0x54f   : > { %3601 = vmatprep.mubr.bf16.mxu1 %v7743_v53  ;;  %6796 = vmatprep.subr.bf16.mxu0 %v7742_v8 }
 0x552   : > { %6797 = vmatpush3.bf16.msra.mxu0 %v7315_v2 }
 0x553   : > { %6798 = vmatprep.subr.bf16.mxu0 %v7742_v8 }
 0x556   : > { %6799 = vmatpush3.bf16.msra.mxu0 %v7316_v50 }
 0x557   : > { %6800 = vmatprep.subr.bf16.mxu0 %v7742_v8 }
 0x55a   : > { %6801 = vmatpush3.bf16.msra.mxu0 %v7317_v27 }
 0x55b   : > { %6802 = vmatprep.subr.bf16.mxu0 %v7742_v8 }
 0x55e   : > { %6803 = vmatpush3.bf16.msra.mxu0 %v7318_v22 }
 0x55f   : > { %6804 = vmatprep.subr.bf16.mxu0 %v7742_v8 }
 0x562   : > { %6805 = vmatpush3.bf16.msra.mxu0 %v7319_v5 }
 0x567   : > { %v8545_v23 = vpop.f32.mrf.mxu0 }
 0x569   : > { %v8547_v43 = vpop.f32.mrf.mxu0 }
 0x56b   : > { %v6733_v60 = vpop.f32.mrf.mxu0 }
 0x56d   : > { %v8554_v41 = vpop.f32.mrf.mxu0 }
 0x5aa   : > { %v8551_v25 = vpop.f32.mrf.mxu1 }
 0x5ac   : > { %v8556_v46 = vpop.f32.mrf.mxu1 }
 0x5ae   : > { %v6741_v47 = vpop.f32.mrf.mxu1  ;;  %v6748_v61 = vpop.f32.mrf.mxu0 }
 0x5b0   : > { %v2732_v32 = vpop.f32.mrf.mxu0  ;;  %v8562_v40 = vpop.f32.mrf.mxu1 }
 0x5b2   : > { %v6749_v37 = vpop.f32.mrf.mxu0 }
 0x5b4   : > { %v2735_v24 = vpop.f32.mrf.mxu0 }
 0x5b5   : > { %v7233_v29 = vpack.i.bf16 %v2735_v24, %v2732_v32 }
 0x5b7   : > { %7234 = vrot.lane.b32.xlu0 %v7233_v29, %s7747_s15 }
 0x5b8   : > { %v6756_v56 = vpop.f32.mrf.mxu1 }
 0x5ba   : > { %v2789_v16 = vpop.f32.mrf.mxu1  ;;  %v6764_v3 = vpop.f32.mrf.mxu0 }
 0x5bb   : > { %v7248_v21 = vpack.i.bf16 %v2789_v16, %v6748_v61 }
 0x5bc   : > { %v6757_v36 = vpop.f32.mrf.mxu1  ;;  %v2846_v51 = vpop.f32.mrf.mxu0 }
 0x5be   : > { %v6765_v26 = vpop.f32.mrf.mxu0  ;;  %v2792_v1 = vpop.f32.mrf.mxu1 }
 0x5bf   : > { %v7263_v54 = vpack.i.bf16 %v6756_v56, %v2792_v1 }
 0x5c0   : > { %v2849_v45 = vpop.f32.mrf.mxu0 }
 0x5c1   : > { %v7238_v4 = vpack.i.bf16 %v2849_v45, %v2846_v51 }
 0x5c3   : > { %7239 = vrot.lane.b32.xlu1 %v7238_v4, %s7746_s11 }
 0x5c5   : > { %v6780_v13 = vpop.f32.mrf.mxu0 }
 0x5c7   : > { %v2960_v6 = vpop.f32.mrf.mxu0  ;;  %7249 = vrot.lane.b32.xlu1 %v7248_v21, %s7747_s15 }
 0x5c8   : > { %v6772_v52 = vpop.f32.mrf.mxu1 }
 0x5c9   : > { %v6781_v0 = vpop.f32.mrf.mxu0 }
 0x5ca   : > { %v2903_v58 = vpop.f32.mrf.mxu1 }
 0x5cb   : > { %v2963_v63 = vpop.f32.mrf.mxu0  ;;  %v7253_v44 = vpack.i.bf16 %v2903_v58, %v6764_v3 }
 0x5cc   : > { %v6773_v31 = vpop.f32.mrf.mxu1  ;;  %v7243_v10 = vpack.i.bf16 %v2963_v63, %v2960_v6 }
 0x5ce   : > { %7244 = vrot.lane.b32.xlu0 %v7243_v10, %s7745_s10  ;;  %v2906_v17 = vpop.f32.mrf.mxu1 }
 0x5cf   : > { %v7268_v15 = vpack.i.bf16 %v6772_v52, %v2906_v17 }
 0x5d2   : > { %7254 = vrot.lane.b32.xlu0 %v7253_v44, %s7746_s11 }
 0x5d6   : > { %7264 = vrot.lane.b32.xlu0 %v7263_v54, %s7747_s15  ;;  %s6353_s15 = sshll.u32 %s9406_s1, 3  ;;  %s9394_s1 = sld [smem:[#allocation12_spill]] }
 0x5d7   : > { %s9089_s22 = scalar_lea.vmem %s7936_s27, %s6353_s15  ;;  %s9400_s15 = sld [smem:[#allocation15_spill]] }
 0x60e   : > { %v6788_v9 = vpop.f32.mrf.mxu1 }
 0x610   : > { %v3017_v28 = vpop.f32.mrf.mxu1 }
 0x611   : > { %v7258_v20 = vpack.i.bf16 %v3017_v28, %v6780_v13  ;;  %v7686_v28 = vld [vmem:[%s7953_s7] sm:$0xff] }
 0x612   : > { %v6789_v39 = vpop.f32.mrf.mxu1 }
 0x613   : > { %7259 = vrot.lane.b32.xlu1 %v7258_v20, %s7745_s10 }
 0x614   : > { %v3020_v18 = vpop.f32.mrf.mxu1 }
 0x615   : > { %v7273_v19 = vpack.i.bf16 %v6788_v9, %v3020_v18 }
 0x617   : > { %7269 = vrot.lane.b32.xlu1 %v7268_v15, %s7746_s11  ;;  %7274 = vrot.lane.b32.xlu0 %v7273_v19, %s7745_s10  ;;  %v7687_v19 = vld [vmem:[%s7953_s7 + $0x8] sm:$0xff]  ;;  %s9390_s10 = sld [smem:[#allocation10_spill]] }
 0x618   : > { %s9391_s11 = sld [smem:[#allocation11_spill]] }
 0x629   : > { %v7235_v55 = vpop.permute.xlu0 %7234 }
 0x62a   : > { %v7237_v48 = vunpack.i.h.bf16 %v7235_v55  ;;  %v7236_v14 = vunpack.i.l.bf16 %v7235_v55 }
 0x62c   : > { %v3104_v11 = vsel %vm1758_vm1, %v8554_v41, %v7237_v48  ;;  %v3103_v38 = vsel %vm1758_vm1, %v8547_v43, %v7236_v14 }
 0x635   : > { %v7240_v12 = vpop.permute.xlu1 %7239 }
 0x636   : > { %v7242_v59 = vunpack.i.h.bf16 %v7240_v12  ;;  %v7241_v34 = vunpack.i.l.bf16 %v7240_v12 }
 0x638   : > { %v3111_v35 = vsel %vm3109_vm4, %v3104_v11, %v7242_v59  ;;  %v3110_v62 = vsel %vm3109_vm4, %v3103_v38, %v7241_v34  ;;  %v7688_v59 = vld [vmem:[%s7953_s7 + $0x10] sm:$0xff] }
 0x639   : > { %v7250_v41 = vpop.permute.xlu1 %7249 }
 0x63a   : > { %v7252_v37 = vunpack.i.h.bf16 %v7250_v41  ;;  %v7251_v24 = vunpack.i.l.bf16 %v7250_v41 }
 0x63c   : > { %v3106_v16 = vsel %vm1758_vm1, %v8556_v46, %v7252_v37  ;;  %v3105_v3 = vsel %vm1758_vm1, %v8545_v23, %v7251_v24  ;;  %v7691_v24 = vld [vmem:[%s7953_s7 + $0x28] sm:$0xff] }
 0x640   : > { %v7245_v7 = vpop.permute.xlu0 %7244 }
 0x641   : > { %v7247_v60 = vunpack.i.h.bf16 %v7245_v7  ;;  %v7246_v33 = vunpack.i.l.bf16 %v7245_v7 }
 0x643   : > { %v3118_v47 = vsel %vm3116_vm5, %v3111_v35, %v7247_v60  ;;  %v3117_v61 = vsel %vm3116_vm5, %v3110_v62, %v7246_v33  ;;  %v7689_v60 = vld [vmem:[%s7953_s7 + $0x18] sm:$0xff] }
 0x644   : > { %v3123_v32 = vpack.c.bf16 %v3118_v47, %v3117_v61  ;;  %v7255_v2 = vpop.permute.xlu0 %7254  ;;  %v7690_v61 = vld [vmem:[%s7953_s7 + $0x20] sm:$0xff] }
 0x645   : > { %v7257_v43 = vunpack.i.h.bf16 %v7255_v2  ;;  %v7256_v29 = vunpack.i.l.bf16 %v7255_v2 }
 0x646   : > { %6807 = vmatmul.mubr.bf16.vlgmr.msra.gmra.mxu0 %v3123_v32 }
 0x647   : > { %6810 = vmatprep.mubr.msk.bf16.mxu0 %vm7744_vm0, %v7742_v8  ;;  %v3113_v51 = vsel %vm3109_vm4, %v3106_v16, %v7257_v43  ;;  %v3112_v22 = vsel %vm3109_vm4, %v3105_v3, %v7256_v29  ;;  %v7320_v29 = vld [vmem:[%s7811_s24 + $0xe0] ss:$16 sps:$4 sm:$0xff]   ;;  %v7325_v16 = vld [vmem:[%s7811_s24 + $0xec] ss:$16 sps:$4 sm:$0xff]  }
 0x648   : > { %v7265_v50 = vpop.permute.xlu0 %7264  ;;  %3632 = vmatprep.subr.bf16.mxu0 %v7325_v16 }
 0x649   : > { %v7267_v26 = vunpack.i.h.bf16 %v7265_v50  ;;  %v7266_v45 = vunpack.i.l.bf16 %v7265_v50  ;;  %v7322_v50 = vld [vmem:[%s7811_s24 + $0xe4] ss:$16 sps:$4 sm:$0xff]  }
 0x64a   : > { %3569 = vmatprep.subr.bf16.mxu1 %v7322_v50 }
 0x64b   : > { %v3108_v0 = vsel %vm1758_vm1, %v8551_v25, %v7267_v26  ;;  %v3107_v58 = vsel %vm1758_vm1, %v8562_v40, %v7266_v45  ;;  %v6177_v25 = vld [vmem:[%s7796_s8] ss:$0 sm:$0xff]  ;;  %3570 = vmatpush1.bf16.msra.mxu1 %v7320_v29 }
 0x685   : > { %v7260_v56 = vpop.permute.xlu1 %7259 }
 0x686   : > { %v7262_v27 = vunpack.i.h.bf16 %v7260_v56  ;;  %v7261_v36 = vunpack.i.l.bf16 %v7260_v56  ;;  %v7323_v56 = vld [vmem:[%s7811_s24 + $0xe8] ss:$16 sps:$4 sm:$0xff]  }
 0x687   : > { %3633 = vmatpush1.bf16.msra.mxu0 %v7323_v56 }
 0x688   : > { %v3119_v4 = vsel %vm3116_vm5, %v3112_v22, %v7261_v36  ;;  %v3120_v5 = vsel %vm3116_vm5, %v3113_v51, %v7262_v27 }
 0x689   : > { %v7270_v21 = vpop.permute.xlu1 %7269  ;;  %v7275_v13 = vpop.permute.xlu0 %7274  ;;  %v3124_v1 = vpack.c.bf16 %v3120_v5, %v3119_v4  ;;  %v7328_v5 = vld [vmem:[%s7811_s24 + $0xc4] ss:$16 sps:$4 sm:$0xff]  }
 0x68a   : > { %v7272_v46 = vunpack.i.h.bf16 %v7270_v21  ;;  %v7271_v6 = vunpack.i.l.bf16 %v7270_v21  ;;  %v7277_v52 = vunpack.i.h.bf16 %v7275_v13  ;;  %v7276_v23 = vunpack.i.l.bf16 %v7275_v13  ;;  %v7331_v21 = vld [vmem:[%s7811_s24 + $0xcc] ss:$16 sps:$4 sm:$0xff]   ;;  %v7326_v13 = vld [vmem:[%s7811_s24 + $0xc0] ss:$16 sps:$4 sm:$0xff]   ;;  %3571 = vmatprep.subr.bf16.mxu1 %v7328_v5 }
 0x68b   : > { %6811 = vmatmul.mubr.bf16.gmra.mxu0 %v3124_v1  ;;  %v7329_v1 = vld [vmem:[%s7811_s24 + $0xc8] ss:$16 sps:$4 sm:$0xff]   ;;  %3634 = vmatprep.subr.bf16.mxu0 %v7331_v21  ;;  %v6186_v21 = vld [vmem:[%s7801_s14] ss:$0 sm:$0xff] }
 0x68c   : > { %v3115_v63 = vsel %vm3109_vm4, %v3108_v0, %v7272_v46  ;;  %v3114_v31 = vsel %vm3109_vm4, %v3107_v58, %v7271_v6  ;;  %6814 = vmatprep.mubr.msk.bf16.mxu0 %vm7744_vm0, %v7742_v8  ;;  %3572 = vmatpush1.bf16.msra.mxu1 %v7326_v13  ;;  %v7334_v46 = vld [vmem:[%s7811_s24 + $0xa4] ss:$16 sps:$4 sm:$0xff]   ;;  %v7337_v6 = vld [vmem:[%s7811_s24 + $0xac] ss:$16 sps:$4 sm:$0xff]   ;;  %v7338_v58 = vld [vmem:[%s7811_s24 + $0x80] ss:$16 sps:$4 sm:$0xff]  }
 0x68d   : > { %v3121_v10 = vsel %vm3116_vm5, %v3114_v31, %v7276_v23  ;;  %v3122_v44 = vsel %vm3116_vm5, %v3115_v63, %v7277_v52  ;;  %3635 = vmatpush1.bf16.msra.mxu0 %v7329_v1  ;;  %v7332_v52 = vld [vmem:[%s7811_s24 + $0xa0] ss:$16 sps:$4 sm:$0xff]   ;;  %v7335_v23 = vld [vmem:[%s7811_s24 + $0xa8] ss:$16 sps:$4 sm:$0xff]   ;;  %3573 = vmatprep.subr.bf16.mxu1 %v7334_v46  ;;  %v7340_v0 = vld [vmem:[%s7811_s24 + $0x84] ss:$16 sps:$4 sm:$0xff]  }
 0x68e   : > { %v3125_v54 = vpack.c.bf16 %v3122_v44, %v3121_v10  ;;  %3636 = vmatprep.subr.bf16.mxu0 %v7337_v6  ;;  %v7341_v63 = vld [vmem:[%s7811_s24 + $0x88] ss:$16 sps:$4 sm:$0xff]   ;;  %v7343_v31 = vld [vmem:[%s7811_s24 + $0x8c] ss:$16 sps:$4 sm:$0xff]   ;;  %v7346_v10 = vld [vmem:[%s7811_s24 + $0x64] ss:$16 sps:$4 sm:$0xff]  }
 0x68f   : > { %v7349_v44 = vld [vmem:[%s7811_s24 + $0x6c] ss:$16 sps:$4 sm:$0xff]   ;;  %v6187_v46 = vld [vmem:[%s7806_s19] ss:$0 sm:$0xff] }
 0x690   : > { %3574 = vmatpush1.bf16.msra.mxu1 %v7332_v52 }
 0x691   : > { %3637 = vmatpush1.bf16.msra.mxu0 %v7335_v23  ;;  %3575 = vmatprep.subr.bf16.mxu1 %v7340_v0 }
 0x692   : > { %3638 = vmatprep.subr.bf16.mxu0 %v7343_v31 }
 0x693   : > { %6815 = vmatmul.mubr.bf16.gmra.mxu0 %v3125_v54  ;;  %v7344_v54 = vld [vmem:[%s7811_s24 + $0x60] ss:$16 sps:$4 sm:$0xff]  }
 0x694   : > { %3664 = vmatprep.mubr.bf16.mxu0 %v7743_v53  ;;  %3576 = vmatpush1.bf16.msra.mxu1 %v7338_v58 }
 0x695   : > { %3639 = vmatpush1.bf16.msra.mxu0 %v7341_v63  ;;  %3577 = vmatprep.subr.bf16.mxu1 %v7346_v10 }
 0x696   : > { %3640 = vmatprep.subr.bf16.mxu0 %v7349_v44 }
 0x698   : > { %3578 = vmatpush1.bf16.msra.mxu1 %v7344_v54 }
 0x706   : > { %v3231_v40 = vpop.f32.mrf.mxu0 }
 0x707   : > { %v3232_v17 = vadd.f32 %v6177_v25, %v3231_v40  ;;  %v7352_v40 = vld [vmem:[%s7811_s24 + $0x44] ss:$16 sps:$4 sm:$0xff]  }
 0x708   : > { %v6808_v9 = vpop.f32.mrf.mxu0  ;;  %3579 = vmatprep.subr.bf16.mxu1 %v7352_v40 }
 0x709   : > { %v8612_v20 = vadd.f32 %v7686_v28, %v3232_v17  ;;  %v7355_v17 = vld [vmem:[%s7811_s24 + $0x4c] ss:$16 sps:$4 sm:$0xff]   ;;  %v7350_v9 = vld [vmem:[%s7811_s24 + $0x40] ss:$16 sps:$4 sm:$0xff]   ;;  %v7353_v28 = vld [vmem:[%s7811_s24 + $0x48] ss:$16 sps:$4 sm:$0xff]  }
 0x70a   : > { %v3234_v39 = vpop.f32.mrf.mxu0  ;;  %3580 = vmatpush1.bf16.msra.mxu1 %v7350_v9 }
 0x70b   : > { %v3235_v18 = vadd.f32 %v6177_v25, %v3234_v39  ;;  %3262 = vadd.xlane.f32.xlu1 %v8612_v20  ;;  %v7358_v39 = vld [vmem:[%s7811_s24 + $0x24] ss:$16 sps:$4 sm:$0xff]  }
 0x70c   : > { %v6809_v15 = vpop.f32.mrf.mxu0  ;;  %3581 = vmatprep.subr.bf16.mxu1 %v7358_v39 }
 0x70d   : > { %v8616_v55 = vadd.f32 %v7687_v19, %v3235_v18  ;;  %v7361_v18 = vld [vmem:[%s7811_s24 + $0x2c] ss:$16 sps:$4 sm:$0xff]   ;;  %v7356_v15 = vld [vmem:[%s7811_s24 + $0x20] ss:$16 sps:$4 sm:$0xff]   ;;  %v7359_v19 = vld [vmem:[%s7811_s24 + $0x28] ss:$16 sps:$4 sm:$0xff]  }
 0x70e   : > { %3582 = vmatpush1.bf16.msra.mxu1 %v7356_v15 }
 0x70f   : > { %3264 = vadd.xlane.f32.xlu0 %v8616_v55 }
 0x74b   : > { %v3239_v12 = vpop.f32.mrf.mxu0 }
 0x74c   : > { %v3240_v48 = vadd.f32 %v6177_v25, %v3239_v12  ;;  %v7364_v12 = vld [vmem:[%s7811_s24 + $0x4] ss:$16 sps:$4 sm:$0xff]  }
 0x74d   : > { %v6812_v14 = vpop.f32.mrf.mxu0  ;;  %3583 = vmatprep.subr.bf16.mxu1 %v7364_v12 }
 0x74e   : > { %v8620_v34 = vadd.f32 %v7688_v59, %v3240_v48  ;;  %v7367_v48 = vld [vmem:[%s7811_s24 + $0xc] ss:$16 sps:$4 sm:$0xff]   ;;  %v7362_v14 = vld [vmem:[%s7811_s24] ss:$16 sps:$4 sm:$0xff]   ;;  %v7365_v59 = vld [vmem:[%s7811_s24 + $0x8] ss:$16 sps:$4 sm:$0xff]  }
 0x74f   : > { %v3242_v7 = vpop.f32.mrf.mxu0  ;;  %3584 = vmatpush1.bf16.msra.mxu1 %v7362_v14 }
 0x750   : > { %v3243_v11 = vadd.f32 %v6177_v25, %v3242_v7  ;;  %3266 = vadd.xlane.f32.xlu0 %v8620_v34 }
 0x751   : > { %v6813_v38 = vpop.f32.mrf.mxu0 }
 0x752   : > { %v8624_v33 = vadd.f32 %v7689_v60, %v3243_v11 }
 0x753   : > { %v3247_v35 = vpop.f32.mrf.mxu0 }
 0x754   : > { %v3248_v62 = vadd.f32 %v6177_v25, %v3247_v35  ;;  %3268 = vadd.xlane.f32.xlu0 %v8624_v33 }
 0x755   : > { %v6816_v47 = vpop.f32.mrf.mxu0 }
 0x756   : > { %v8628_v32 = vadd.f32 %v7690_v61, %v3248_v62 }
 0x757   : > { %v3250_v2 = vpop.f32.mrf.mxu0 }
 0x758   : > { %v3251_v41 = vadd.f32 %v6177_v25, %v3250_v2  ;;  %3270 = vadd.xlane.f32.xlu1 %v8628_v32  ;;  %v7347_v25 = vld [vmem:[%s7811_s24 + $0x68] ss:$16 sps:$4 sm:$0xff]  }
 0x759   : > { %v6817_v37 = vpop.f32.mrf.mxu0  ;;  %3641 = vmatpush1.bf16.msra.mxu0 %v7347_v25 }
 0x75a   : > { %v8632_v43 = vadd.f32 %v7691_v24, %v3251_v41  ;;  %3642 = vmatprep.subr.bf16.mxu0 %v7355_v17 }
 0x75c   : > { %3272 = vadd.xlane.f32.xlu0 %v8632_v43 }
 0x75d   : > { %3643 = vmatpush1.bf16.msra.mxu0 %v7353_v28 }
 0x75e   : > { %3644 = vmatprep.subr.bf16.mxu0 %v7361_v18 }
 0x761   : > { %3645 = vmatpush1.bf16.msra.mxu0 %v7359_v19 }
 0x762   : > { %3646 = vmatprep.subr.bf16.mxu0 %v7367_v48 }
 0x765   : > { %3647 = vmatpush1.bf16.msra.mxu0 %v7365_v59 }
 0x794   : > { %v3263_v3 = vpop.xlane.xlu1 %3262 }
 0x795   : > { %v3274_v27 = vmul.f32 0.0078125, %v3263_v3 }
 0x797   : > { %v8640_v36 = vsub.f32 %v8612_v20, %v3274_v27 }
 0x798   : > { %v3265_v51 = vpop.xlane.xlu0 %3264 }
 0x799   : > { %v3275_v22 = vmul.f32 0.0078125, %v3265_v51  ;;  %v3286_v26 = vmul.f32 %v8640_v36, %v8640_v36 }
 0x79b   : > { %v8645_v45 = vsub.f32 %v8616_v55, %v3275_v22  ;;  %3292 = vadd.xlane.f32.xlu1 %v3286_v26 }
 0x79d   : > { %v3287_v4 = vmul.f32 %v8645_v45, %v8645_v45 }
 0x79f   : > { %3294 = vadd.xlane.f32.xlu0 %v3287_v4 }
 0x7d9   : > { %v3267_v7 = vpop.xlane.xlu0 %3266 }
 0x7da   : > { %v3276_v11 = vmul.f32 0.0078125, %v3267_v7 }
 0x7dc   : > { %v3282_v38 = vsub.f32 %v8620_v34, %v3276_v11 }
 0x7dd   : > { %v3269_v60 = vpop.xlane.xlu0 %3268 }
 0x7de   : > { %v3277_v35 = vmul.f32 0.0078125, %v3269_v60  ;;  %v3288_v62 = vmul.f32 %v3282_v38, %v3282_v38 }
 0x7e0   : > { %v3283_v47 = vsub.f32 %v8624_v33, %v3277_v35  ;;  %3296 = vadd.xlane.f32.xlu1 %v3288_v62 }
 0x7e1   : > { %v3271_v61 = vpop.xlane.xlu1 %3270 }
 0x7e2   : > { %v3278_v2 = vmul.f32 0.0078125, %v3271_v61  ;;  %v3289_v41 = vmul.f32 %v3283_v47, %v3283_v47 }
 0x7e4   : > { %v3284_v37 = vsub.f32 %v8628_v32, %v3278_v2  ;;  %3298 = vadd.xlane.f32.xlu0 %v3289_v41  ;;  %v7368_v2 = vld [vmem:[%s7821_s6 + $0x78] sm:$0xff]  }
 0x7e5   : > { %v3273_v24 = vpop.xlane.xlu0 %3272  ;;  %v7369_v41 = vld [vmem:[%s7821_s6 + $0xf8] sm:$0xff]   ;;  %6440 = vmatprep.subr.bf16.mxu1 %v7368_v2 }
 0x7e6   : > { %v3279_v29 = vmul.f32 0.0078125, %v3273_v24  ;;  %v3290_v50 = vmul.f32 %v3284_v37, %v3284_v37  ;;  %v7371_v24 = vld [vmem:[%s7821_s6 + $0xb8] sm:$0xff]   ;;  %6474 = vmatprep.subr.bf16.mxu0 %v7369_v41 }
 0x7e8   : > { %v3285_v56 = vsub.f32 %v8632_v43, %v3279_v29  ;;  %3300 = vadd.xlane.f32.xlu1 %v3290_v50  ;;  %v7373_v50 = vld [vmem:[%s7821_s6 + $0xf0] sm:$0xff]  }
 0x7ea   : > { %v3291_v34 = vmul.f32 %v3285_v56, %v3285_v56 }
 0x7ec   : > { %3302 = vadd.xlane.f32.xlu0 %v3291_v34  ;;  %v7375_v34 = vld [vmem:[%s7821_s6 + $0xb0] sm:$0xff]  }
 0x824   : > { %v3293_v16 = vpop.xlane.xlu1 %3292 }
 0x825   : > { %v3304_v3 = vmul.f32 0.0078125, %v3293_v16  ;;  %v7376_v16 = vld [vmem:[%s7821_s6 + $0x68] sm:$0xff]  }
 0x827   : > { %v3310_v27 = vadd.f32 1e-06, %v3304_v3  ;;  %v7377_v3 = vld [vmem:[%s7821_s6 + $0xe8] sm:$0xff]  }
 0x828   : > { %v3295_v51 = vpop.xlane.xlu0 %3294 }
 0x829   : > { %7588 = vrsqrt.f32 %v3310_v27  ;;  %v3305_v22 = vmul.f32 0.0078125, %v3295_v51  ;;  %v7378_v27 = vld [vmem:[%s7821_s6 + $0x28] sm:$0xff]  }
 0x82a   : > { %v7379_v51 = vld [vmem:[%s7821_s6 + $0xa8] sm:$0xff]  }
 0x82b   : > { %v3311_v26 = vadd.f32 1e-06, %v3305_v22  ;;  %v7380_v22 = vld [vmem:[%s7821_s6 + $0x60] sm:$0xff]  }
 0x82d   : > { %7590 = vrsqrt.f32 %v3311_v26  ;;  %v7381_v26 = vld [vmem:[%s7821_s6 + $0xe0] sm:$0xff]  }
 0x836   : > { %v7589_v4 = vpop.eup %7588 }
 0x837   : > { %v3322_v5 = vmul.f32 %v7589_v4, %v8640_v36  ;;  %v7382_v4 = vld [vmem:[%s7821_s6 + $0x20] sm:$0xff]  }
 0x839   : > { %v3334_v43 = vmul.f32 %v6186_v21, %v3322_v5  ;;  %v7383_v5 = vld [vmem:[%s7821_s6 + $0xa0] sm:$0xff]  }
 0x83a   : > { %v7591_v13 = vpop.eup %7590 }
 0x83b   : > { %v3323_v1 = vmul.f32 %v7591_v13, %v8645_v45  ;;  %v3346_v52 = vadd.f32 %v6187_v46, %v3334_v43  ;;  %v7385_v13 = vld [vmem:[%s7821_s6 + $0xd8] sm:$0xff]  }
 0x83c   : > { %v7387_v43 = vld [vmem:[%s7821_s6 + $0x98] sm:$0xff]  }
 0x83d   : > { %v3335_v6 = vmul.f32 %v6186_v21, %v3323_v1  ;;  %v7386_v1 = vld [vmem:[%s7821_s6 + $0x18] sm:$0xff]  }
 0x83f   : > { %v3347_v23 = vadd.f32 %v6187_v46, %v3335_v6  ;;  %v7389_v6 = vld [vmem:[%s7821_s6 + $0xd0] sm:$0xff]  }
 0x841   : > { %v3352_v0 = vpack.c.bf16 %v3347_v23, %v3346_v52  ;;  %v7390_v52 = vld [vmem:[%s7821_s6 + $0x10] sm:$0xff]  }
 0x842   : > { %v7391_v23 = vld [vmem:[%s7821_s6 + $0x90] sm:$0xff]  }
 0x843   : > { %3602 = vmatmul.mubr.bf16.vlgmr.msra.gmra.mxu1 %v3352_v0  ;;  %3665 = vmatmul.mubr.bf16.vlgmr.msra.gmra.mxu0 %v3352_v0  ;;  %v7392_v0 = vld [vmem:[%s7821_s6 + $0x48] sm:$0xff]  }
 0x844   : > { %3611 = vmatprep.mubr.bf16.mxu1 %v7743_v53  ;;  %3674 = vmatprep.mubr.bf16.mxu0 %v7743_v53 }
 0x845   : > { %6475 = vmatpush3.bf16.msra.mxu0 %v7371_v24 }
 0x846   : > { %6476 = vmatprep.subr.bf16.mxu0 %v7373_v50 }
 0x849   : > { %6477 = vmatpush3.bf16.msra.mxu0 %v7375_v34 }
 0x84a   : > { %6478 = vmatprep.subr.bf16.mxu0 %v7377_v3 }
 0x84d   : > { %6479 = vmatpush3.bf16.msra.mxu0 %v7379_v51 }
 0x84e   : > { %6480 = vmatprep.subr.bf16.mxu0 %v7381_v26 }
 0x851   : > { %6481 = vmatpush3.bf16.msra.mxu0 %v7383_v5 }
 0x852   : > { %6482 = vmatprep.subr.bf16.mxu0 %v7385_v13 }
 0x855   : > { %6483 = vmatpush3.bf16.msra.mxu0 %v7387_v43 }
 0x856   : > { %6484 = vmatprep.subr.bf16.mxu0 %v7389_v6 }
 0x859   : > { %6485 = vmatpush3.bf16.msra.mxu0 %v7391_v23 }
 0x869   : > { %v3297_v58 = vpop.xlane.xlu1 %3296 }
 0x86a   : > { %v3306_v63 = vmul.f32 0.0078125, %v3297_v58  ;;  %v7393_v58 = vld [vmem:[%s7821_s6 + $0xc8] sm:$0xff]  }
 0x86b   : > { %6486 = vmatprep.subr.bf16.mxu0 %v7393_v58 }
 0x86c   : > { %v3312_v31 = vadd.f32 1e-06, %v3306_v63  ;;  %v7394_v63 = vld [vmem:[%s7821_s6 + $0x8] sm:$0xff]  }
 0x86d   : > { %v3299_v36 = vpop.xlane.xlu0 %3298 }
 0x86e   : > { %7592 = vrsqrt.f32 %v3312_v31  ;;  %v3307_v10 = vmul.f32 0.0078125, %v3299_v36  ;;  %v7395_v31 = vld [vmem:[%s7821_s6 + $0x88] sm:$0xff]   ;;  %v7396_v36 = vld [vmem:[%s7821_s6 + $0x40] sm:$0xff]  }
 0x86f   : > { %6487 = vmatpush3.bf16.msra.mxu0 %v7395_v31 }
 0x870   : > { %v3313_v44 = vadd.f32 1e-06, %v3307_v10  ;;  %v7397_v10 = vld [vmem:[%s7821_s6 + $0xc0] sm:$0xff]  }
 0x871   : > { %v3301_v45 = vpop.xlane.xlu1 %3300  ;;  %6488 = vmatprep.subr.bf16.mxu0 %v7397_v10 }
 0x872   : > { %7594 = vrsqrt.f32 %v3313_v44  ;;  %v3308_v54 = vmul.f32 0.0078125, %v3301_v45  ;;  %v7398_v44 = vld [vmem:[%s7821_s6] sm:$0xff]  }
 0x873   : > { %v7399_v45 = vld [vmem:[%s7821_s6 + $0x80] sm:$0xff]  }
 0x874   : > { %v3314_v25 = vadd.f32 1e-06, %v3308_v54  ;;  %6489 = vmatpush3.bf16.msra.mxu0 %v7399_v45  ;;  %v3387_v54 = vld [vmem:[%s7816_s30] sm:$0xf] }
 0x875   : > { %v3303_v40 = vpop.xlane.xlu0 %3302 }
 0x876   : > { %7596 = vrsqrt.f32 %v3314_v25  ;;  %v3309_v17 = vmul.f32 0.0078125, %v3303_v40  ;;  %v3403_v25 = vsub.s32 3, %v8036_v42  ;;  %v8726_v40 = vrot.slane %v3387_v54, %v1268_v30 }
 0x878   : > { %v3315_v9 = vadd.f32 1e-06, %v3309_v17  ;;  %v8730_v17 = vrot.slane %v3387_v54, %v1276_v57 }
 0x87a   : > { %7598 = vrsqrt.f32 %v3315_v9  ;;  %v8733_v9 = vld [vmem:[%s7831_s20 + $0x38] sm:$0xff]  }
 0x87b   : > { %v7593_v28 = vpop.eup %7592  ;;  %6838 = vmatprep.subr.bf16.mxu0 %v8733_v9 }
 0x87c   : > { %v3324_v39 = vmul.f32 %v7593_v28, %v3282_v38 }
 0x87e   : > { %v3336_v19 = vmul.f32 %v6186_v21, %v3324_v39 }
 0x87f   : > { %v7595_v18 = vpop.eup %7594 }
 0x880   : > { %v3325_v15 = vmul.f32 %v7595_v18, %v3283_v47  ;;  %v3348_v14 = vadd.f32 %v6187_v46, %v3336_v19  ;;  %v8737_v18 = vrot.slane %v3387_v54, %v1272_v49 }
 0x882   : > { %v3337_v12 = vmul.f32 %v6186_v21, %v3325_v15  ;;  %v8739_v15 = vrot.slane %v3387_v54, %v3403_v25 }
 0x883   : > { %v7597_v48 = vpop.eup %7596 }
 0x884   : > { %v3349_v59 = vadd.f32 %v6187_v46, %v3337_v12  ;;  %v3326_v7 = vmul.f32 %v7597_v48, %v3284_v37  ;;  %v7370_v37 = vld [vmem:[%s7821_s6 + $0x38] sm:$0xff]  }
 0x885   : > { %6441 = vmatpush3.bf16.msra.mxu1 %v7370_v37 }
 0x886   : > { %v3353_v11 = vpack.c.bf16 %v3349_v59, %v3348_v14  ;;  %v3338_v62 = vmul.f32 %v6186_v21, %v3326_v7 }
 0x887   : > { %v7599_v60 = vpop.eup %7598 }
 0x888   : > { %3612 = vmatmul.mubr.bf16.gmra.mxu1 %v3353_v11  ;;  %3675 = vmatmul.mubr.bf16.gmra.mxu0 %v3353_v11  ;;  %v3327_v35 = vmul.f32 %v7599_v60, %v3285_v56  ;;  %v3350_v47 = vadd.f32 %v6187_v46, %v3338_v62  ;;  %v7374_v56 = vld [vmem:[%s7821_s6 + $0x30] sm:$0xff]  }
 0x889   : > { %3621 = vmatprep.mubr.bf16.mxu1 %v7743_v53  ;;  %3684 = vmatprep.mubr.bf16.mxu0 %v7743_v53  ;;  %v7372_v53 = vld [vmem:[%s7821_s6 + $0x70] sm:$0xff]  }
 0x88a   : > { %v3339_v38 = vmul.f32 %v6186_v21, %v3327_v35  ;;  %6442 = vmatprep.subr.bf16.mxu1 %v7372_v53  ;;  %v7384_v21 = vld [vmem:[%s7821_s6 + $0x58] sm:$0xff]  }
 0x88b   : > { %6443 = vmatpush3.bf16.msra.mxu1 %v7374_v56 }
 0x88c   : > { %v3351_v61 = vadd.f32 %v6187_v46, %v3339_v38  ;;  %6444 = vmatprep.subr.bf16.mxu1 %v7376_v16  ;;  %v7388_v46 = vld [vmem:[%s7821_s6 + $0x50] sm:$0xff]  }
 0x88e   : > { %v3354_v29 = vpack.c.bf16 %v3351_v61, %v3350_v47 }
 0x88f   : > { %6445 = vmatpush3.bf16.msra.mxu1 %v7378_v27 }
 0x890   : > { %3622 = vmatmul.mubr.bf16.gmra.mxu1 %v3354_v29  ;;  %3685 = vmatmul.mubr.bf16.gmra.mxu0 %v3354_v29 }
 0x891   : > { %6446 = vmatprep.subr.bf16.mxu1 %v7380_v22 }
 0x893   : > { %6447 = vmatpush3.bf16.msra.mxu1 %v7382_v4 }
 0x894   : > { %6448 = vmatprep.subr.bf16.mxu1 %v7384_v21 }
 0x897   : > { %6449 = vmatpush3.bf16.msra.mxu1 %v7386_v1 }
 0x898   : > { %6450 = vmatprep.subr.bf16.mxu1 %v7388_v46 }
 0x89b   : > { %6451 = vmatpush3.bf16.msra.mxu1 %v7390_v52 }
 0x89c   : > { %6452 = vmatprep.subr.bf16.mxu1 %v7392_v0 }
 0x89f   : > { %6453 = vmatpush3.bf16.msra.mxu1 %v7394_v63 }
 0x8a0   : > { %6454 = vmatprep.subr.bf16.mxu1 %v7396_v36 }
 0x8a3   : > { %6455 = vmatpush3.bf16.msra.mxu1 %v7398_v44 }
 0x8a4   : > { %6818 = vmatprep.subr.bf16.mxu1 %v7742_v8 }
 0x903   : > { %v3603_v28 = vpop.f32.mrf.mxu1  ;;  %v3666_v39 = vpop.f32.mrf.mxu0 }
 0x904   : > { %v8743_v19 = vadd.f32 %v3603_v28, %v8726_v40  ;;  %v8746_v30 = vadd.f32 %v3666_v39, %v8730_v17 }
 0x905   : > { %v3605_v57 = vpop.f32.mrf.mxu1  ;;  %v3668_v12 = vpop.f32.mrf.mxu0 }
 0x906   : > { %v3719_v48 = vmul.f32 0.044715, %v8743_v19  ;;  %v3721_v14 = vmul.f32 0.044715, %v8746_v30  ;;  %v8751_v42 = vadd.f32 %v3605_v57, %v8737_v18  ;;  %v8754_v49 = vadd.f32 %v3668_v12, %v8739_v15 }
 0x907   : > { %v3607_v59 = vpop.f32.mrf.mxu1  ;;  %v3670_v7 = vpop.f32.mrf.mxu0 }
 0x908   : > { %v3743_v11 = vmul.f32 %v3719_v48, %v8743_v19  ;;  %v3745_v60 = vmul.f32 %v3721_v14, %v8746_v30  ;;  %v3608_v35 = vadd.f32 %v3607_v59, %v8726_v40  ;;  %v8760_v62 = vadd.f32 %v3670_v7, %v8730_v17 }
 0x909   : > { %v3720_v38 = vmul.f32 0.044715, %v8751_v42  ;;  %v3722_v47 = vmul.f32 0.044715, %v8754_v49  ;;  %v3609_v61 = vpop.f32.mrf.mxu1  ;;  %v3672_v24 = vpop.f32.mrf.mxu0 }
 0x90a   : > { %v3767_v2 = vmul.f32 %v3743_v11, %v8743_v19  ;;  %v3769_v41 = vmul.f32 %v3745_v60, %v8746_v30  ;;  %v3723_v37 = vmul.f32 0.044715, %v3608_v35  ;;  %v3725_v50 = vmul.f32 0.044715, %v8760_v62 }
 0x90b   : > { %v3744_v29 = vmul.f32 %v3720_v38, %v8751_v42  ;;  %v3746_v53 = vmul.f32 %v3722_v47, %v8754_v49  ;;  %v3610_v3 = vadd.f32 %v3609_v61, %v8737_v18  ;;  %v3673_v26 = vadd.f32 %v3672_v24, %v8739_v15 }
 0x90c   : > { %v3791_v56 = vadd.f32 %v3767_v2, %v8743_v19  ;;  %v3793_v34 = vadd.f32 %v3769_v41, %v8746_v30  ;;  %v3747_v16 = vmul.f32 %v3723_v37, %v3608_v35  ;;  %v3749_v22 = vmul.f32 %v3725_v50, %v8760_v62 }
 0x90d   : > { %v3768_v27 = vmul.f32 %v3744_v29, %v8751_v42  ;;  %v3770_v51 = vmul.f32 %v3746_v53, %v8754_v49  ;;  %v3724_v13 = vmul.f32 0.044715, %v3610_v3  ;;  %v3726_v43 = vmul.f32 0.044715, %v3673_v26 }
 0x90e   : > { %v3815_v4 = vmul.f32 0.7978846, %v3791_v56  ;;  %v3817_v5 = vmul.f32 0.7978846, %v3793_v34  ;;  %v3771_v21 = vmul.f32 %v3747_v16, %v3608_v35  ;;  %v3773_v1 = vmul.f32 %v3749_v22, %v8760_v62 }
 0x90f   : > { %v3792_v46 = vadd.f32 %v3768_v27, %v8751_v42  ;;  %v3748_v52 = vmul.f32 %v3724_v13, %v3610_v3  ;;  %v3750_v0 = vmul.f32 %v3726_v43, %v3673_v26  ;;  %v3794_v36 = vadd.f32 %v3770_v51, %v8754_v49 }
 0x910   : > { %v3795_v6 = vadd.f32 %v3771_v21, %v3608_v35  ;;  %7600 = vtanh.f32 %v3815_v4  ;;  %v3797_v23 = vadd.f32 %v3773_v1, %v8760_v62  ;;  %v3695_v60 = vmul.f32 0.5, %v8743_v19  ;;  %v7408_v1 = vld [vmem:[%s9384_s16 + $0x38] sm:$0xff]  }
 0x911   : > { %v3816_v58 = vmul.f32 0.7978846, %v3792_v46  ;;  %7602 = vtanh.f32 %v3817_v5  ;;  %v3772_v31 = vmul.f32 %v3748_v52, %v3610_v3  ;;  %v3774_v44 = vmul.f32 %v3750_v0, %v3673_v26  ;;  %v8787_v46 = vld [vmem:[%s7831_s20 + $0x30] sm:$0xff]   ;;  %v7410_v52 = vld [vmem:[%s9384_s16 + $0x28] sm:$0xff]   ;;  %v7411_v0 = vld [vmem:[%s9384_s16 + $0x20] sm:$0xff]  }
 0x912   : > { %v3819_v63 = vmul.f32 0.7978846, %v3795_v6  ;;  %v3821_v10 = vmul.f32 0.7978846, %v3797_v23  ;;  %v3818_v54 = vmul.f32 0.7978846, %v3794_v36 }
 0x913   : > { %7604 = vtanh.f32 %v3816_v58  ;;  %v3796_v45 = vadd.f32 %v3772_v31, %v3610_v3  ;;  %v3798_v25 = vadd.f32 %v3774_v44, %v3673_v26  ;;  %v3699_v2 = vmul.f32 0.5, %v3608_v35  ;;  %v8794_v6 = vld [vmem:[%s7831_s20 + $0x28] sm:$0xff]   ;;  %v8801_v23 = vld [vmem:[%s7831_s20 + $0x20] sm:$0xff]   ;;  %v8808_v58 = vld [vmem:[%s7831_s20 + $0x18] sm:$0xff]  }
 0x914   : > { %7606 = vtanh.f32 %v3819_v63  ;;  %v3696_v41 = vmul.f32 0.5, %v8751_v42  ;;  %v3701_v53 = vmul.f32 0.5, %v8760_v62  ;;  %v3700_v50 = vmul.f32 0.5, %v3610_v3  ;;  %v8814_v63 = vld [vmem:[%s7831_s20 + $0x10] sm:$0xff]   ;;  %v8819_v31 = vld [vmem:[%s7831_s20 + $0x8] sm:$0xff]   ;;  %v8824_v36 = vld [vmem:[%s7831_s20] sm:$0xff]  }
 0x915   : > { %7608 = vtanh.f32 %v3821_v10  ;;  %v3820_v28 = vmul.f32 0.7978846, %v3796_v45  ;;  %v3822_v39 = vmul.f32 0.7978846, %v3798_v25  ;;  %v3698_v16 = vmul.f32 0.5, %v8754_v49 }
 0x916   : > { %7610 = vtanh.f32 %v3818_v54  ;;  %v3702_v27 = vmul.f32 0.5, %v3673_v26  ;;  %v3697_v22 = vmul.f32 0.5, %v8746_v30  ;;  %v7409_v30 = vld [vmem:[%s9384_s16 + $0x30] sm:$0xff]  }
 0x917   : > { %7612 = vtanh.f32 %v3820_v28 }
 0x918   : > { %7614 = vtanh.f32 %v3822_v39 }
 0x91d   : > { %v7601_v57 = vpop.eup %7600 }
 0x91e   : > { %v7603_v12 = vpop.eup %7602  ;;  %v3863_v24 = vadd.f32 1.0, %v7601_v57 }
 0x91f   : > { %v3865_v34 = vadd.f32 1.0, %v7603_v12 }
 0x920   : > { %v7605_v48 = vpop.eup %7604  ;;  %v3887_v13 = vmul.f32 %v3863_v24, %v3695_v60 }
 0x921   : > { %v7607_v14 = vpop.eup %7606  ;;  %v3864_v38 = vadd.f32 1.0, %v7605_v48  ;;  %v3889_v3 = vmul.f32 %v3865_v34, %v3697_v22 }
 0x922   : > { %v7609_v59 = vpop.eup %7608  ;;  %v3867_v11 = vadd.f32 1.0, %v7607_v14 }
 0x923   : > { %v7611_v7 = vpop.eup %7610  ;;  %v3869_v47 = vadd.f32 1.0, %v7609_v59  ;;  %v3888_v35 = vmul.f32 %v3864_v38, %v3696_v41 }
 0x924   : > { %v7613_v61 = vpop.eup %7612  ;;  %v3866_v37 = vadd.f32 1.0, %v7611_v7  ;;  %v3891_v19 = vmul.f32 %v3867_v11, %v3699_v2 }
 0x925   : > { %v7615_v29 = vpop.eup %7614  ;;  %v3868_v56 = vadd.f32 1.0, %v7613_v61  ;;  %v3893_v42 = vmul.f32 %v3869_v47, %v3701_v53 }
 0x926   : > { %v3870_v51 = vadd.f32 1.0, %v7615_v29  ;;  %v3890_v5 = vmul.f32 %v3866_v37, %v3698_v16  ;;  %v3911_v49 = vpack.c.bf16 %v3891_v19, %v3887_v13 }
 0x927   : > { %v3892_v4 = vmul.f32 %v3868_v56, %v3700_v50  ;;  %v3913_v26 = vpack.c.bf16 %v3893_v42, %v3889_v3 }
 0x928   : > { %v3894_v21 = vmul.f32 %v3870_v51, %v3702_v27 }
 0x929   : > { %v3912_v62 = vpack.c.bf16 %v3892_v4, %v3888_v35 }
 0x92a   : > { %v3914_v43 = vpack.c.bf16 %v3894_v21, %v3890_v5 }
 0x92b   : > { %4218 = vmatprep.mubr.bf16.mxu1 %v3912_v62 }
 0x92c   : > { %4273 = vmatprep.mubr.bf16.mxu0 %v3914_v43  ;;  %4219 = vmatmul.mubr.bf16.vlgmr.msra.gmra.mxu1 %v3911_v49 }
 0x92d   : > { %4274 = vmatmul.mubr.bf16.vlgmr.msra.gmra.mxu0 %v3913_v26  ;;  %6819 = vmatpush3.bf16.msra.mxu1 %v7408_v1 }
 0x92e   : > { %6839 = vmatpush3.bf16.msra.mxu0 %v8733_v9  ;;  %6820 = vmatprep.subr.bf16.mxu1 %v7742_v8 }
 0x92f   : > { %6840 = vmatprep.subr.bf16.mxu0 %v8787_v46 }
 0x931   : > { %6821 = vmatpush3.bf16.msra.mxu1 %v7409_v30 }
 0x932   : > { %6841 = vmatpush3.bf16.msra.mxu0 %v8787_v46  ;;  %6822 = vmatprep.subr.bf16.mxu1 %v7742_v8 }
 0x933   : > { %6842 = vmatprep.subr.bf16.mxu0 %v8794_v6 }
 0x935   : > { %6823 = vmatpush3.bf16.msra.mxu1 %v7410_v52 }
 0x936   : > { %6843 = vmatpush3.bf16.msra.mxu0 %v8794_v6  ;;  %6824 = vmatprep.subr.bf16.mxu1 %v7742_v8 }
 0x937   : > { %6844 = vmatprep.subr.bf16.mxu0 %v8801_v23 }
 0x939   : > { %6825 = vmatpush3.bf16.msra.mxu1 %v7411_v0 }
 0x93a   : > { %6845 = vmatpush3.bf16.msra.mxu0 %v8801_v23  ;;  %6826 = vmatprep.subr.bf16.mxu1 %v7742_v8 }
 0x93b   : > { %6846 = vmatprep.subr.bf16.mxu0 %v8808_v58 }
 0x93e   : > { %6847 = vmatpush3.bf16.msra.mxu0 %v8808_v58 }
 0x93f   : > { %6848 = vmatprep.subr.bf16.mxu0 %v8814_v63 }
 0x942   : > { %6849 = vmatpush3.bf16.msra.mxu0 %v8814_v63 }
 0x943   : > { %6850 = vmatprep.subr.bf16.mxu0 %v8819_v31 }
 0x946   : > { %6851 = vmatpush3.bf16.msra.mxu0 %v8819_v31 }
 0x947   : > { %6852 = vmatprep.subr.bf16.mxu0 %v8824_v36 }
 0x948   : > { %v3613_v10 = vpop.f32.mrf.mxu1  ;;  %v3676_v44 = vpop.f32.mrf.mxu0 }
 0x949   : > { %v8829_v45 = vadd.f32 %v3613_v10, %v8726_v40  ;;  %v8832_v54 = vadd.f32 %v3676_v44, %v8730_v17 }
 0x94a   : > { %v3615_v25 = vpop.f32.mrf.mxu1  ;;  %v3678_v28 = vpop.f32.mrf.mxu0  ;;  %6853 = vmatpush3.bf16.msra.mxu0 %v8824_v36 }
 0x94b   : > { %v3727_v39 = vmul.f32 0.044715, %v8829_v45  ;;  %v8836_v57 = vadd.f32 %v3615_v25, %v8737_v18  ;;  %v8839_v12 = vadd.f32 %v3678_v28, %v8739_v15  ;;  %v3729_v59 = vmul.f32 0.044715, %v8832_v54 }
 0x94c   : > { %v3617_v48 = vpop.f32.mrf.mxu1  ;;  %v3680_v14 = vpop.f32.mrf.mxu0 }
 0x94d   : > { %v3728_v7 = vmul.f32 0.044715, %v8836_v57  ;;  %v3730_v11 = vmul.f32 0.044715, %v8839_v12  ;;  %v8846_v60 = vadd.f32 %v3617_v48, %v8726_v40  ;;  %v8849_v38 = vadd.f32 %v3680_v14, %v8730_v17 }
 0x94e   : > { %v3619_v47 = vpop.f32.mrf.mxu1  ;;  %v3682_v61 = vpop.f32.mrf.mxu0  ;;  %v3751_v2 = vmul.f32 %v3727_v39, %v8829_v45  ;;  %v3753_v56 = vmul.f32 %v3729_v59, %v8832_v54 }
 0x94f   : > { %v3752_v41 = vmul.f32 %v3728_v7, %v8836_v57  ;;  %v3731_v37 = vmul.f32 0.044715, %v8846_v60  ;;  %v8855_v24 = vadd.f32 %v3619_v47, %v8737_v18  ;;  %v8858_v29 = vadd.f32 %v3682_v61, %v8739_v15 }
 0x950   : > { %v3623_v53 = vpop.f32.mrf.mxu1  ;;  %v3686_v50 = vpop.f32.mrf.mxu0  ;;  %v3733_v34 = vmul.f32 0.044715, %v8849_v38  ;;  %v3754_v16 = vmul.f32 %v3730_v11, %v8839_v12  ;;  %v3775_v13 = vmul.f32 %v3751_v2, %v8829_v45  ;;  %v3777_v0 = vmul.f32 %v3753_v56, %v8832_v54 }
 0x951   : > { %v3732_v27 = vmul.f32 0.044715, %v8855_v24  ;;  %v3734_v51 = vmul.f32 0.044715, %v8858_v29  ;;  %v8866_v19 = vadd.f32 %v3623_v53, %v8726_v40  ;;  %v3755_v4 = vmul.f32 %v3731_v37, %v8846_v60 }
 0x952   : > { %v3625_v22 = vpop.f32.mrf.mxu1  ;;  %v3688_v35 = vpop.f32.mrf.mxu0  ;;  %v8870_v42 = vadd.f32 %v3686_v50, %v8730_v17  ;;  %v3776_v62 = vmul.f32 %v3752_v41, %v8836_v57  ;;  %v3757_v49 = vmul.f32 %v3733_v34, %v8849_v38  ;;  %v3778_v48 = vmul.f32 %v3754_v16, %v8839_v12 }
 0x953   : > { %v8873_v5 = vadd.f32 %v3625_v22, %v8737_v18  ;;  %v8876_v21 = vadd.f32 %v3688_v35, %v8739_v15  ;;  %v3756_v3 = vmul.f32 %v3732_v27, %v8855_v24  ;;  %v3758_v26 = vmul.f32 %v3734_v51, %v8858_v29 }
 0x954   : > { %v3627_v1 = vpop.f32.mrf.mxu1  ;;  %v3690_v43 = vpop.f32.mrf.mxu0  ;;  %v3735_v10 = vmul.f32 0.044715, %v8866_v19  ;;  %v3779_v14 = vmul.f32 %v3755_v4, %v8846_v60  ;;  %v3737_v7 = vmul.f32 0.044715, %v8870_v42  ;;  %v3781_v61 = vmul.f32 %v3757_v49, %v8849_v38 }
 0x955   : > { %v3736_v30 = vmul.f32 0.044715, %v8873_v5  ;;  %v3738_v52 = vmul.f32 0.044715, %v8876_v21  ;;  %v8888_v44 = vadd.f32 %v3627_v1, %v8726_v40  ;;  %v8891_v25 = vadd.f32 %v3690_v43, %v8730_v17 }
 0x956   : > { %v3629_v28 = vpop.f32.mrf.mxu1  ;;  %v3692_v39 = vpop.f32.mrf.mxu0  ;;  %v3780_v59 = vmul.f32 %v3756_v3, %v8855_v24  ;;  %v3782_v2 = vmul.f32 %v3758_v26, %v8858_v29  ;;  %v3800_v37 = vadd.f32 %v3776_v62, %v8836_v57  ;;  %v3759_v53 = vmul.f32 %v3735_v10, %v8866_v19 }
 0x957   : > { %v3760_v11 = vmul.f32 %v3736_v30, %v8873_v5  ;;  %v3762_v47 = vmul.f32 %v3738_v52, %v8876_v21  ;;  %v8900_v40 = vadd.f32 %v3629_v28, %v8737_v18  ;;  %v8903_v17 = vadd.f32 %v3692_v39, %v8739_v15 }
 0x958   : > { %v3739_v41 = vmul.f32 0.044715, %v8888_v44  ;;  %v3741_v50 = vmul.f32 0.044715, %v8891_v25  ;;  %v3761_v34 = vmul.f32 %v3737_v7, %v8870_v42  ;;  %v3804_v15 = vadd.f32 %v3780_v59, %v8855_v24 }
 0x959   : > { %v3740_v56 = vmul.f32 0.044715, %v8900_v40  ;;  %v3742_v18 = vmul.f32 0.044715, %v8903_v17  ;;  %v3824_v16 = vmul.f32 0.7978846, %v3800_v37  ;;  %v3802_v27 = vadd.f32 %v3778_v48, %v8839_v12 }
 0x95a   : > { %v3784_v51 = vmul.f32 %v3760_v11, %v8873_v5  ;;  %v3786_v22 = vmul.f32 %v3762_v47, %v8876_v21  ;;  %v3828_v62 = vmul.f32 0.7978846, %v3804_v15  ;;  %v3806_v3 = vadd.f32 %v3782_v2, %v8858_v29 }
 0x95b   : > { %v3764_v35 = vmul.f32 %v3740_v56, %v8900_v40  ;;  %v3766_v4 = vmul.f32 %v3742_v18, %v8903_v17  ;;  %7616 = vtanh.f32 %v3824_v16  ;;  %v3826_v1 = vmul.f32 0.7978846, %v3802_v27 }
 0x95c   : > { %v3763_v43 = vmul.f32 %v3739_v41, %v8888_v44  ;;  %v3765_v49 = vmul.f32 %v3741_v50, %v8891_v25  ;;  %v3799_v30 = vadd.f32 %v3775_v13, %v8829_v45  ;;  %7618 = vtanh.f32 %v3828_v62 }
 0x95d   : > { %v3788_v26 = vmul.f32 %v3764_v35, %v8900_v40  ;;  %v3790_v52 = vmul.f32 %v3766_v4, %v8903_v17  ;;  %v3830_v10 = vmul.f32 0.7978846, %v3806_v3  ;;  %v3803_v28 = vadd.f32 %v3779_v14, %v8846_v60 }
 0x95e   : > { %7620 = vtanh.f32 %v3826_v1  ;;  %v3823_v39 = vmul.f32 0.7978846, %v3799_v30  ;;  %v3801_v48 = vadd.f32 %v3777_v0, %v8832_v54  ;;  %v3805_v59 = vadd.f32 %v3781_v61, %v8849_v38 }
 0x95f   : > { %v3783_v7 = vmul.f32 %v3759_v53, %v8866_v19  ;;  %v3785_v11 = vmul.f32 %v3761_v34, %v8870_v42  ;;  %7622 = vtanh.f32 %v3830_v10  ;;  %v3827_v47 = vmul.f32 0.7978846, %v3803_v28 }
 0x960   : > { %7624 = vtanh.f32 %v3823_v39  ;;  %v3825_v13 = vmul.f32 0.7978846, %v3801_v48  ;;  %v3829_v2 = vmul.f32 0.7978846, %v3805_v59  ;;  %v3808_v41 = vadd.f32 %v3784_v51, %v8873_v5  ;;  %v7412_v48 = vld [vmem:[%s9384_s16 + $0x18] sm:$0xff]  }
 0x961   : > { %v3787_v37 = vmul.f32 %v3763_v43, %v8888_v44  ;;  %v3789_v14 = vmul.f32 %v3765_v49, %v8891_v25  ;;  %7626 = vtanh.f32 %v3827_v47  ;;  %v3812_v0 = vadd.f32 %v3788_v26, %v8900_v40  ;;  %6827 = vmatpush3.bf16.msra.mxu1 %v7412_v48 }
 0x962   : > { %7628 = vtanh.f32 %v3825_v13  ;;  %v3832_v61 = vmul.f32 0.7978846, %v3808_v41  ;;  %v3810_v53 = vadd.f32 %v3786_v22, %v8876_v21  ;;  %v3814_v50 = vadd.f32 %v3790_v52, %v8903_v17  ;;  %6828 = vmatprep.subr.bf16.mxu1 %v7742_v8 }
 0x963   : > { %7630 = vtanh.f32 %v3829_v2  ;;  %v3836_v56 = vmul.f32 0.7978846, %v3812_v0  ;;  %v3807_v15 = vadd.f32 %v3783_v7, %v8866_v19  ;;  %v3811_v16 = vadd.f32 %v3787_v37, %v8888_v44 }
 0x964   : > { %7632 = vtanh.f32 %v3832_v61  ;;  %v3834_v18 = vmul.f32 0.7978846, %v3810_v53  ;;  %v3838_v34 = vmul.f32 0.7978846, %v3814_v50  ;;  %v3809_v51 = vadd.f32 %v3785_v11, %v8870_v42 }
 0x965   : > { %7634 = vtanh.f32 %v3836_v56  ;;  %v3831_v27 = vmul.f32 0.7978846, %v3807_v15  ;;  %v3813_v35 = vadd.f32 %v3789_v14, %v8891_v25  ;;  %v3835_v22 = vmul.f32 0.7978846, %v3811_v16 }
 0x966   : > { %7636 = vtanh.f32 %v3834_v18  ;;  %v3833_v62 = vmul.f32 0.7978846, %v3809_v51  ;;  %v3704_v26 = vmul.f32 0.5, %v8836_v57  ;;  %v3708_v30 = vmul.f32 0.5, %v8855_v24 }
 0x967   : > { %7638 = vtanh.f32 %v3838_v34  ;;  %v3837_v3 = vmul.f32 0.7978846, %v3813_v35  ;;  %v3706_v28 = vmul.f32 0.5, %v8839_v12  ;;  %v3710_v47 = vmul.f32 0.5, %v8858_v29 }
 0x968   : > { %v7617_v4 = vpop.eup %7616  ;;  %7640 = vtanh.f32 %v3831_v27  ;;  %v3703_v41 = vmul.f32 0.5, %v8829_v45  ;;  %v3707_v57 = vmul.f32 0.5, %v8846_v60  ;;  %v3705_v50 = vmul.f32 0.5, %v8832_v54  ;;  %v7692_v27 = vld [vmem:[%s7953_s7 + $0x28] sm:$0xff] }
 0x969   : > { %v3872_v1 = vadd.f32 1.0, %v7617_v4  ;;  %7642 = vtanh.f32 %v3835_v22  ;;  %v7619_v43 = vpop.eup %7618  ;;  %v3709_v29 = vmul.f32 0.5, %v8849_v38  ;;  %v4301_v51 = vpack.c.bf16 %v7692_v27, %v7692_v27 }
 0x96a   : > { %7644 = vtanh.f32 %v3833_v62  ;;  %v3876_v52 = vadd.f32 1.0, %v7619_v43  ;;  %v3712_v35 = vmul.f32 0.5, %v8873_v5  ;;  %v3716_v22 = vmul.f32 0.5, %v8900_v40 }
 0x96b   : > { %v7621_v49 = vpop.eup %7620  ;;  %7646 = vtanh.f32 %v3837_v3  ;;  %v3896_v7 = vmul.f32 %v3872_v1, %v3704_v26 }
 0x96c   : > { %v7623_v10 = vpop.eup %7622  ;;  %v3874_v39 = vadd.f32 1.0, %v7621_v49  ;;  %v3900_v11 = vmul.f32 %v3876_v52, %v3708_v30  ;;  %v7693_v49 = vld [vmem:[%s7953_s7 + $0x10] sm:$0xff]  ;;  %v3714_v30 = vmul.f32 0.5, %v8876_v21  ;;  %v3718_v52 = vmul.f32 0.5, %v8903_v17 }
 0x96d   : > { %v7625_v59 = vpop.eup %7624  ;;  %v3878_v13 = vadd.f32 1.0, %v7623_v10  ;;  %v4300_v26 = vpack.c.bf16 %v7693_v49, %v7693_v49 }
 0x96e   : > { %v7627_v2 = vpop.eup %7626  ;;  %v3871_v37 = vadd.f32 1.0, %v7625_v59  ;;  %v3916_v14 = vpack.c.bf16 %v3900_v11, %v3896_v7  ;;  %v3898_v0 = vmul.f32 %v3874_v39, %v3706_v28  ;;  %v7413_v28 = vld [vmem:[%s9384_s16 + $0x10] sm:$0xff]   ;;  %v4328_v11 = vunpack.c.l.b16 %v4301_v51 }
 0x96f   : > { %v7629_v24 = vpop.eup %7628  ;;  %v3902_v12 = vmul.f32 %v3878_v13, %v3710_v47  ;;  %v3875_v61 = vadd.f32 1.0, %v7627_v2  ;;  %v3711_v47 = vmul.f32 0.5, %v8866_v19  ;;  %v3715_v13 = vmul.f32 0.5, %v8888_v44  ;;  %6829 = vmatpush3.bf16.msra.mxu1 %v7413_v28  ;;  %v7414_v19 = vld [vmem:[%s9384_s16 + $0x8] sm:$0xff]  }
 0x970   : > { %v7631_v53 = vpop.eup %7630  ;;  %v3873_v56 = vadd.f32 1.0, %v7629_v24  ;;  %4226 = vmatprep.mubr.bf16.mxu1 %v3916_v14  ;;  %v3895_v60 = vmul.f32 %v3871_v37, %v3703_v41  ;;  %6830 = vmatprep.subr.bf16.mxu1 %v7742_v8  ;;  %v3713_v14 = vmul.f32 0.5, %v8870_v42 }
 0x971   : > { %v7633_v18 = vpop.eup %7632  ;;  %v3918_v45 = vpack.c.bf16 %v3902_v12, %v3898_v0  ;;  %v3899_v34 = vmul.f32 %v3875_v61, %v3707_v57  ;;  %v3877_v15 = vadd.f32 1.0, %v7631_v53  ;;  %v3717_v0 = vmul.f32 0.5, %v8891_v25  ;;  %v7694_v25 = vld [vmem:[%s7953_s7] sm:$0xff] }
 0x972   : > { %v7635_v16 = vpop.eup %7634  ;;  %v3880_v4 = vadd.f32 1.0, %v7633_v18  ;;  %v3897_v62 = vmul.f32 %v3873_v56, %v3705_v50  ;;  %v4329_v56 = vrot.slane %v4328_v11, 7  ;;  %v7415_v18 = vld [vmem:[%s9384_s16] sm:$0xff]  }
 0x973   : > { %v7637_v54 = vpop.eup %7636  ;;  %4281 = vmatprep.mubr.bf16.mxu0 %v3918_v45  ;;  %v3915_v38 = vpack.c.bf16 %v3899_v34, %v3895_v60  ;;  %v3901_v3 = vmul.f32 %v3877_v15, %v3709_v29  ;;  %v3884_v1 = vadd.f32 1.0, %v7635_v16  ;;  %v4327_v29 = vunpack.c.l.b16 %v4300_v26  ;;  %6831 = vmatpush3.bf16.msra.mxu1 %v7414_v19  ;;  %v7695_v34 = vld [vmem:[%s7953_s7 + $0x8] sm:$0xff] }
 0x974   : > { %v7639_v43 = vpop.eup %7638  ;;  %v3882_v10 = vadd.f32 1.0, %v7637_v54  ;;  %v3904_v40 = vmul.f32 %v3880_v4, %v3712_v35  ;;  %6832 = vmatprep.subr.bf16.mxu1 %v7742_v8  ;;  %v4447_v15 = vpack.c.bf16 %v7695_v34, %v7694_v25  ;;  %v7696_v35 = vld [vmem:[%s7953_s7 + $0x18] sm:$0xff]  ;;  %v4620_v54 = vld [vmem:[%s1122_s2] sm:$0xff] }
 0x975   : > { %v7641_v39 = vpop.eup %7640  ;;  %4227 = vmatmul.mubr.bf16.gmra.mxu1 %v3915_v38  ;;  %v3917_v5 = vpack.c.bf16 %v3901_v3, %v3897_v62  ;;  %v3908_v48 = vmul.f32 %v3884_v1, %v3716_v22  ;;  %v3886_v59 = vadd.f32 1.0, %v7639_v43  ;;  %v4331_v27 = vsel %vm4330_vm6, %v4329_v56, %v4327_v29  ;;  %v7697_v22 = vld [vmem:[%s7953_s7 + $0x20] sm:$0xff]  ;;  %v4621_v38 = vld [vmem:[%s1122_s2 + $0x8] sm:$0xff]  ;;  %v4622_v62 = vld [vmem:[%s1122_s2 + $0x10] sm:$0xff]  ;;  %s9389_s7 = sld [smem:[#allocation9_spill]] }
 0x976   : > { %v7643_v7 = vpop.eup %7642  ;;  %v3879_v2 = vadd.f32 1.0, %v7641_v39  ;;  %v3906_v41 = vmul.f32 %v3882_v10, %v3714_v30  ;;  %v4332_v51 = vpack.c.b16 %v4331_v27, %v4331_v27  ;;  %v4448_v4 = vpack.c.bf16 %v7697_v22, %v7696_v35  ;;  %v4623_v1 = vld [vmem:[%s1122_s2 + $0x18] sm:$0xff]  ;;  %v5392_v43 = vld [vmem:[%s7926_s12 + $0x8] sm:$0xff]  ;;  %s9395_s2 = sld [smem:[#allocation16_spill]] }
 0x977   : > { %v7645_v21 = vpop.eup %7644  ;;  %4282 = vmatmul.mubr.bf16.gmra.mxu0 %v3917_v5  ;;  %v3920_v17 = vpack.c.bf16 %v3908_v48, %v3904_v40  ;;  %v3910_v57 = vmul.f32 %v3886_v59, %v3718_v52  ;;  %v3883_v37 = vadd.f32 1.0, %v7643_v7  ;;  %6833 = vmatpush3.bf16.msra.mxu1 %v7415_v18  ;;  %v4640_v3 = vpack.c.bf16 %v4621_v38, %v4620_v54  ;;  %v6220_v52 = vld [vmem:[%s9387_s23] ss:$0 sm:$0xff]  ;;  %s9392_s23 = sld [smem:[#allocation6_spill]] }
 0x978   : > { %v7647_v24 = vpop.eup %7646  ;;  %v3881_v12 = vadd.f32 1.0, %v7645_v21  ;;  %v3903_v61 = vmul.f32 %v3879_v2, %v3711_v47  ;;  %6858 = vmatprep.subr.bf16.mxu1 %v8733_v9  ;;  %v4641_v26 = vpack.c.bf16 %v4623_v1, %v4622_v62  ;;  %5406 = vperm.xlu1 %7279, %v5392_v43   ;;  %v6264_v1 = vld [vmem:[%s9388_s0] ss:$0 sm:$0xff]  ;;  %s9396_s0 = sld [smem:[#allocation20_spill]] }
 0x979   : > { %4233 = vmatprep.mubr.bf16.mxu1 %v3920_v17  ;;  %v3922_v44 = vpack.c.bf16 %v3910_v57, %v3906_v41  ;;  %v3907_v53 = vmul.f32 %v3883_v37, %v3715_v13  ;;  %v3885_v50 = vadd.f32 1.0, %v7647_v24 }
 0x97a   : > { %v3905_v60 = vmul.f32 %v3881_v12, %v3713_v14 }
 0x97b   : > { %4288 = vmatprep.mubr.bf16.mxu0 %v3922_v44  ;;  %v3919_v45 = vpack.c.bf16 %v3907_v53, %v3903_v61  ;;  %v3909_v42 = vmul.f32 %v3885_v50, %v3717_v0 }
 0x97d   : > { %4234 = vmatmul.mubr.bf16.gmra.mxu1 %v3919_v45  ;;  %v3921_v16 = vpack.c.bf16 %v3909_v42, %v3905_v60 }
 0x97e   : > { %6834 = vmatprep.mubr.msk.bf16.mxu1 %vm7744_vm0, %v7742_v8 }
 0x97f   : > { %4289 = vmatmul.mubr.bf16.gmra.mxu0 %v3921_v16 }
 0x980   : > { %6854 = vmatprep.mubr.bf16.mxu0 %v4447_v15 }
 0x985   : > { %6835 = vmatmul.mubr.bf16.vlgmr.msra.gmra.mxu1 %v4332_v51 }
 0x986   : > { %6859 = vmatpush3.bf16.msra.mxu1 %v8733_v9  ;;  %v8990_v9 = vld [vmem:[%s9385_s18 + $0x38] sm:$0xff]  }
 0x987   : > { %6855 = vmatmul.mubr.bf16.vlgmr.msra.gmra.mxu0 %v4448_v4  ;;  %6860 = vmatprep.subr.bf16.mxu1 %v8787_v46 }
 0x988   : > { %6878 = vmatprep.subr.bf16.mxu0 %v8990_v9  ;;  %6894 = vmatprep.mubr.bf16.mxu0 %v4640_v3 }
 0x989   : > { %6879 = vmatpush3.bf16.msra.mxu0 %v8990_v9 }
 0x98a   : > { %6861 = vmatpush3.bf16.msra.mxu1 %v8787_v46  ;;  %v8996_v46 = vld [vmem:[%s9385_s18 + $0x30] sm:$0xff]  }
 0x98b   : > { %6862 = vmatprep.subr.bf16.mxu1 %v8794_v6  ;;  %6880 = vmatprep.subr.bf16.mxu0 %v8996_v46 }
 0x98d   : > { %6881 = vmatpush3.bf16.msra.mxu0 %v8996_v46 }
 0x98e   : > { %6863 = vmatpush3.bf16.msra.mxu1 %v8794_v6  ;;  %v9001_v6 = vld [vmem:[%s9385_s18 + $0x28] sm:$0xff]  }
 0x98f   : > { %6864 = vmatprep.subr.bf16.mxu1 %v8801_v23  ;;  %6882 = vmatprep.subr.bf16.mxu0 %v9001_v6 }
 0x991   : > { %6883 = vmatpush3.bf16.msra.mxu0 %v9001_v6 }
 0x992   : > { %6865 = vmatpush3.bf16.msra.mxu1 %v8801_v23  ;;  %v9006_v23 = vld [vmem:[%s9385_s18 + $0x20] sm:$0xff]  }
 0x993   : > { %6866 = vmatprep.subr.bf16.mxu1 %v8808_v58  ;;  %6884 = vmatprep.subr.bf16.mxu0 %v9006_v23 }
 0x995   : > { %6885 = vmatpush3.bf16.msra.mxu0 %v9006_v23 }
 0x996   : > { %6867 = vmatpush3.bf16.msra.mxu1 %v8808_v58  ;;  %v9011_v58 = vld [vmem:[%s9385_s18 + $0x18] sm:$0xff]  }
 0x997   : > { %6868 = vmatprep.subr.bf16.mxu1 %v8814_v63  ;;  %6886 = vmatprep.subr.bf16.mxu0 %v9011_v58 }
 0x999   : > { %6887 = vmatpush3.bf16.msra.mxu0 %v9011_v58 }
 0x99a   : > { %6869 = vmatpush3.bf16.msra.mxu1 %v8814_v63  ;;  %v9016_v63 = vld [vmem:[%s9385_s18 + $0x10] sm:$0xff]  }
 0x99b   : > { %6870 = vmatprep.subr.bf16.mxu1 %v8819_v31  ;;  %6888 = vmatprep.subr.bf16.mxu0 %v9016_v63 }
 0x99d   : > { %6889 = vmatpush3.bf16.msra.mxu0 %v9016_v63 }
 0x99e   : > { %6871 = vmatpush3.bf16.msra.mxu1 %v8819_v31  ;;  %v9021_v31 = vld [vmem:[%s9385_s18 + $0x8] sm:$0xff]  }
 0x99f   : > { %6872 = vmatprep.subr.bf16.mxu1 %v8824_v36  ;;  %6890 = vmatprep.subr.bf16.mxu0 %v9021_v31 }
 0x9a1   : > { %6891 = vmatpush3.bf16.msra.mxu0 %v9021_v31 }
 0x9a2   : > { %6873 = vmatpush3.bf16.msra.mxu1 %v8824_v36  ;;  %v9026_v36 = vld [vmem:[%s9385_s18] sm:$0xff]  }
 0x9a3   : > { %6898 = vmatprep.subr.bf16.mxu1 %v8990_v9  ;;  %6892 = vmatprep.subr.bf16.mxu0 %v9026_v36 }
 0x9a5   : > { %6893 = vmatpush3.bf16.msra.mxu0 %v9026_v36 }
 0x9a6   : > { %6918 = vmatprep.subr.bf16.mxu0 %v8990_v9 }
 0x9a8   : > { %6895 = vmatmul.mubr.bf16.vlgmr.msra.gmra.mxu0 %v4641_v26 }
 0x9a9   : > { %6919 = vmatpush3.bf16.msra.mxu0 %v8990_v9 }
 0x9aa   : > { %6920 = vmatprep.subr.bf16.mxu0 %v8996_v46 }
 0x9ad   : > { %6921 = vmatpush3.bf16.msra.mxu0 %v8996_v46 }
 0x9ae   : > { %6922 = vmatprep.subr.bf16.mxu0 %v9001_v6 }
 0x9b1   : > { %6923 = vmatpush3.bf16.msra.mxu0 %v9001_v6 }
 0x9b2   : > { %6924 = vmatprep.subr.bf16.mxu0 %v9006_v23 }
 0x9b5   : > { %6925 = vmatpush3.bf16.msra.mxu0 %v9006_v23 }
 0x9b6   : > { %6926 = vmatprep.subr.bf16.mxu0 %v9011_v58 }
 0x9b9   : > { %6927 = vmatpush3.bf16.msra.mxu0 %v9011_v58 }
 0x9ba   : > { %6928 = vmatprep.subr.bf16.mxu0 %v9016_v63 }
 0x9bd   : > { %6929 = vmatpush3.bf16.msra.mxu0 %v9016_v63 }
 0x9be   : > { %6930 = vmatprep.subr.bf16.mxu0 %v9021_v31 }
 0x9c1   : > { %6931 = vmatpush3.bf16.msra.mxu0 %v9021_v31 }
 0x9c2   : > { %6932 = vmatprep.subr.bf16.mxu0 %v9026_v36 }
 0x9c5   : > { %6933 = vmatpush3.bf16.msra.mxu0 %v9026_v36 }
 0x9c6   : > { %6938 = vmatprep.subr.bf16.mxu0 %v7742_v8 }
 0x9ec   : > { %v6456_v49 = vpop.f32.mrf.mxu1 }
 0x9ed   : > { %v6490_v30 = vpop.f32.mrf.mxu0 }
 0x9ee   : > { %v6457_v10 = vpop.f32.mrf.mxu1 }
 0x9ef   : > { %v6458_v28 = vadd.f32 %v6457_v10, %v6456_v49  ;;  %v6491_v39 = vpop.f32.mrf.mxu0  ;;  %v6253_v10 = vld [vmem:[%s9389_s7] ss:$0 sm:$0xff]  ;;  %s9397_s7 = sld [smem:[#allocation13_spill]] }
 0x9f0   : > { %v6459_v5 = vpop.f32.mrf.mxu1  ;;  %v6492_v7 = vadd.f32 %v6491_v39, %v6490_v30 }
 0x9f1   : > { %v4221_v40 = vadd.f32 %v6458_v28, %v6220_v52  ;;  %v6493_v48 = vpop.f32.mrf.mxu0 }
 0x9f2   : > { %v6460_v59 = vpop.f32.mrf.mxu1 }
 0x9f3   : > { %v6461_v11 = vadd.f32 %v6460_v59, %v6459_v5  ;;  %v6494_v47 = vpop.f32.mrf.mxu0  ;;  %v4276_v13 = vadd.f32 %v6492_v7, %v4221_v40 }
 0x9f4   : > { %v6495_v21 = vadd.f32 %v6494_v47, %v6493_v48  ;;  %v6262_v47 = vld [vmem:[%s9390_s10] ss:$0 sm:$0xff]  ;;  %s9398_s10 = sld [smem:[#allocation17_spill]] }
 0x9f5   : > { %v4224_v2 = vadd.f32 %v6461_v11, %v6220_v52  ;;  %v4296_v41 = vadd.f32 %v4276_v13, %v8612_v20 }
 0x9f7   : > { %v4279_v17 = vadd.f32 %v6495_v21, %v4224_v2 }
 0x9f9   : > { %v4297_v57 = vadd.f32 %v4279_v17, %v8616_v55 }
 0x9fb   : > { %v4569_v37 = vpack.c.bf16 %v4297_v57, %v4296_v41 }
 0x9fd   : > { %6874 = vmatprep.mubr.bf16.mxu1 %v4569_v37 }
 0xa35   : > { %v6462_v20 = vpop.f32.mrf.mxu1 }
 0xa37   : > { %v6496_v55 = vpop.f32.mrf.mxu0  ;;  %v6463_v24 = vpop.f32.mrf.mxu1 }
 0xa39   : > { %v6497_v14 = vpop.f32.mrf.mxu0  ;;  %v6465_v0 = vpop.f32.mrf.mxu1 }
 0xa3b   : > { %v6499_v12 = vpop.f32.mrf.mxu0  ;;  %v6466_v19 = vpop.f32.mrf.mxu1 }
 0xa3c   : > { %v6467_v44 = vadd.f32 %v6466_v19, %v6465_v0  ;;  %v9095_v19 = vld [vmem:[%s9392_s23] ss:$0 sm:$0xff]  ;;  %s9401_s23 = sld [smem:[#allocation18_spill]] }
 0xa3d   : > { %v6500_v61 = vpop.f32.mrf.mxu0  ;;  %v6468_v53 = vpop.f32.mrf.mxu1 }
 0xa3e   : > { %v4231_v50 = vadd.f32 %v6467_v44, %v6220_v52  ;;  %v6501_v18 = vadd.f32 %v6500_v61, %v6499_v12 }
 0xa3f   : > { %v6502_v29 = vpop.f32.mrf.mxu0  ;;  %v6469_v56 = vpop.f32.mrf.mxu1 }
 0xa40   : > { %v6470_v45 = vadd.f32 %v6469_v56, %v6468_v53  ;;  %v4286_v25 = vadd.f32 %v6501_v18, %v4231_v50  ;;  %v9099_v53 = vld [vmem:[%s9393_s26] ss:$0 sm:$0xff]  ;;  %s9402_s26 = sld [smem:[#allocation19_spill]] }
 0xa41   : > { %v6503_v60 = vpop.f32.mrf.mxu0  ;;  %v6471_v42 = vpop.f32.mrf.mxu1 }
 0xa42   : > { %v4236_v34 = vadd.f32 %v6470_v45, %v6220_v52  ;;  %v6504_v15 = vadd.f32 %v6503_v60, %v6502_v29  ;;  %v4298_v4 = vadd.f32 %v4286_v25, %v8624_v33 }
 0xa43   : > { %v6505_v16 = vpop.f32.mrf.mxu0  ;;  %v6472_v27 = vpop.f32.mrf.mxu1 }
 0xa44   : > { %v4291_v51 = vadd.f32 %v6504_v15, %v4236_v34 }
 0xa45   : > { %v6506_v35 = vpop.f32.mrf.mxu0  ;;  %v4416_v22 = vpop.f32.mrf.mxu1 }
 0xa46   : > { %v4299_v54 = vadd.f32 %v4291_v51, %v8628_v32  ;;  %v4417_v32 = vadd.f32 %v6253_v10, %v4416_v22 }
 0xa47   : > { %v6856_v38 = vpop.f32.mrf.mxu0  ;;  %v6836_v62 = vpop.f32.mrf.mxu1 }
 0xa48   : > { %v4570_v3 = vpack.c.bf16 %v4299_v54, %v4298_v4  ;;  %v4422_v59 = vmul.f32 0.5, %v4417_v32 }
 0xa49   : > { %v4554_v43 = vpop.f32.mrf.mxu0  ;;  %v4419_v49 = vpop.f32.mrf.mxu1 }
 0xa4a   : > { %6875 = vmatmul.mubr.bf16.vlgmr.msra.gmra.mxu1 %v4570_v3  ;;  %v9058_v52 = vadd.f32 %v6264_v1, %v4554_v43 }
 0xa4b   : > { %6899 = vmatpush3.bf16.msra.mxu1 %v8990_v9  ;;  %v6857_v26 = vpop.f32.mrf.mxu0  ;;  %v6837_v30 = vpop.f32.mrf.mxu1  ;;  %v4423_v9 = vmul.f32 0.044715, %v4417_v32 }
 0xa4c   : > { %6900 = vmatprep.subr.bf16.mxu1 %v8996_v46  ;;  %v9077_v48 = vadd.f32 %v6857_v26, %v6264_v1 }
 0xa4d   : > { %v4557_v28 = vpop.f32.mrf.mxu0  ;;  %v4424_v5 = vmul.f32 %v4423_v9, %v4417_v32 }
 0xa4e   : > { %v9061_v33 = vadd.f32 %v6264_v1, %v4557_v28 }
 0xa4f   : > { %6901 = vmatpush3.bf16.msra.mxu1 %v8996_v46  ;;  %v4425_v46 = vmul.f32 %v4424_v5, %v4417_v32 }
 0xa50   : > { %6902 = vmatprep.subr.bf16.mxu1 %v9001_v6  ;;  %v4765_v39 = vpack.c.bf16 %v9061_v33, %v9058_v52 }
 0xa51   : > { %v4426_v40 = vadd.f32 %v4425_v46, %v4417_v32 }
 0xa52   : > { %6914 = vmatprep.mubr.bf16.mxu1 %v4765_v39 }
 0xa53   : > { %6903 = vmatpush3.bf16.msra.mxu1 %v9001_v6  ;;  %v9075_v6 = vadd.f32 %v6856_v38, %v6264_v1 }
 0xa54   : > { %6904 = vmatprep.subr.bf16.mxu1 %v9006_v23 }
 0xa57   : > { %6905 = vmatpush3.bf16.msra.mxu1 %v9006_v23  ;;  %v4427_v23 = vmul.f32 0.7978846, %v4426_v40 }
 0xa58   : > { %6906 = vmatprep.subr.bf16.mxu1 %v9011_v58 }
 0xa59   : > { %7648 = vtanh.f32 %v4427_v23 }
 0xa5b   : > { %6907 = vmatpush3.bf16.msra.mxu1 %v9011_v58  ;;  %v4766_v58 = vpack.c.bf16 %v9077_v48, %v9075_v6 }
 0xa5c   : > { %6908 = vmatprep.subr.bf16.mxu1 %v9016_v63 }
 0xa5f   : > { %6909 = vmatpush3.bf16.msra.mxu1 %v9016_v63 }
 0xa60   : > { %6910 = vmatprep.subr.bf16.mxu1 %v9021_v31 }
 0xa63   : > { %6911 = vmatpush3.bf16.msra.mxu1 %v9021_v31  ;;  %v6263_v31 = vld [vmem:[%s9391_s11] ss:$0 sm:$0xff]  ;;  %s9399_s11 = sld [smem:[#allocation14_spill]] }
 0xa64   : > { %6912 = vmatprep.subr.bf16.mxu1 %v9026_v36 }
 0xa66   : > { %v7649_v63 = vpop.eup %7648 }
 0xa67   : > { %6913 = vmatpush3.bf16.msra.mxu1 %v9026_v36  ;;  %v4429_v7 = vadd.f32 1.0, %v7649_v63 }
 0xa68   : > { %v6896_v0 = vpop.f32.mrf.mxu0 }
 0xa69   : > { %v4430_v11 = vmul.f32 %v4429_v7, %v4422_v59  ;;  %v4748_v61 = vmul.f32 %v6896_v0, %v9095_v19 }
 0xa6a   : > { %6915 = vmatmul.mubr.bf16.vlgmr.msra.gmra.mxu1 %v4766_v58  ;;  %v4724_v12 = vpop.f32.mrf.mxu0 }
 0xa6b   : > { %v4438_v13 = vmul.f32 %v6262_v47, %v4430_v11  ;;  %v4746_v50 = vmul.f32 %v9095_v19, %v4724_v12  ;;  %v9104_v18 = vadd.f32 %v9099_v53, %v4748_v61 }
 0xa6c   : > { %v6897_v44 = vpop.f32.mrf.mxu0 }
 0xa6d   : > { %v4446_v2 = vadd.f32 %v6263_v31, %v4438_v13  ;;  %v4749_v56 = vmul.f32 %v6897_v44, %v9095_v19  ;;  %v9109_v25 = vadd.f32 %v9099_v53, %v4746_v50  ;;  %v4763_v51 = vmax.f32 %v9104_v18, 0.0 }
 0xa6e   : > { %v4727_v29 = vpop.f32.mrf.mxu0 }
 0xa6f   : > { %5999 = vst [vmem:[%s9089_s22] sm:$0x3] %v4446_v2  ;;  %v4747_v42 = vmul.f32 %v9095_v19, %v4727_v29  ;;  %v9116_v27 = vadd.f32 %v9099_v53, %v4749_v56  ;;  %v4761_v62 = vmax.f32 %v9109_v25, 0.0 }
 0xa71   : > { %v9125_v38 = vadd.f32 %v9099_v53, %v4747_v42  ;;  %v4764_v43 = vmax.f32 %v9116_v27, 0.0  ;;  %v5391_v42 = vld [vmem:[%s7926_s12] sm:$0xff] }
 0xa73   : > { %v4762_v28 = vmax.f32 %v9125_v38, 0.0 }
 0xb0a   : > { %v6876_v21 = vpop.f32.mrf.mxu1 }
 0xb0b   : > { %v4614_v55 = vadd.f32 %v6876_v21, %v6264_v1 }
 0xb0c   : > { %v4605_v36 = vpop.f32.mrf.mxu1 }
 0xb0d   : > { %v4606_v37 = vadd.f32 %v6264_v1, %v4605_v36 }
 0xb0e   : > { %v6877_v17 = vpop.f32.mrf.mxu1 }
 0xb0f   : > { %v4617_v41 = vadd.f32 %v6877_v17, %v6264_v1 }
 0xb10   : > { %v4608_v57 = vpop.f32.mrf.mxu1 }
 0xb11   : > { %v4609_v20 = vadd.f32 %v6264_v1, %v4608_v57  ;;  %v4829_v14 = vpack.c.bf16 %v4617_v41, %v4614_v55 }
 0xb13   : > { %v4828_v24 = vpack.c.bf16 %v4609_v20, %v4606_v37 }
 0xb15   : > { %6934 = vmatprep.mubr.bf16.mxu0 %v4828_v24 }
 0xb16   : > { %6935 = vmatmul.mubr.bf16.vlgmr.msra.gmra.mxu0 %v4829_v14 }
 0xb17   : > { %6954 = vmatprep.mubr.msk.bf16.mxu0 %vm7744_vm0, %v7742_v8 }
 0xb2a   : > { %v6916_v45 = vpop.f32.mrf.mxu1 }
 0xb2b   : > { %v4818_v60 = vmul.f32 %v6916_v45, %v9095_v19 }
 0xb2c   : > { %v4801_v34 = vpop.f32.mrf.mxu1 }
 0xb2d   : > { %v9112_v15 = vadd.f32 %v9099_v53, %v4818_v60  ;;  %v4816_v16 = vmul.f32 %v9095_v19, %v4801_v34 }
 0xb2e   : > { %v6917_v35 = vpop.f32.mrf.mxu1 }
 0xb2f   : > { %v4826_v22 = vmax.f32 %v9112_v15, 0.0  ;;  %v9121_v4 = vadd.f32 %v9099_v53, %v4816_v16  ;;  %v4819_v54 = vmul.f32 %v6917_v35, %v9095_v19 }
 0xb30   : > { %v4804_v3 = vpop.f32.mrf.mxu1 }
 0xb31   : > { %v4824_v1 = vmax.f32 %v9121_v4, 0.0  ;;  %v9131_v49 = vadd.f32 %v9099_v53, %v4819_v54  ;;  %v4817_v26 = vmul.f32 %v9095_v19, %v4804_v3  ;;  %v4893_v30 = vmul.f32 %v4826_v22, %v4763_v51 }
 0xb33   : > { %v4827_v10 = vmax.f32 %v9131_v49, 0.0  ;;  %v9141_v32 = vadd.f32 %v9099_v53, %v4817_v26  ;;  %v4891_v39 = vmul.f32 %v4824_v1, %v4761_v62 }
 0xb35   : > { %v4894_v9 = vmul.f32 %v4827_v10, %v4764_v43  ;;  %v4825_v5 = vmax.f32 %v9141_v32, 0.0 }
 0xb37   : > { %v4902_v46 = vadd.f32 %v4894_v9, %v4893_v30  ;;  %v4892_v40 = vmul.f32 %v4825_v5, %v4762_v28 }
 0xb39   : > { %v4903_v23 = vrot.slane %v4902_v46, 4  ;;  %v4895_v58 = vadd.f32 %v4892_v40, %v4891_v39 }
 0xb3b   : > { %v4904_v63 = vadd.f32 %v4903_v23, %v4902_v46  ;;  %v4896_v59 = vrot.slane %v4895_v58, 4 }
 0xb3d   : > { %v4905_v7 = vrot.slane %v4904_v63, 2  ;;  %v4897_v11 = vadd.f32 %v4896_v59, %v4895_v58 }
 0xb3f   : > { %v4906_v47 = vadd.f32 %v4905_v7, %v4904_v63  ;;  %v4898_v13 = vrot.slane %v4897_v11, 2 }
 0xb41   : > { %v4907_v31 = vrot.slane %v4906_v47, 1  ;;  %v4899_v2 = vadd.f32 %v4898_v13, %v4897_v11 }
 0xb43   : > { %v4908_v21 = vadd.f32 %v4907_v31, %v4906_v47  ;;  %v4900_v36 = vrot.slane %v4899_v2, 1 }
 0xb45   : > { %v4910_v17 = vadd.f32 1e-05, %v4908_v21  ;;  %v4901_v41 = vadd.f32 %v4900_v36, %v4899_v2 }
 0xb47   : > { %v4909_v57 = vadd.f32 1e-05, %v4901_v41  ;;  %7650 = vrsqrt.f32 %v4910_v17  ;;  %vm4920_vm7 = vcmp.eq.f32.partialorder %v4910_v17, inf  ;;  %v4923_v20 = vand.u32 2147483648, %v4910_v17 }
 0xb48   : > { %vm4922_vm8 = vcmp.eq.f32.partialorder %v4910_v17, 0.0 }
 0xb49   : > { %7652 = vrsqrt.f32 %v4909_v57  ;;  %vm4913_vm9 = vcmp.eq.f32.partialorder %v4909_v57, inf  ;;  %v4916_v14 = vand.u32 2147483648, %v4909_v57  ;;  %vm4915_vm10 = vcmp.eq.f32.partialorder %v4909_v57, 0.0 }
 0xb54   : > { %v7651_v37 = vpop.eup %7650 }
 0xb55   : > { %v4919_v55 = vmul.f32 %v7651_v37, %v4910_v17 }
 0xb56   : > { %v7653_v24 = vpop.eup %7652 }
 0xb57   : > { %v4912_v0 = vmul.f32 %v7653_v24, %v4909_v57  ;;  %v4921_v12 = vsel %vm4920_vm7, %v4910_v17, %v4919_v55 }
 0xb58   : > { %v9156_v44 = vsel %vm4922_vm8, %v4923_v20, %v4921_v12 }
 0xb59   : > { %v4914_v61 = vsel %vm4913_vm9, %v4909_v57, %v4912_v0  ;;  %v4926_v50 = vmul.f32 %v9156_v44, %v9156_v44 }
 0xb5a   : > { %v9160_v29 = vsel %vm4915_vm10, %v4916_v14, %v4914_v61 }
 0xb5b   : > { %v4925_v56 = vmul.f32 %v9160_v29, %v9160_v29 }
 0xb5d   : > { %v4929_v45 = vsel %vm4330_vm6, %v4926_v50, %v4925_v56 }
 0xb5e   : > { %v4932_v60 = vsel %vm4931_vm11, %v4929_v45, 0.0 }
 0xb5f   : > { %4933 = vadd.xlane.f32.xlu0 %v4932_v60 }
 0xb75   : > { %5401 = vperm.xlu0 %7278, %v5391_v42  }
 0xbd6   : > { %v6936_v34 = vpop.f32.mrf.mxu0 }
 0xbd7   : > { %v4881_v16 = vmul.f32 %v6936_v34, %v9095_v19 }
 0xbd8   : > { %v4864_v35 = vpop.f32.mrf.mxu0 }
 0xbd9   : > { %v4885_v54 = vadd.f32 %v9099_v53, %v4881_v16  ;;  %v4879_v3 = vmul.f32 %v9095_v19, %v4864_v35 }
 0xbda   : > { %v6937_v26 = vpop.f32.mrf.mxu0 }
 0xbdb   : > { %v4882_v30 = vmul.f32 %v6937_v26, %v9095_v19  ;;  %v4883_v39 = vadd.f32 %v9099_v53, %v4879_v3  ;;  %v4889_v46 = vmax.f32 %v4885_v54, 0.0 }
 0xbdc   : > { %v4867_v9 = vpop.f32.mrf.mxu0 }
 0xbdd   : > { %v4886_v40 = vadd.f32 %v9099_v53, %v4882_v30  ;;  %v4880_v23 = vmul.f32 %v9095_v19, %v4867_v9  ;;  %v4887_v63 = vmax.f32 %v4883_v39, 0.0  ;;  %v4953_v7 = vmul.f32 %v4889_v46, %v4763_v51 }
 0xbde   : > { %v5012_v11 = vmul.f32 %v4889_v46, %v4826_v22 }
 0xbdf   : > { %v4890_v58 = vmax.f32 %v4886_v40, 0.0  ;;  %v4884_v59 = vadd.f32 %v9099_v53, %v4880_v23  ;;  %v4951_v19 = vmul.f32 %v4887_v63, %v4761_v62  ;;  %v5010_v53 = vmul.f32 %v4887_v63, %v4824_v1 }
 0xbe1   : > { %v4954_v47 = vmul.f32 %v4890_v58, %v4764_v43  ;;  %v5013_v13 = vmul.f32 %v4890_v58, %v4827_v10  ;;  %v4888_v31 = vmax.f32 %v4884_v59, 0.0 }
 0xbe3   : > { %v4962_v2 = vadd.f32 %v4954_v47, %v4953_v7  ;;  %v5021_v21 = vadd.f32 %v5013_v13, %v5012_v11  ;;  %v4952_v18 = vmul.f32 %v4888_v31, %v4762_v28  ;;  %v5011_v15 = vmul.f32 %v4888_v31, %v4825_v5 }
 0xbe5   : > { %v4963_v27 = vrot.slane %v4962_v2, 4  ;;  %v5022_v51 = vrot.slane %v5021_v21, 4  ;;  %v4955_v22 = vadd.f32 %v4952_v18, %v4951_v19  ;;  %v5014_v43 = vadd.f32 %v5011_v15, %v5010_v53 }
 0xbe7   : > { %v4964_v49 = vadd.f32 %v4963_v27, %v4962_v2  ;;  %v5023_v10 = vadd.f32 %v5022_v51, %v5021_v21  ;;  %v4956_v36 = vrot.slane %v4955_v22, 4  ;;  %v5015_v17 = vrot.slane %v5014_v43, 4  ;;  %v5393_v51 = vld [vmem:[%s7926_s12 + $0x10] sm:$0xff] }
 0xbe9   : > { %v4965_v41 = vrot.slane %v4964_v49, 2  ;;  %v5024_v25 = vrot.slane %v5023_v10, 2  ;;  %v4957_v62 = vadd.f32 %v4956_v36, %v4955_v22  ;;  %v5016_v57 = vadd.f32 %v5015_v17, %v5014_v43  ;;  %v5394_v22 = vld [vmem:[%s7926_s12 + $0x18] sm:$0xff]  ;;  %v5395_v43 = vld [vmem:[%s7931_s9] sm:$0xff]  ;;  %v5397_v17 = vld [vmem:[%s7931_s9 + $0x10] sm:$0xff] }
 0xbea   : > { %v7425_v36 = vld [vmem:[%s9394_s1 + $0x38] sm:$0xff]  }
 0xbeb   : > { %v4966_v4 = vadd.f32 %v4965_v41, %v4964_v49  ;;  %v5025_v1 = vadd.f32 %v5024_v25, %v5023_v10  ;;  %v4958_v37 = vrot.slane %v4957_v62, 2  ;;  %v5017_v38 = vrot.slane %v5016_v57, 2  ;;  %v5396_v49 = vld [vmem:[%s7931_s9 + $0x8] sm:$0xff]  ;;  %v7424_v10 = vld [vmem:[%s9394_s1 + $0x78] sm:$0xff]   ;;  %v7426_v41 = vld [vmem:[%s9394_s1 + $0x70] sm:$0xff]  }
 0xbec   : > { %6567 = vmatprep.subr.bf16.mxu1 %v7424_v10  ;;  %v7427_v25 = vld [vmem:[%s9394_s1 + $0xb8] sm:$0xff]  }
 0xbed   : > { %v4967_v28 = vrot.slane %v4966_v4, 1  ;;  %v5026_v20 = vrot.slane %v5025_v1, 1  ;;  %v4959_v32 = vadd.f32 %v4958_v37, %v4957_v62  ;;  %v5018_v5 = vadd.f32 %v5017_v38, %v5016_v57  ;;  %6568 = vmatpush3.bf16.msra.mxu1 %v7425_v36  ;;  %v7428_v62 = vld [vmem:[%s9394_s1 + $0x30] sm:$0xff]   ;;  %v7429_v57 = vld [vmem:[%s9394_s1 + $0x68] sm:$0xff]   ;;  %6939 = vmatpush3.bf16.msra.mxu0 %v7427_v25  ;;  %v7432_v38 = vld [vmem:[%s9394_s1 + $0x60] sm:$0xff]  }
 0xbee   : > { %6569 = vmatprep.subr.bf16.mxu1 %v7426_v41  ;;  %6940 = vmatprep.subr.bf16.mxu0 %v7742_v8  ;;  %v7431_v37 = vld [vmem:[%s9394_s1 + $0x28] sm:$0xff]  }
 0xbef   : > { %v4968_v55 = vadd.f32 %v4967_v28, %v4966_v4  ;;  %v5027_v24 = vadd.f32 %v5026_v20, %v5025_v1  ;;  %v4960_v14 = vrot.slane %v4959_v32, 1  ;;  %v5019_v0 = vrot.slane %v5018_v5, 1  ;;  %v5398_v4 = vld [vmem:[%s7931_s9 + $0x18] sm:$0xff]  ;;  %v7430_v1 = vld [vmem:[%s9394_s1 + $0xb0] sm:$0xff]   ;;  %v7433_v28 = vld [vmem:[%s9394_s1 + $0xa8] sm:$0xff]  }
 0xbf0   : > { %v7434_v20 = vld [vmem:[%s9394_s1 + $0x20] sm:$0xff]  }
 0xbf1   : > { %v4970_v12 = vadd.f32 1e-05, %v4968_v55  ;;  %v5029_v61 = vadd.f32 1e-05, %v5027_v24  ;;  %v4961_v50 = vadd.f32 %v4960_v14, %v4959_v32  ;;  %v5020_v56 = vadd.f32 %v5019_v0, %v5018_v5  ;;  %6570 = vmatpush3.bf16.msra.mxu1 %v7428_v62  ;;  %6941 = vmatpush3.bf16.msra.mxu0 %v7430_v1  ;;  %v7435_v32 = vld [vmem:[%s9394_s1 + $0x58] sm:$0xff]   ;;  %v7436_v5 = vld [vmem:[%s9394_s1 + $0xa0] sm:$0xff]  }
 0xbf2   : > { %6571 = vmatprep.subr.bf16.mxu1 %v7429_v57  ;;  %6942 = vmatprep.subr.bf16.mxu0 %v7742_v8  ;;  %v7437_v55 = vld [vmem:[%s9394_s1 + $0x18] sm:$0xff]   ;;  %v7438_v24 = vld [vmem:[%s9394_s1 + $0x50] sm:$0xff]  }
 0xbf3   : > { %7654 = vrsqrt.f32 %v4970_v12  ;;  %v4969_v45 = vadd.f32 1e-05, %v4961_v50  ;;  %v5028_v60 = vadd.f32 1e-05, %v5020_v56  ;;  %vm4980_vm12 = vcmp.eq.f32.partialorder %v4970_v12, inf  ;;  %v7439_v14 = vld [vmem:[%s9394_s1 + $0x98] sm:$0xff]  }
 0xbf4   : > { %7656 = vrsqrt.f32 %v5029_v61  ;;  %vm4982_vm13 = vcmp.eq.f32.partialorder %v4970_v12, 0.0  ;;  %v4983_v26 = vand.u32 2147483648, %v4970_v12  ;;  %vm5039_vm14 = vcmp.eq.f32.partialorder %v5029_v61, inf  ;;  %v7440_v0 = vld [vmem:[%s9394_s1 + $0x10] sm:$0xff]   ;;  %v7443_v50 = vld [vmem:[%s9394_s1 + $0x8] sm:$0xff]   ;;  %v7444_v56 = vld [vmem:[%s9394_s1 + $0x40] sm:$0xff]  }
 0xbf5   : > { %7658 = vrsqrt.f32 %v4969_v45  ;;  %vm5041_vm15 = vcmp.eq.f32.partialorder %v5029_v61, 0.0  ;;  %v5042_v46 = vand.u32 2147483648, %v5029_v61  ;;  %vm4973_vm1 = vcmp.eq.f32.partialorder %v4969_v45, inf  ;;  %6572 = vmatpush3.bf16.msra.mxu1 %v7431_v37  ;;  %6943 = vmatpush3.bf16.msra.mxu0 %v7433_v28 }
 0xbf6   : > { %7660 = vrsqrt.f32 %v5028_v60  ;;  %v4976_v40 = vand.u32 2147483648, %v4969_v45  ;;  %vm4975_vm2 = vcmp.eq.f32.partialorder %v4969_v45, 0.0  ;;  %vm5032_vm3 = vcmp.eq.f32.partialorder %v5028_v60, inf  ;;  %6573 = vmatprep.subr.bf16.mxu1 %v7432_v38  ;;  %6944 = vmatprep.subr.bf16.mxu0 %v7742_v8 }
 0xbf7   : > { %v5035_v59 = vand.u32 2147483648, %v5028_v60  ;;  %vm5034_vm4 = vcmp.eq.f32.partialorder %v5028_v60, 0.0 }
 0xbf9   : > { %6574 = vmatpush3.bf16.msra.mxu1 %v7434_v20  ;;  %6945 = vmatpush3.bf16.msra.mxu0 %v7436_v5 }
 0xbfa   : > { %6575 = vmatprep.subr.bf16.mxu1 %v7435_v32  ;;  %6946 = vmatprep.subr.bf16.mxu0 %v7742_v8 }
 0xbfd   : > { %6576 = vmatpush3.bf16.msra.mxu1 %v7437_v55  ;;  %6947 = vmatpush3.bf16.msra.mxu0 %v7439_v14 }
 0xbfe   : > { %6577 = vmatprep.subr.bf16.mxu1 %v7438_v24  ;;  %6948 = vmatprep.subr.bf16.mxu0 %v7742_v8 }
 0xc00   : > { %v7655_v42 = vpop.eup %7654 }
 0xc01   : > { %v7657_v34 = vpop.eup %7656  ;;  %v4979_v16 = vmul.f32 %v7655_v42, %v4970_v12  ;;  %6578 = vmatpush3.bf16.msra.mxu1 %v7440_v0  ;;  %v7447_v42 = vld [vmem:[%s9394_s1 + $0x80] sm:$0xff]  }
 0xc02   : > { %v5038_v35 = vmul.f32 %v7657_v34, %v5029_v61  ;;  %v7659_v54 = vpop.eup %7658  ;;  %v4934_v34 = vpop.xlane.xlu0 %4933 }
 0xc03   : > { %v4981_v3 = vsel %vm4980_vm12, %v4970_v12, %v4979_v16  ;;  %v7661_v30 = vpop.eup %7660  ;;  %v4972_v39 = vmul.f32 %v7659_v54, %v4969_v45  ;;  %v7441_v12 = vld [vmem:[%s9394_s1 + $0x48] sm:$0xff]   ;;  %7662 = vrsqrt.f32 %v4934_v34  ;;  %vm4937_vm5 = vcmp.eq.f32.partialorder %v4934_v34, inf }
 0xc04   : > { %v5040_v9 = vsel %vm5039_vm14, %v5029_v61, %v5038_v35  ;;  %v9191_v23 = vsel %vm4982_vm13, %v4983_v26, %v4981_v3  ;;  %v5031_v58 = vmul.f32 %v7661_v30, %v5028_v60  ;;  %v7442_v61 = vld [vmem:[%s9394_s1 + $0x90] sm:$0xff]   ;;  %6579 = vmatprep.subr.bf16.mxu1 %v7441_v12  ;;  %v5407_v35 = vpop.permute.xlu1 %5406  ;;  %v4940_v26 = vand.u32 2147483648, %v4934_v34 }
 0xc05   : > { %v4974_v63 = vsel %vm4973_vm1, %v4969_v45, %v4972_v39  ;;  %v9195_v47 = vsel %vm5041_vm15, %v5042_v46, %v5040_v9  ;;  %v4986_v31 = vmul.f32 %v9191_v23, %v9191_v23  ;;  %6949 = vmatpush3.bf16.msra.mxu0 %v7442_v61  ;;  %6580 = vmatpush3.bf16.msra.mxu1 %v7443_v50  ;;  %v7445_v45 = vld [vmem:[%s9394_s1 + $0x88] sm:$0xff]   ;;  %vm4939_vm7 = vcmp.eq.f32.partialorder %v4934_v34, 0.0 }
 0xc06   : > { %v9193_v7 = vsel %vm4975_vm2, %v4976_v40, %v4974_v63  ;;  %v5033_v11 = vsel %vm5032_vm3, %v5028_v60, %v5031_v58  ;;  %v5045_v53 = vmul.f32 %v9195_v47, %v9195_v47  ;;  %v7446_v60 = vld [vmem:[%s9394_s1] sm:$0xff]   ;;  %6950 = vmatprep.subr.bf16.mxu0 %v7742_v8  ;;  %6581 = vmatprep.subr.bf16.mxu1 %v7444_v56 }
 0xc07   : > { %v4985_v13 = vmul.f32 %v9193_v7, %v9193_v7  ;;  %v9201_v2 = vsel %vm5034_vm4, %v5035_v59, %v5033_v11  ;;  %v5412_v25 = vmul.f32 %v5407_v35, %v9077_v48  ;;  %v5410_v32 = vmul.f32 %v5407_v35, %v9061_v33 }
 0xc08   : > { %v5044_v21 = vmul.f32 %v9201_v2, %v9201_v2 }
 0xc09   : > { %v4989_v19 = vsel %vm4330_vm6, %v4986_v31, %v4985_v13  ;;  %6951 = vmatpush3.bf16.msra.mxu0 %v7445_v45  ;;  %6582 = vmatpush3.bf16.msra.mxu1 %v7446_v60 }
 0xc0a   : > { %v4991_v18 = vsel %vm4931_vm11, %v4989_v19, 0.0  ;;  %v5048_v15 = vsel %vm4330_vm6, %v5045_v53, %v5044_v21  ;;  %6952 = vmatprep.subr.bf16.mxu0 %v7742_v8  ;;  %6958 = vmatprep.subr.bf16.mxu1 %v7742_v8 }
 0xc0b   : > { %4992 = vadd.xlane.f32.xlu1 %v4991_v18  ;;  %v5050_v27 = vsel %vm4931_vm11, %v5048_v15, 0.0 }
 0xc0d   : > { %6953 = vmatpush3.bf16.msra.mxu0 %v7447_v42 }
 0xc0e   : > { %6978 = vmatprep.subr.bf16.mxu0 %v7742_v8 }
 0xc0f   : > { %5051 = vadd.xlane.f32.xlu1 %v5050_v27 }
 0xc10   : > { %v7663_v16 = vpop.eup %7662 }
 0xc11   : > { %v4936_v54 = vmul.f32 %v7663_v16, %v4934_v34 }
 0xc13   : > { %v4938_v30 = vsel %vm4937_vm5, %v4934_v34, %v4936_v54 }
 0xc14   : > { %v4941_v9 = vsel %vm4939_vm7, %v4940_v26, %v4938_v30 }
 0xc15   : > { %v4942_v46 = vmax.f32 %v4941_v9, 1e-12 }
 0xc17   : > { %v4944_v58 = vrot.slane %v4942_v46, 1 }
 0xc20   : > { %5443 = vperm.xlu1 %7279, %v5393_v51  }
 0xc24   : > { %5448 = vperm.xlu1 %7279, %v5394_v22  }
 0xc28   : > { %5415 = vperm.xlu1 %7279, %v5395_v43  }
 0xc2c   : > { %5420 = vperm.xlu1 %7279, %v5396_v49  }
 0xc30   : > { %5457 = vperm.xlu1 %7279, %v5397_v17   ;;  %v5402_v17 = vpop.permute.xlu0 %5401 }
 0xc31   : > { %v5411_v62 = vmul.f32 %v5402_v17, %v9075_v6  ;;  %v5409_v0 = vmul.f32 %v5402_v17, %v9058_v52 }
 0xc34   : > { %5462 = vperm.xlu1 %7279, %v5398_v4  }
 0xc94   : > { %v4993_v3 = vpop.xlane.xlu1 %4992 }
 0xc95   : > { %7664 = vrsqrt.f32 %v4993_v3  ;;  %vm4996_vm8 = vcmp.eq.f32.partialorder %v4993_v3, inf  ;;  %v4999_v13 = vand.u32 2147483648, %v4993_v3  ;;  %vm4998_vm9 = vcmp.eq.f32.partialorder %v4993_v3, 0.0 }
 0xc98   : > { %v5052_v39 = vpop.xlane.xlu1 %5051 }
 0xc99   : > { %7666 = vrsqrt.f32 %v5052_v39  ;;  %vm5055_vm10 = vcmp.eq.f32.partialorder %v5052_v39, inf  ;;  %v5058_v27 = vand.u32 2147483648, %v5052_v39  ;;  %vm5057_vm11 = vcmp.eq.f32.partialorder %v5052_v39, 0.0 }
 0xc9a   : > { %7668 = vrcp.f32 %v4944_v58 }
 0xc9b   : > { %7670 = vrcp.f32 %v4942_v46 }
 0xc9c   : > { %v5444_v40 = vpop.permute.xlu1 %5443 }
 0xc9d   : > { %v5453_v28 = vmul.f32 %v5444_v40, %v9075_v6  ;;  %v5451_v6 = vmul.f32 %v5444_v40, %v9058_v52 }
 0xca0   : > { %v5449_v63 = vpop.permute.xlu1 %5448 }
 0xca1   : > { %v5454_v37 = vmul.f32 %v5449_v63, %v9077_v48  ;;  %v5452_v50 = vmul.f32 %v5449_v63, %v9061_v33 }
 0xca2   : > { %v7665_v59 = vpop.eup %7664 }
 0xca3   : > { %v4995_v11 = vmul.f32 %v7665_v59, %v4993_v3 }
 0xca4   : > { %v5416_v31 = vpop.permute.xlu1 %5415 }
 0xca5   : > { %v4997_v21 = vsel %vm4996_vm8, %v4993_v3, %v4995_v11  ;;  %v5425_v38 = vadd.f32 %v5416_v31, %v5411_v62  ;;  %v5423_v48 = vadd.f32 %v5416_v31, %v5409_v0  ;;  %v7454_v62 = vld [vmem:[%s9395_s2 + $0x20] sm:$0xff]  }
 0xca6   : > { %v7667_v19 = vpop.eup %7666  ;;  %v5000_v53 = vsel %vm4998_vm9, %v4999_v13, %v4997_v21 }
 0xca7   : > { %v5001_v18 = vmax.f32 %v5000_v53, 1e-12  ;;  %v5054_v15 = vmul.f32 %v7667_v19, %v5052_v39  ;;  %v7669_v1 = vpop.eup %7668  ;;  %v7449_v53 = vld [vmem:[%s9395_s2 + $0x78] sm:$0xff]  }
 0xca8   : > { %v5421_v51 = vpop.permute.xlu1 %5420  ;;  %v4950_v55 = vmul.f32 %v7669_v1, %v9156_v44  ;;  %v7671_v14 = vpop.eup %7670 }
 0xca9   : > { %v5003_v22 = vrot.slane %v5001_v18, 1  ;;  %v5056_v43 = vsel %vm5055_vm10, %v5052_v39, %v5054_v15  ;;  %7672 = vrcp.f32 %v5001_v18  ;;  %v5426_v57 = vadd.f32 %v5421_v51, %v5412_v25  ;;  %v7450_v15 = vld [vmem:[%s9395_s2 + $0x30] sm:$0xff]  }
 0xcaa   : > { %v5059_v49 = vsel %vm5057_vm11, %v5058_v27, %v5056_v43  ;;  %v5424_v12 = vadd.f32 %v5421_v51, %v5410_v32  ;;  %v5071_v42 = vrot.slane %v4950_v55, 7  ;;  %v4948_v35 = vmul.f32 %v7671_v14, %v9160_v29  ;;  %v7448_v29 = vld [vmem:[%s9395_s2 + $0x38] sm:$0xff]   ;;  %v7458_v14 = vld [vmem:[%s9395_s2 + $0x10] sm:$0xff]  }
 0xcab   : > { %7674 = vrcp.f32 %v5003_v22  ;;  %v5060_v10 = vmax.f32 %v5059_v49, 1e-12  ;;  %v5434_v5 = vmax.f32 %v5425_v38, %v5426_v57  ;;  %v7451_v22 = vld [vmem:[%s9395_s2 + $0x70] sm:$0xff]   ;;  %v7452_v49 = vld [vmem:[%s9395_s2 + $0x28] sm:$0xff]   ;;  %v7457_v55 = vld [vmem:[%s9395_s2 + $0x58] sm:$0xff]  }
 0xcac   : > { %v5458_v36 = vpop.permute.xlu1 %5457  ;;  %v5427_v44 = vmax.f32 %v5423_v48, %v5424_v12  ;;  %v5072_v46 = vsel %vm4330_vm6, %v5071_v42, %v4948_v35 }
 0xcad   : > { %v5062_v41 = vrot.slane %v5060_v10, 1  ;;  %7676 = vrcp.f32 %v5060_v10  ;;  %v5467_v24 = vadd.f32 %v5458_v36, %v5453_v28  ;;  %v5435_v60 = vrot.slane %v5434_v5, 4  ;;  %v7456_v28 = vld [vmem:[%s9395_s2 + $0x18] sm:$0xff]  }
 0xcae   : > { %v5465_v3 = vadd.f32 %v5458_v36, %v5451_v6  ;;  %v5428_v40 = vrot.slane %v5427_v44, 4  ;;  %v5084_v11 = vpack.c.bf16 %v5072_v46, %v5072_v46  ;;  %v7461_v6 = vld [vmem:[%s9395_s2 + $0x48] sm:$0xff]   ;;  %v7466_v46 = vld [vmem:[%s9396_s0 + $0x30] sm:$0xff]  }
 0xcaf   : > { %7678 = vrcp.f32 %v5062_v41  ;;  %v5436_v9 = vmax.f32 %v5434_v5, %v5435_v60  ;;  %v7453_v41 = vld [vmem:[%s9395_s2 + $0x68] sm:$0xff]  }
 0xcb0   : > { %v5463_v4 = vpop.permute.xlu1 %5462  ;;  %v5429_v18 = vmax.f32 %v5427_v44, %v5428_v40  ;;  %v7470_v40 = vld [vmem:[%s9396_s0 + $0x20] sm:$0xff]  }
 0xcb1   : > { %v5468_v20 = vadd.f32 %v5463_v4, %v5454_v37  ;;  %v5466_v34 = vadd.f32 %v5463_v4, %v5452_v50  ;;  %v5437_v31 = vrot.slane %v5436_v9, 2  ;;  %v7455_v37 = vld [vmem:[%s9395_s2 + $0x60] sm:$0xff]   ;;  %v7459_v50 = vld [vmem:[%s9395_s2 + $0x50] sm:$0xff]  }
 0xcb2   : > { %v5430_v43 = vrot.slane %v5429_v18, 2 }
 0xcb3   : > { %v5476_v56 = vmax.f32 %v5467_v24, %v5468_v20  ;;  %v5469_v58 = vmax.f32 %v5465_v3, %v5466_v34  ;;  %v7463_v3 = vld [vmem:[%s9395_s2 + $0x40] sm:$0xff]  }
 0xcb4   : > { %v5431_v25 = vmax.f32 %v5429_v18, %v5430_v43 }
 0xcb5   : > { %v5477_v26 = vrot.slane %v5476_v56, 4  ;;  %v5470_v21 = vrot.slane %v5469_v58, 4 }
 0xcb6   : > { %v7673_v61 = vpop.eup %7672  ;;  %v5432_v38 = vrot.slane %v5431_v25, 1 }
 0xcb7   : > { %v5007_v30 = vmul.f32 %v7673_v61, %v9193_v7  ;;  %v5478_v59 = vmax.f32 %v5476_v56, %v5477_v26  ;;  %v5471_v51 = vmax.f32 %v5469_v58, %v5470_v21  ;;  %v7467_v58 = vld [vmem:[%s9396_s0 + $0x70] sm:$0xff]   ;;  %v7478_v21 = vld [vmem:[%s9396_s0] sm:$0xff]  }
 0xcb8   : > { %v7675_v45 = vpop.eup %7674  ;;  %v5433_v24 = vmax.f32 %v5431_v25, %v5432_v38 }
 0xcb9   : > { %v5009_v16 = vmul.f32 %v7675_v45, %v9191_v23  ;;  %v5479_v27 = vrot.slane %v5478_v59, 2  ;;  %v5472_v17 = vrot.slane %v5471_v51, 2  ;;  %v7460_v45 = vld [vmem:[%s9395_s2 + $0x8] sm:$0xff]  }
 0xcba   : > { %v7677_v54 = vpop.eup %7676  ;;  %v5483_v56 = vpack.c.bf16 %v5433_v24, %v5433_v24 }
 0xcbb   : > { %v5076_v33 = vrot.slane %v5009_v16, 7  ;;  %v5066_v13 = vmul.f32 %v7677_v54, %v9201_v2  ;;  %v5438_v2 = vmax.f32 %v5436_v9, %v5437_v31  ;;  %v5480_v10 = vmax.f32 %v5478_v59, %v5479_v27  ;;  %v7462_v16 = vld [vmem:[%s9395_s2] sm:$0xff]   ;;  %v7465_v9 = vld [vmem:[%s9396_s0 + $0x78] sm:$0xff]   ;;  %v7477_v31 = vld [vmem:[%s9396_s0 + $0x48] sm:$0xff]  }
 0xcbc   : > { %v7679_v39 = vpop.eup %7678  ;;  %v5473_v1 = vmax.f32 %v5471_v51, %v5472_v17  ;;  %v5535_v34 = vunpack.c.l.b16 %v5483_v56  ;;  %v7473_v59 = vld [vmem:[%s9396_s0 + $0x58] sm:$0xff]  }
 0xcbd   : > { %v5077_v52 = vsel %vm4330_vm6, %v5076_v33, %v5007_v30  ;;  %v5068_v23 = vmul.f32 %v7679_v39, %v9195_v47  ;;  %v5439_v36 = vrot.slane %v5438_v2, 1  ;;  %v5481_v57 = vrot.slane %v5480_v10, 1  ;;  %v7464_v39 = vld [vmem:[%s9396_s0 + $0x38] sm:$0xff]  }
 0xcbe   : > { %v5085_v63 = vpack.c.bf16 %v5077_v52, %v5077_v52  ;;  %v5474_v5 = vrot.slane %v5473_v1, 1  ;;  %v7468_v52 = vld [vmem:[%s9396_s0 + $0x28] sm:$0xff]  }
 0xcbf   : > { %v5081_v7 = vrot.slane %v5068_v23, 7  ;;  %v5440_v4 = vmax.f32 %v5438_v2, %v5439_v36  ;;  %v5482_v20 = vmax.f32 %v5480_v10, %v5481_v57  ;;  %v7469_v23 = vld [vmem:[%s9396_s0 + $0x68] sm:$0xff]   ;;  %v6310_v57 = vld [vmem:[%s9398_s10] ss:$0 sm:$0xff] }
 0xcc0   : > { %5318 = vmatprep.mubr.bf16.mxu1 %v5085_v63  ;;  %v5475_v61 = vmax.f32 %v5473_v1, %v5474_v5  ;;  %v7471_v63 = vld [vmem:[%s9396_s0 + $0x60] sm:$0xff]  }
 0xcc1   : > { %5319 = vmatmul.mubr.bf16.vlgmr.msra.gmra.mxu1 %v5084_v11  ;;  %v5082_v19 = vsel %vm4330_vm6, %v5081_v7, %v5066_v13  ;;  %v5484_v32 = vpack.c.bf16 %v5440_v4, %v5440_v4  ;;  %v5486_v0 = vpack.c.bf16 %v5482_v20, %v5482_v20  ;;  %v7474_v11 = vld [vmem:[%s9396_s0 + $0x10] sm:$0xff]   ;;  %v7476_v7 = vld [vmem:[%s9396_s0 + $0x8] sm:$0xff]   ;;  %v6311_v20 = vld [vmem:[%s9398_s10 + $0x1] ss:$0 sm:$0xff] }
 0xcc2   : > { %6959 = vmatpush3.bf16.msra.mxu1 %v7448_v29  ;;  %v5086_v47 = vpack.c.bf16 %v5082_v19, %v5082_v19  ;;  %6974 = vmatprep.mubr.msk.bf16.mxu1 %vm7744_vm0, %v7742_v8  ;;  %v5485_v42 = vpack.c.bf16 %v5475_v61, %v5475_v61  ;;  %v7472_v29 = vld [vmem:[%s9396_s0 + $0x18] sm:$0xff]   ;;  %v7475_v13 = vld [vmem:[%s9396_s0 + $0x50] sm:$0xff]   ;;  %v7479_v19 = vld [vmem:[%s9396_s0 + $0x40] sm:$0xff]  }
 0xcc3   : > { %6960 = vmatprep.subr.bf16.mxu1 %v7742_v8  ;;  %v5536_v12 = vunpack.c.l.b16 %v5484_v32  ;;  %v5632_v48 = vunpack.c.l.b16 %v5486_v0  ;;  %v6308_v5 = vld [vmem:[%s9399_s11] ss:$0 sm:$0xff] }
 0xcc4   : > { %6955 = vmatmul.mubr.bf16.vlgmr.msra.gmra.mxu0 %v5086_v47  ;;  %v5631_v54 = vunpack.c.l.b16 %v5485_v42  ;;  %v6283_v47 = vld [vmem:[%s9397_s7] ss:$0 sm:$0xff] }
 0xcc5   : > { %6979 = vmatpush3.bf16.msra.mxu0 %v7449_v53  ;;  %6994 = vmatprep.mubr.msk.bf16.mxu0 %vm7744_vm0, %v7742_v8  ;;  %v5537_v60 = vrot.slane %v5536_v12, 7  ;;  %v5633_v44 = vrot.slane %v5632_v48, 7  ;;  %v6309_v61 = vld [vmem:[%s9400_s15] ss:$0 sm:$0xff] }
 0xcc6   : > { %6961 = vmatpush3.bf16.msra.mxu1 %v7450_v15  ;;  %6980 = vmatprep.subr.bf16.mxu0 %v7742_v8 }
 0xcc7   : > { %6962 = vmatprep.subr.bf16.mxu1 %v7742_v8  ;;  %v5538_v35 = vsel %vm4330_vm6, %v5537_v60, %v5535_v34  ;;  %v5634_v30 = vsel %vm4330_vm6, %v5633_v44, %v5631_v54 }
 0xcc8   : > { %v5539_v26 = vpack.c.b16 %v5538_v35, %v5538_v35  ;;  %v5635_v33 = vpack.c.b16 %v5634_v30, %v5634_v30 }
 0xcc9   : > { %6981 = vmatpush3.bf16.msra.mxu0 %v7451_v22 }
 0xcca   : > { %6963 = vmatpush3.bf16.msra.mxu1 %v7452_v49  ;;  %6982 = vmatprep.subr.bf16.mxu0 %v7742_v8 }
 0xccb   : > { %6964 = vmatprep.subr.bf16.mxu1 %v7742_v8 }
 0xccd   : > { %6983 = vmatpush3.bf16.msra.mxu0 %v7453_v41 }
 0xcce   : > { %6965 = vmatpush3.bf16.msra.mxu1 %v7454_v62  ;;  %6984 = vmatprep.subr.bf16.mxu0 %v7742_v8 }
 0xccf   : > { %6966 = vmatprep.subr.bf16.mxu1 %v7742_v8 }
 0xcd1   : > { %6985 = vmatpush3.bf16.msra.mxu0 %v7455_v37 }
 0xcd2   : > { %6967 = vmatpush3.bf16.msra.mxu1 %v7456_v28  ;;  %6986 = vmatprep.subr.bf16.mxu0 %v7742_v8 }
 0xcd3   : > { %6968 = vmatprep.subr.bf16.mxu1 %v7742_v8 }
 0xcd5   : > { %6987 = vmatpush3.bf16.msra.mxu0 %v7457_v55 }
 0xcd6   : > { %6969 = vmatpush3.bf16.msra.mxu1 %v7458_v14  ;;  %6988 = vmatprep.subr.bf16.mxu0 %v7742_v8 }
 0xcd7   : > { %6970 = vmatprep.subr.bf16.mxu1 %v7742_v8 }
 0xcd9   : > { %6989 = vmatpush3.bf16.msra.mxu0 %v7459_v50 }
 0xcda   : > { %6971 = vmatpush3.bf16.msra.mxu1 %v7460_v45  ;;  %6990 = vmatprep.subr.bf16.mxu0 %v7742_v8 }
 0xcdb   : > { %6972 = vmatprep.subr.bf16.mxu1 %v7742_v8 }
 0xcdd   : > { %6991 = vmatpush3.bf16.msra.mxu0 %v7461_v6 }
 0xcde   : > { %6973 = vmatpush3.bf16.msra.mxu1 %v7462_v16  ;;  %6992 = vmatprep.subr.bf16.mxu0 %v7742_v8 }
 0xcdf   : > { %6998 = vmatprep.subr.bf16.mxu1 %v7742_v8 }
 0xce1   : > { %6975 = vmatmul.mubr.bf16.vlgmr.msra.gmra.mxu1 %v5539_v26  ;;  %6993 = vmatpush3.bf16.msra.mxu0 %v7463_v3 }
 0xce2   : > { %7018 = vmatprep.subr.bf16.mxu0 %v7742_v8  ;;  %7014 = vmatprep.mubr.msk.bf16.mxu1 %vm7744_vm0, %v7742_v8 }
 0xce3   : > { %6999 = vmatpush3.bf16.msra.mxu1 %v7464_v39 }
 0xce4   : > { %6995 = vmatmul.mubr.bf16.vlgmr.msra.gmra.mxu0 %v5635_v33  ;;  %7000 = vmatprep.subr.bf16.mxu1 %v7742_v8 }
 0xce5   : > { %7034 = vmatprep.mubr.msk.bf16.mxu0 %vm7744_vm0, %v7742_v8  ;;  %7019 = vmatpush3.bf16.msra.mxu0 %v7465_v9 }
 0xce6   : > { %7020 = vmatprep.subr.bf16.mxu0 %v7742_v8 }
 0xce7   : > { %7001 = vmatpush3.bf16.msra.mxu1 %v7466_v46  ;;  %v6328_v46 = vld [vmem:[%s9401_s23] ss:$0 sm:$0xff] }
 0xce8   : > { %7002 = vmatprep.subr.bf16.mxu1 %v7742_v8 }
 0xce9   : > { %7021 = vmatpush3.bf16.msra.mxu0 %v7467_v58 }
 0xcea   : > { %7022 = vmatprep.subr.bf16.mxu0 %v7742_v8 }
 0xceb   : > { %7003 = vmatpush3.bf16.msra.mxu1 %v7468_v52 }
 0xcec   : > { %7004 = vmatprep.subr.bf16.mxu1 %v7742_v8 }
 0xced   : > { %7023 = vmatpush3.bf16.msra.mxu0 %v7469_v23 }
 0xcee   : > { %7024 = vmatprep.subr.bf16.mxu0 %v7742_v8 }
 0xcef   : > { %7005 = vmatpush3.bf16.msra.mxu1 %v7470_v40  ;;  %v6330_v40 = vld [vmem:[%s9402_s26] ss:$0 sm:$0xff] }
 0xcf0   : > { %7006 = vmatprep.subr.bf16.mxu1 %v7742_v8 }
 0xcf1   : > { %7025 = vmatpush3.bf16.msra.mxu0 %v7471_v63 }
 0xcf2   : > { %7026 = vmatprep.subr.bf16.mxu0 %v7742_v8 }
 0xcf3   : > { %7007 = vmatpush3.bf16.msra.mxu1 %v7472_v29 }
 0xcf4   : > { %7008 = vmatprep.subr.bf16.mxu1 %v7742_v8 }
 0xcf5   : > { %7027 = vmatpush3.bf16.msra.mxu0 %v7473_v59  ;;  %v6329_v59 = vld [vmem:[%s9401_s23 + $0x1] ss:$0 sm:$0xff] }
 0xcf6   : > { %7028 = vmatprep.subr.bf16.mxu0 %v7742_v8 }
 0xcf7   : > { %7009 = vmatpush3.bf16.msra.mxu1 %v7474_v11 }
 0xcf8   : > { %7010 = vmatprep.subr.bf16.mxu1 %v7742_v8 }
 0xcf9   : > { %7029 = vmatpush3.bf16.msra.mxu0 %v7475_v13 }
 0xcfa   : > { %7030 = vmatprep.subr.bf16.mxu0 %v7742_v8 }
 0xcfb   : > { %7011 = vmatpush3.bf16.msra.mxu1 %v7476_v7  ;;  %v6331_v7 = vld [vmem:[%s9402_s26 + $0x1] ss:$0 sm:$0xff] }
 0xcfc   : > { %7012 = vmatprep.subr.bf16.mxu1 %v7742_v8 }
 0xcfd   : > { %7031 = vmatpush3.bf16.msra.mxu0 %v7477_v31 }
 0xcfe   : > { %7032 = vmatprep.subr.bf16.mxu0 %v7742_v8 }
 0xcff   : > { %7013 = vmatpush3.bf16.msra.mxu1 %v7478_v21 }
 0xd01   : > { %7033 = vmatpush3.bf16.msra.mxu0 %v7479_v19 }
 0xd81   : > { %v6583_v53 = vpop.f32.mrf.mxu1 }
 0xd83   : > { %v6584_v18 = vpop.f32.mrf.mxu1 }
 0xd84   : > { %v6585_v15 = vadd.f32 %v6584_v18, %v6583_v53  ;;  %v5360_v27 = vpop.f32.mrf.mxu0  ;;  %v6332_v18 = vld [vmem:[%s7921_s4] ss:$0 sm:$0xff] }
 0xd85   : > { %v6586_v2 = vpop.f32.mrf.mxu1 }
 0xd86   : > { %v5321_v51 = vadd.f32 %v6585_v15, %v6283_v47  ;;  %v6956_v22 = vpop.f32.mrf.mxu0 }
 0xd87   : > { %v6587_v43 = vpop.f32.mrf.mxu1 }
 0xd88   : > { %v5361_v49 = vadd.f32 %v5360_v27, %v5321_v51  ;;  %v5363_v10 = vpop.f32.mrf.mxu0  ;;  %v6333_v27 = vld [vmem:[%s7921_s4 + $0x1] ss:$0 sm:$0xff] }
 0xd8a   : > { %v5367_v36 = vmul.f32 0.044715, %v5361_v49  ;;  %v6957_v17 = vpop.f32.mrf.mxu0  ;;  %v5366_v37 = vmul.f32 0.5, %v5361_v49 }
 0xd8c   : > { %v5368_v41 = vmul.f32 %v5367_v36, %v5361_v49 }
 0xd8e   : > { %v5369_v8 = vmul.f32 %v5368_v41, %v5361_v49 }
 0xd90   : > { %v5370_v25 = vadd.f32 %v5369_v8, %v5361_v49 }
 0xd92   : > { %v5371_v62 = vmul.f32 0.7978846, %v5370_v25 }
 0xd94   : > { %7680 = vtanh.f32 %v5371_v62 }
 0xda1   : > { %v7681_v4 = vpop.eup %7680  ;;  %v5623_v1 = vpop.f32.mrf.mxu1 }
 0xda2   : > { %v5373_v38 = vadd.f32 1.0, %v7681_v4  ;;  %v5624_v28 = vadd.f32 %v6310_v57, %v5623_v1 }
 0xda3   : > { %v6976_v32 = vpop.f32.mrf.mxu1 }
 0xda4   : > { %v5374_v55 = vmul.f32 %v5373_v38, %v5366_v37  ;;  %v5727_v24 = vmul.f32 0.044715, %v5624_v28  ;;  %v5719_v14 = vpop.f32.mrf.mxu0  ;;  %v5725_v39 = vmul.f32 0.5, %v5624_v28 }
 0xda5   : > { %v5720_v0 = vadd.f32 %v6311_v20, %v5719_v14  ;;  %v5626_v12 = vpop.f32.mrf.mxu1 }
 0xda6   : > { %v5729_v50 = vmul.f32 %v5727_v24, %v5624_v28  ;;  %v6996_v56 = vpop.f32.mrf.mxu0  ;;  %v5382_v45 = vmul.f32 %v6308_v5, %v5374_v55 }
 0xda7   : > { %v5728_v48 = vmul.f32 0.044715, %v5720_v0  ;;  %v6977_v60 = vpop.f32.mrf.mxu1  ;;  %v5726_v23 = vmul.f32 0.5, %v5720_v0 }
 0xda8   : > { %v5731_v42 = vmul.f32 %v5729_v50, %v5624_v28  ;;  %v5722_v6 = vpop.f32.mrf.mxu0  ;;  %v5390_v34 = vadd.f32 %v6309_v61, %v5382_v45 }
 0xda9   : > { %v5730_v16 = vmul.f32 %v5728_v48, %v5720_v0 }
 0xdaa   : > { %v5733_v44 = vadd.f32 %v5731_v42, %v5624_v28  ;;  %v6997_v35 = vpop.f32.mrf.mxu0  ;;  %6000 = vst [vmem:[%s9089_s22 + $0x2] sm:$0x3] %v5390_v34 }
 0xdab   : > { %v5732_v54 = vmul.f32 %v5730_v16, %v5720_v0 }
 0xdac   : > { %v5735_v3 = vmul.f32 0.7978846, %v5733_v44 }
 0xdad   : > { %v5734_v26 = vadd.f32 %v5732_v54, %v5720_v0 }
 0xdae   : > { %7682 = vtanh.f32 %v5735_v3 }
 0xdaf   : > { %v5736_v30 = vmul.f32 0.7978846, %v5734_v26 }
 0xdb1   : > { %7684 = vtanh.f32 %v5736_v30 }
 0xdbb   : > { %v7683_v33 = vpop.eup %7682 }
 0xdbc   : > { %v5739_v9 = vadd.f32 1.0, %v7683_v33 }
 0xdbe   : > { %v7685_v58 = vpop.eup %7684  ;;  %v5741_v52 = vmul.f32 %v5739_v9, %v5725_v39 }
 0xdbf   : > { %v5740_v63 = vadd.f32 1.0, %v7685_v58 }
 0xdc0   : > { %v5757_v29 = vmul.f32 %v6328_v46, %v5741_v52 }
 0xdc1   : > { %v5742_v11 = vmul.f32 %v5740_v63, %v5726_v23 }
 0xdc2   : > { %v5773_v13 = vadd.f32 %v6330_v40, %v5757_v29 }
 0xdc3   : > { %v5758_v31 = vmul.f32 %v6329_v59, %v5742_v11 }
 0xdc4   : > { %v5775_v21 = vpack.c.bf16 %v5773_v13, %v5773_v13 }
 0xdc5   : > { %v5774_v19 = vadd.f32 %v6331_v7, %v5758_v31 }
 0xdc6   : > { %7015 = vmatmul.mubr.bf16.vlgmr.msra.gmra.mxu1 %v5775_v21 }
 0xdc7   : > { %v5776_v53 = vpack.c.bf16 %v5774_v19, %v5774_v19 }
 0xdc9   : > { %7035 = vmatmul.mubr.bf16.vlgmr.msra.gmra.mxu0 %v5776_v53 }
 0xe86   : > { %v5905_v47 = vpop.f32.mrf.mxu1 }
 0xe87   : > { %v5906_v15 = vadd.f32 %v6332_v18, %v5905_v47 }
 0xe88   : > { %v7016_v2 = vpop.f32.mrf.mxu1 }
 0xe89   : > { %6001 = vst [vmem:[%s9089_s22 + $0x4] sm:$0x3] %v5906_v15  ;;  %v5993_v51 = vpop.f32.mrf.mxu0 }
 0xe8a   : > { %v5994_v22 = vadd.f32 %v6333_v27, %v5993_v51  ;;  %v5908_v43 = vpop.f32.mrf.mxu1 }
 0xe8b   : > { %v7036_v49 = vpop.f32.mrf.mxu0 }
 0xe8c   : > { %6002 = vst [vmem:[%s9089_s22 + $0x6] sm:$0x3] %v5994_v22  ;;  %v7017_v10 = vpop.f32.mrf.mxu1 }
 0xe8d   : > { %v5996_v36 = vpop.f32.mrf.mxu0 }
 0xe8f   : > { %v7037_v17 = vpop.f32.mrf.mxu0 }
 0xe90 PF: > { %s83_s28 = sadd.s32 1, %s7704_s28  }
 0xe91   : > { %p80_p5 = scmp.ge.s32.totalorder %s83_s28, 4  }
 0xe93   :  { %82 = sbr.rel (!%p80_p5) target bundleno = 61 (0x3d), region = 233 }

</bundles_post_ra>
